<compile_context>
chip_gen: v5e
topology: v5e:2x2
jax: 0.10.0
libtpu: 0.0.40
codegen_flags: <defaults>
</compile_context>

<pallas_src>
import functools
import math

import numpy as np

import jax
import jax.numpy as jnp
from jax.experimental import pallas as pl
from jax.experimental.pallas import tpu as pltpu

# ---------------- model dimensions (ToMNet defaults + small feature dims) ----
INPUT_DIM = 8
STATE_DIM = 16
HIDDEN_DIM = 64
CHAR_DIM = 32
MENTAL_DIM = 32
OUTPUT_DIM = 5
OUT_PAD = 128           # lane-dense padded output width
PRED_SEQ_LEN = 5

_SLAB_COLS = 4 * HIDDEN_DIM   # 256 lanes, widest weight row

VMEM_SPEC = pl.BlockSpec(memory_space=pltpu.MemorySpace.VMEM)


def _round_up8(x):
    return ((x + 7) // 8) * 8


# ---------------- static weight-slab layout (model dims only) ----------------
def _build_layout():
    layout = {}
    r = 0

    def add(name, rows, cols):
        nonlocal r
        layout[name] = (r, rows, cols)
        r += _round_up8(rows)

    H = HIDDEN_DIM
    add("c0_wih", INPUT_DIM, 4 * H)
    add("c0_whh", H, 4 * H)
    add("c0_b", 1, 4 * H)
    add("c1_w", 2 * H, 4 * H)          # vstack(w_ih, w_hh) of char layer 1
    add("c1_b", 1, 4 * H)
    add("cfc1_w", H, H)
    add("cfc1_b", 1, H)
    add("cfc2_w", H, CHAR_DIM)
    add("cfc2_b", 1, CHAR_DIM)
    add("ms_wih", INPUT_DIM, 4 * H)
    add("ms_whh", H, 4 * H)
    add("ms_b", 1, 4 * H)
    add("mscfc_w", CHAR_DIM, H)
    add("mscfc_b", 1, H)
    add("msfc1_w", 2 * H, H)           # combined [traj | char_feat] fc1
    add("msfc1_b", 1, H)
    add("msfc2_w", H, MENTAL_DIM)
    add("msfc2_b", 1, MENTAL_DIM)
    add("prfc1_w", CHAR_DIM + MENTAL_DIM + STATE_DIM, H)
    add("prfc1_b", 1, H)
    add("prfc2_w", H, H)
    add("prfc2_b", 1, H)
    add("pr_wih", H, 4 * H)
    add("pr_whh", H, 4 * H)
    add("pr_b", 1, 4 * H)
    add("prfc3_w", H, OUT_PAD)         # zero-padded 5 -> 128 lanes
    add("prfc3_b", 1, OUT_PAD)
    return layout, r


_LAYOUT, _SLAB_ROWS = _build_layout()


# ---------------- the single fused Pallas kernel ------------------------------
def _tomnet_kernel(meanmat_ref, past_ref, recent_ref, state_ref, w_ref, out_ref,
                   *, tp, tr, bn_pad, b_pad):
    f32 = jnp.float32
    H = HIDDEN_DIM

    def W(name):
        r, rows, cols = _LAYOUT[name]
        return w_ref[r:r + rows, :cols]

    def dot(a, b):
        return jnp.dot(a, b, preferred_element_type=f32)

    def cell(gates, c_prev):
        # gate columns were host-permuted to (i, f, o, g):
        # one wide sigmoid + one tanh per cell.
        sg = jax.nn.sigmoid(gates[:, :3 * H])
        g_g = jnp.tanh(gates[:, 3 * H:])
        c_new = sg[:, H:2 * H] * c_prev + sg[:, :H] * g_g
        return sg[:, 2 * H:] * jnp.tanh(c_new), c_new

    # ---------------- Character network: 2-layer LSTM over past trajs --------
    # Hoisted layer-0 input projection: one [Tp*BNp, D] x [D, 4H] matmul (+bias).
    proj0 = dot(past_ref[...], W("c0_wih")) + W("c0_b")
    w0hh = W("c0_whh")
    c1w = W("c1_w")                                        # [2H, 4H] fused ih|hh
    b1 = jnp.broadcast_to(W("c1_b"), (bn_pad, 4 * H))      # hoisted broadcast
    h0 = jnp.zeros((bn_pad, H), f32)
    c0s = jnp.zeros((bn_pad, H), f32)
    h1 = jnp.zeros((bn_pad, H), f32)
    c1s = jnp.zeros((bn_pad, H), f32)
    for t in range(tp):
        g0 = proj0[t * bn_pad:(t + 1) * bn_pad] + dot(h0, w0hh)
        h0, c0s = cell(g0, c0s)
        # layer-1: single K=128 matmul on the lane-concat of [h0 | h1]
        g1 = dot(jnp.concatenate([h0, h1], axis=1), c1w) + b1
        h1, c1s = cell(g1, c1s)
    # mean over trajectories per batch element, as a selector matmul
    emb = dot(meanmat_ref[...], h1)                                  # [B_pad, H]
    y = jnp.maximum(dot(emb, W("cfc1_w")) + W("cfc1_b"), 0.0)
    character = dot(y, W("cfc2_w")) + W("cfc2_b")                    # [B_pad, CHAR]

    # ---------------- Mental-state network: LSTM over recent trajectory ------
    projr = dot(recent_ref[...], W("ms_wih")) + W("ms_b")
    wmhh = W("ms_whh")
    hm = jnp.zeros((b_pad, H), f32)
    cm = jnp.zeros((b_pad, H), f32)
    for t in range(tr):
        gm = projr[t * b_pad:(t + 1) * b_pad] + dot(hm, wmhh)
        hm, cm = cell(gm, cm)
    char_feat = jnp.maximum(dot(character, W("mscfc_w")) + W("mscfc_b"), 0.0)
    ym = jnp.maximum(
        dot(jnp.concatenate([hm, char_feat], axis=1), W("msfc1_w"))
        + W("msfc1_b"), 0.0)
    mental = dot(ym, W("msfc2_w")) + W("msfc2_b")                    # [B_pad, MENTAL]

    # ---------------- Prediction network --------------------------------------
    comb = jnp.concatenate([character, mental, state_ref[...]], axis=1)
    yp = jnp.maximum(dot(comb, W("prfc1_w")) + W("prfc1_b"), 0.0)
    fused = jnp.maximum(dot(yp, W("prfc2_w")) + W("prfc2_b"), 0.0)   # [B_pad, H]

    # Prediction LSTM: input identical at every step -> project once, reuse.
    xproj = dot(fused, W("pr_wih")) + W("pr_b")                      # [B_pad, 4H]
    wphh = W("pr_whh")
    hp = jnp.zeros((b_pad, H), f32)
    cp = jnp.zeros((b_pad, H), f32)
    hs = []
    for _ in range(PRED_SEQ_LEN):
        gp = xproj + dot(hp, wphh)
        hp, cp = cell(gp, cp)
        hs.append(hp)
    # Final dense done ONCE after the loop on the stacked hidden states,
    # with a lane-dense (128-wide) store.
    hcat = jnp.concatenate(hs, axis=0)                               # [T*B_pad, H]
    out_ref[...] = dot(hcat, W("prfc3_w")) + W("prfc3_b")            # [T*B_pad, 128]


# ---------------- wrapper: layout plumbing + single pallas_call ---------------
def _mean_selector(batch, num_trajs, b_pad, bn_pad):
    m = np.zeros((b_pad, bn_pad), np.float32)
    for b in range(batch):
        m[b, b * num_trajs:(b + 1) * num_trajs] = 1.0 / num_trajs
    return jnp.asarray(m)


def _permute_gates(w):
    """PyTorch (i,f,g,o) gate columns -> (i,f,o,g) for one-sigmoid/one-tanh cell."""
    H = HIDDEN_DIM
    return jnp.concatenate([w[:, :2 * H], w[:, 3 * H:], w[:, 2 * H:3 * H]], axis=1)


def pack_weight_slab(params):
    """Pack all weights/biases into one [rows, 256] f32 slab (static layout)."""
    entries = {}

    w, wh, b = params["char_lstm_l0"]
    entries["c0_wih"], entries["c0_whh"], entries["c0_b"] = (
        _permute_gates(w), _permute_gates(wh), _permute_gates(b))
    w, wh, b = params["char_lstm_l1"]
    entries["c1_w"] = jnp.concatenate(
        [_permute_gates(w), _permute_gates(wh)], axis=0)             # [2H, 4H]
    entries["c1_b"] = _permute_gates(b)
    entries["cfc1_w"], entries["cfc1_b"] = params["char_fc1"]
    entries["cfc2_w"], entries["cfc2_b"] = params["char_fc2"]

    w, wh, b = params["ms_lstm"]
    entries["ms_wih"], entries["ms_whh"], entries["ms_b"] = (
        _permute_gates(w), _permute_gates(wh), _permute_gates(b))
    entries["mscfc_w"], entries["mscfc_b"] = params["ms_char_fc"]
    entries["msfc1_w"], entries["msfc1_b"] = params["ms_fc1"]
    entries["msfc2_w"], entries["msfc2_b"] = params["ms_fc2"]

    entries["prfc1_w"], entries["prfc1_b"] = params["pr_fc1"]
    entries["prfc2_w"], entries["prfc2_b"] = params["pr_fc2"]
    w, wh, b = params["pr_lstm"]
    entries["pr_wih"], entries["pr_whh"], entries["pr_b"] = (
        _permute_gates(w), _permute_gates(wh), _permute_gates(b))
    entries["prfc3_w"], entries["prfc3_b"] = params["pr_fc3"]        # 5 output cols,
    # zero-padded to 128 lanes by the slab's zero fill.

    slab = jnp.zeros((_SLAB_ROWS, _SLAB_COLS), jnp.float32)
    for name, arr in entries.items():
        r, _, _ = _LAYOUT[name]
        slab = slab.at[r:r + arr.shape[0], :arr.shape[1]].set(arr.astype(jnp.float32))
    return slab


def tomnet_forward(params, past, recent, state):
    """past: [batch, num_trajs, Tp, D], recent: [batch, Tr, D], state: [batch, S]."""
    batch, num_trajs, tp, d = past.shape
    tr = recent.shape[1]
    bn = batch * num_trajs
    bn_pad = _round_up8(bn)
    b_pad = _round_up8(batch)

    # time-major + pad batch-like dims to 8 sublanes, then flatten time into rows
    past_tm = past.reshape(bn, tp, d).transpose(1, 0, 2)             # [Tp, BN, D]
    past_tm = jnp.pad(past_tm, ((0, 0), (0, bn_pad - bn), (0, 0)))
    past_flat = past_tm.reshape(tp * bn_pad, d)

    recent_tm = recent.transpose(1, 0, 2)                            # [Tr, B, D]
    recent_tm = jnp.pad(recent_tm, ((0, 0), (0, b_pad - batch), (0, 0)))
    recent_flat = recent_tm.reshape(tr * b_pad, d)

    state_pad = jnp.pad(state, ((0, b_pad - batch), (0, 0)))
    meanmat = _mean_selector(batch, num_trajs, b_pad, bn_pad)
    slab = pack_weight_slab(params)

    kernel = functools.partial(_tomnet_kernel, tp=tp, tr=tr,
                               bn_pad=bn_pad, b_pad=b_pad)
    out = pl.pallas_call(
        kernel,
        out_shape=jax.ShapeDtypeStruct((PRED_SEQ_LEN * b_pad, OUT_PAD),
                                       jnp.float32),
        in_specs=[VMEM_SPEC] * 5,
        out_specs=VMEM_SPEC,
        compiler_params=pltpu.CompilerParams(vmem_limit_bytes=32 * 1024 * 1024),
    )(meanmat, past_flat, recent_flat, state_pad, slab)

    out = out.reshape(PRED_SEQ_LEN, b_pad, OUT_PAD)
    return out[:, :batch, :OUTPUT_DIM].transpose(1, 0, 2)            # [B, T, OUT]


# ---------------- parameter init (deterministic, synthetic) ------------------
def _uniform(key, shape, scale):
    return jax.random.uniform(key, shape, jnp.float32, -scale, scale)


def init_linear(key, fan_in, fan_out):
    kw, kb = jax.random.split(key)
    s = 1.0 / math.sqrt(fan_in)
    return _uniform(kw, (fan_in, fan_out), s), _uniform(kb, (1, fan_out), s)


def init_lstm(key, in_dim, hidden):
    k1, k2, k3 = jax.random.split(key, 3)
    s = 1.0 / math.sqrt(hidden)
    w_ih = _uniform(k1, (in_dim, 4 * hidden), s)    # pre-transposed weight_ih
    w_hh = _uniform(k2, (hidden, 4 * hidden), s)    # pre-transposed weight_hh
    b = _uniform(k3, (1, 4 * hidden), s)            # combined b_ih + b_hh
    return w_ih, w_hh, b


def init_params(key):
    keys = jax.random.split(key, 12)
    p = {}
    # CharacterNetwork: 2-layer LSTM + fc1 + fc2
    p["char_lstm_l0"] = init_lstm(keys[0], INPUT_DIM, HIDDEN_DIM)
    p["char_lstm_l1"] = init_lstm(keys[1], HIDDEN_DIM, HIDDEN_DIM)
    p["char_fc1"] = init_linear(keys[2], HIDDEN_DIM, HIDDEN_DIM)
    p["char_fc2"] = init_linear(keys[3], HIDDEN_DIM, CHAR_DIM)
    # MentalStateNetwork: LSTM + char_fc + fc1 (combined [2H,H]) + fc2
    p["ms_lstm"] = init_lstm(keys[4], INPUT_DIM, HIDDEN_DIM)
    p["ms_char_fc"] = init_linear(keys[5], CHAR_DIM, HIDDEN_DIM)
    p["ms_fc1"] = init_linear(keys[6], 2 * HIDDEN_DIM, HIDDEN_DIM)
    p["ms_fc2"] = init_linear(keys[7], HIDDEN_DIM, MENTAL_DIM)
    # TODO(synk): MentalStateNetwork.attention is defined in __init__ but never
    # used in the PyTorch forward, so it is intentionally omitted here.
    # PredictionNetwork: fc1 (combined [CHAR+MENTAL+STATE, H]) + fc2 + LSTM + fc3
    p["pr_fc1"] = init_linear(keys[8], CHAR_DIM + MENTAL_DIM + STATE_DIM, HIDDEN_DIM)
    p["pr_fc2"] = init_linear(keys[9], HIDDEN_DIM, HIDDEN_DIM)
    p["pr_lstm"] = init_lstm(keys[10], HIDDEN_DIM, HIDDEN_DIM)
    p["pr_fc3"] = init_linear(keys[11], HIDDEN_DIM, OUTPUT_DIM)
    return p


# ---------------- pure-JAX reference for correctness check -------------------
def _ref_lstm(x_tbd, w_ih, w_hh, b):
    H = w_hh.shape[0]
    B = x_tbd.shape[1]

    def step(carry, x_t):
        h, c = carry
        g = x_t @ w_ih + h @ w_hh + b
        i = jax.nn.sigmoid(g[:, :H])
        f = jax.nn.sigmoid(g[:, H:2 * H])
        gg = jnp.tanh(g[:, 2 * H:3 * H])
        o = jax.nn.sigmoid(g[:, 3 * H:])
        c = f * c + i * gg
        h = o * jnp.tanh(c)
        return (h, c), h

    init = (jnp.zeros((B, H), jnp.float32), jnp.zeros((B, H), jnp.float32))
    _, hs = jax.lax.scan(step, init, x_tbd)
    return hs


def ref_forward(params, past, recent, state):
    batch, num_trajs, tp, d = past.shape
    x = past.reshape(batch * num_trajs, tp, d).transpose(1, 0, 2)
    h1 = _ref_lstm(x, *params["char_lstm_l0"])
    h2 = _ref_lstm(h1, *params["char_lstm_l1"])
    h_last = h2[-1].reshape(batch, num_trajs, HIDDEN_DIM)
    emb = jnp.mean(h_last, axis=1)
    w1, b1 = params["char_fc1"]
    w2, b2 = params["char_fc2"]
    character = jnp.maximum(emb @ w1 + b1, 0.0) @ w2 + b2
    xr = recent.transpose(1, 0, 2)
    traj = _ref_lstm(xr, *params["ms_lstm"])[-1]
    wc, bc = params["ms_char_fc"]
    char_feat = jnp.maximum(character @ wc + bc, 0.0)
    wm1, bm1 = params["ms_fc1"]
    wm2, bm2 = params["ms_fc2"]
    combined = jnp.concatenate([traj, char_feat], axis=1)
    mental = jnp.maximum(combined @ wm1 + bm1, 0.0) @ wm2 + bm2
    wp1, bp1 = params["pr_fc1"]
    wp2, bp2 = params["pr_fc2"]
    comb2 = jnp.concatenate([character, mental, state], axis=1)
    y = jnp.maximum(comb2 @ wp1 + bp1, 0.0)
    fused = jnp.maximum(y @ wp2 + bp2, 0.0)
    seq = jnp.broadcast_to(fused[None], (PRED_SEQ_LEN, batch, HIDDEN_DIM))
    hp = _ref_lstm(seq, *params["pr_lstm"])
    w3, b3 = params["pr_fc3"]
    preds = hp @ w3 + b3
    return preds.transpose(1, 0, 2)


if __name__ == "__main__":
    key = jax.random.PRNGKey(0)
    kp, k1, k2, k3 = jax.random.split(key, 4)
    params = init_params(kp)

    batch, num_trajs, past_len, recent_len = 2, 3, 8, 6
    past = jax.random.normal(k1, (batch, num_trajs, past_len, INPUT_DIM), jnp.float32)
    recent = jax.random.normal(k2, (batch, recent_len, INPUT_DIM), jnp.float32)
    state = jax.random.normal(k3, (batch, STATE_DIM), jnp.float32)

    fwd = jax.jit(tomnet_forward)
    out = jax.block_until_ready(fwd(params, past, recent, state))
    ref = jax.block_until_ready(ref_forward(params, past, recent, state))

    assert out.shape == (batch, PRED_SEQ_LEN, OUTPUT_DIM), out.shape
    assert bool(jnp.allclose(out, ref, atol=5e-3, rtol=5e-3))
    print("KERNEL_OK")
</pallas_src>

<mosaic_0001>
module attributes {stable_mosaic.version = 11 : i64} {
  func.func @_tomnet_kernel(%arg0: memref<8x8xf32, #tpu.memory_space<vmem>>, %arg1: memref<64x8xf32, #tpu.memory_space<vmem>>, %arg2: memref<48x8xf32, #tpu.memory_space<vmem>>, %arg3: memref<8x16xf32, #tpu.memory_space<vmem>>, %arg4: memref<1056x256xf32, #tpu.memory_space<vmem>>, %arg5: memref<40x128xf32, #tpu.memory_space<vmem>>) attributes {dimension_semantics = [], scalar_prefetch = 0 : i64, scratch_operands = 0 : i64, tpu.core_type = #tpu.core_type<tc>} {
    %c0 = arith.constant 0 : index
    %c0_0 = arith.constant 0 : index
    %0 = vector.load %arg1[%c0, %c0_0] : memref<64x8xf32, #tpu.memory_space<vmem>>, vector<64x8xf32>
    %c0_1 = arith.constant 0 : index
    %c0_2 = arith.constant 0 : index
    %1 = vector.load %arg4[%c0_1, %c0_2] : memref<1056x256xf32, #tpu.memory_space<vmem>>, vector<8x256xf32>
    %cst = arith.constant dense<0.000000e+00> : vector<64x256xf32>
    %2 = tpu.matmul %0, %1, %cst {dimension_numbers = #tpu.dot_dimension_numbers<[1], [0], [0], [1], [0, 0, 1, 1], [], []>} : vector<64x8xf32>, vector<8x256xf32>, vector<64x256xf32> -> vector<64x256xf32>
    %c72 = arith.constant 72 : index
    %c0_3 = arith.constant 0 : index
    %3 = vector.load %arg4[%c72, %c0_3] : memref<1056x256xf32, #tpu.memory_space<vmem>>, vector<1x256xf32>
    %4 = vector.broadcast %3 : vector<1x256xf32> to vector<64x256xf32>
    %5 = arith.addf %2, %4 : vector<64x256xf32>
    %c8 = arith.constant 8 : index
    %c0_4 = arith.constant 0 : index
    %6 = vector.load %arg4[%c8, %c0_4] : memref<1056x256xf32, #tpu.memory_space<vmem>>, vector<64x256xf32>
    %c80 = arith.constant 80 : index
    %c0_5 = arith.constant 0 : index
    %7 = vector.load %arg4[%c80, %c0_5] : memref<1056x256xf32, #tpu.memory_space<vmem>>, vector<128x256xf32>
    %c208 = arith.constant 208 : index
    %c0_6 = arith.constant 0 : index
    %8 = vector.load %arg4[%c208, %c0_6] : memref<1056x256xf32, #tpu.memory_space<vmem>>, vector<1x256xf32>
    %9 = vector.shape_cast %8 : vector<1x256xf32> to vector<1x256xf32>
    %10 = vector.broadcast %9 : vector<1x256xf32> to vector<8x256xf32>
    %cst_7 = arith.constant 0.000000e+00 : f32
    %11 = vector.broadcast %cst_7 : f32 to vector<8x64xf32>
    %cst_8 = arith.constant 0.000000e+00 : f32
    %12 = vector.broadcast %cst_8 : f32 to vector<8x64xf32>
    %cst_9 = arith.constant 0.000000e+00 : f32
    %13 = vector.broadcast %cst_9 : f32 to vector<8x64xf32>
    %cst_10 = arith.constant 0.000000e+00 : f32
    %14 = vector.broadcast %cst_10 : f32 to vector<8x64xf32>
    %15 = vector.extract_strided_slice %5 {offsets = [0, 0], sizes = [8, 256], strides = [1, 1]} : vector<64x256xf32> to vector<8x256xf32>
    %cst_11 = arith.constant dense<0.000000e+00> : vector<8x256xf32>
    %16 = tpu.matmul %11, %6, %cst_11 {dimension_numbers = #tpu.dot_dimension_numbers<[1], [0], [0], [1], [0, 0, 1, 1], [], []>} : vector<8x64xf32>, vector<64x256xf32>, vector<8x256xf32> -> vector<8x256xf32>
    %17 = arith.addf %15, %16 : vector<8x256xf32>
    %18 = vector.extract_strided_slice %17 {offsets = [0, 0], sizes = [8, 192], strides = [1, 1]} : vector<8x256xf32> to vector<8x192xf32>
    %19 = arith.negf %18 : vector<8x192xf32>
    %20 = math.exp %19 : vector<8x192xf32>
    %cst_12 = arith.constant 1.000000e+00 : f32
    %21 = vector.broadcast %cst_12 : f32 to vector<8x192xf32>
    %22 = arith.addf %21, %20 : vector<8x192xf32>
    %23 = arith.divf %21, %22 : vector<8x192xf32>
    %24 = vector.extract_strided_slice %17 {offsets = [0, 192], sizes = [8, 64], strides = [1, 1]} : vector<8x256xf32> to vector<8x64xf32>
    %25 = math.tanh %24 : vector<8x64xf32>
    %26 = vector.extract_strided_slice %23 {offsets = [0, 64], sizes = [8, 64], strides = [1, 1]} : vector<8x192xf32> to vector<8x64xf32>
    %27 = arith.mulf %26, %12 : vector<8x64xf32>
    %28 = vector.extract_strided_slice %23 {offsets = [0, 0], sizes = [8, 64], strides = [1, 1]} : vector<8x192xf32> to vector<8x64xf32>
    %29 = arith.mulf %28, %25 : vector<8x64xf32>
    %30 = arith.addf %27, %29 : vector<8x64xf32>
    %31 = vector.extract_strided_slice %23 {offsets = [0, 128], sizes = [8, 64], strides = [1, 1]} : vector<8x192xf32> to vector<8x64xf32>
    %32 = math.tanh %30 : vector<8x64xf32>
    %33 = arith.mulf %31, %32 : vector<8x64xf32>
    %34 = tpu.concatenate %33, %13 in 1 : vector<8x64xf32>, vector<8x64xf32> -> vector<8x128xf32>
    %cst_13 = arith.constant dense<0.000000e+00> : vector<8x256xf32>
    %35 = tpu.matmul %34, %7, %cst_13 {dimension_numbers = #tpu.dot_dimension_numbers<[1], [0], [0], [1], [0, 0, 1, 1], [], []>} : vector<8x128xf32>, vector<128x256xf32>, vector<8x256xf32> -> vector<8x256xf32>
    %36 = arith.addf %35, %10 : vector<8x256xf32>
    %37 = vector.extract_strided_slice %36 {offsets = [0, 0], sizes = [8, 192], strides = [1, 1]} : vector<8x256xf32> to vector<8x192xf32>
    %38 = arith.negf %37 : vector<8x192xf32>
    %39 = math.exp %38 : vector<8x192xf32>
    %cst_14 = arith.constant 1.000000e+00 : f32
    %40 = vector.broadcast %cst_14 : f32 to vector<8x192xf32>
    %41 = arith.addf %40, %39 : vector<8x192xf32>
    %42 = arith.divf %40, %41 : vector<8x192xf32>
    %43 = vector.extract_strided_slice %36 {offsets = [0, 192], sizes = [8, 64], strides = [1, 1]} : vector<8x256xf32> to vector<8x64xf32>
    %44 = math.tanh %43 : vector<8x64xf32>
    %45 = vector.extract_strided_slice %42 {offsets = [0, 64], sizes = [8, 64], strides = [1, 1]} : vector<8x192xf32> to vector<8x64xf32>
    %46 = arith.mulf %45, %14 : vector<8x64xf32>
    %47 = vector.extract_strided_slice %42 {offsets = [0, 0], sizes = [8, 64], strides = [1, 1]} : vector<8x192xf32> to vector<8x64xf32>
    %48 = arith.mulf %47, %44 : vector<8x64xf32>
    %49 = arith.addf %46, %48 : vector<8x64xf32>
    %50 = vector.extract_strided_slice %42 {offsets = [0, 128], sizes = [8, 64], strides = [1, 1]} : vector<8x192xf32> to vector<8x64xf32>
    %51 = math.tanh %49 : vector<8x64xf32>
    %52 = arith.mulf %50, %51 : vector<8x64xf32>
    %53 = vector.extract_strided_slice %5 {offsets = [8, 0], sizes = [8, 256], strides = [1, 1]} : vector<64x256xf32> to vector<8x256xf32>
    %cst_15 = arith.constant dense<0.000000e+00> : vector<8x256xf32>
    %54 = tpu.matmul %33, %6, %cst_15 {dimension_numbers = #tpu.dot_dimension_numbers<[1], [0], [0], [1], [0, 0, 1, 1], [], []>} : vector<8x64xf32>, vector<64x256xf32>, vector<8x256xf32> -> vector<8x256xf32>
    %55 = arith.addf %53, %54 : vector<8x256xf32>
    %56 = vector.extract_strided_slice %55 {offsets = [0, 0], sizes = [8, 192], strides = [1, 1]} : vector<8x256xf32> to vector<8x192xf32>
    %57 = arith.negf %56 : vector<8x192xf32>
    %58 = math.exp %57 : vector<8x192xf32>
    %cst_16 = arith.constant 1.000000e+00 : f32
    %59 = vector.broadcast %cst_16 : f32 to vector<8x192xf32>
    %60 = arith.addf %59, %58 : vector<8x192xf32>
    %61 = arith.divf %59, %60 : vector<8x192xf32>
    %62 = vector.extract_strided_slice %55 {offsets = [0, 192], sizes = [8, 64], strides = [1, 1]} : vector<8x256xf32> to vector<8x64xf32>
    %63 = math.tanh %62 : vector<8x64xf32>
    %64 = vector.extract_strided_slice %61 {offsets = [0, 64], sizes = [8, 64], strides = [1, 1]} : vector<8x192xf32> to vector<8x64xf32>
    %65 = arith.mulf %64, %30 : vector<8x64xf32>
    %66 = vector.extract_strided_slice %61 {offsets = [0, 0], sizes = [8, 64], strides = [1, 1]} : vector<8x192xf32> to vector<8x64xf32>
    %67 = arith.mulf %66, %63 : vector<8x64xf32>
    %68 = arith.addf %65, %67 : vector<8x64xf32>
    %69 = vector.extract_strided_slice %61 {offsets = [0, 128], sizes = [8, 64], strides = [1, 1]} : vector<8x192xf32> to vector<8x64xf32>
    %70 = math.tanh %68 : vector<8x64xf32>
    %71 = arith.mulf %69, %70 : vector<8x64xf32>
    %72 = tpu.concatenate %71, %52 in 1 : vector<8x64xf32>, vector<8x64xf32> -> vector<8x128xf32>
    %cst_17 = arith.constant dense<0.000000e+00> : vector<8x256xf32>
    %73 = tpu.matmul %72, %7, %cst_17 {dimension_numbers = #tpu.dot_dimension_numbers<[1], [0], [0], [1], [0, 0, 1, 1], [], []>} : vector<8x128xf32>, vector<128x256xf32>, vector<8x256xf32> -> vector<8x256xf32>
    %74 = arith.addf %73, %10 : vector<8x256xf32>
    %75 = vector.extract_strided_slice %74 {offsets = [0, 0], sizes = [8, 192], strides = [1, 1]} : vector<8x256xf32> to vector<8x192xf32>
    %76 = arith.negf %75 : vector<8x192xf32>
    %77 = math.exp %76 : vector<8x192xf32>
    %cst_18 = arith.constant 1.000000e+00 : f32
    %78 = vector.broadcast %cst_18 : f32 to vector<8x192xf32>
    %79 = arith.addf %78, %77 : vector<8x192xf32>
    %80 = arith.divf %78, %79 : vector<8x192xf32>
    %81 = vector.extract_strided_slice %74 {offsets = [0, 192], sizes = [8, 64], strides = [1, 1]} : vector<8x256xf32> to vector<8x64xf32>
    %82 = math.tanh %81 : vector<8x64xf32>
    %83 = vector.extract_strided_slice %80 {offsets = [0, 64], sizes = [8, 64], strides = [1, 1]} : vector<8x192xf32> to vector<8x64xf32>
    %84 = arith.mulf %83, %49 : vector<8x64xf32>
    %85 = vector.extract_strided_slice %80 {offsets = [0, 0], sizes = [8, 64], strides = [1, 1]} : vector<8x192xf32> to vector<8x64xf32>
    %86 = arith.mulf %85, %82 : vector<8x64xf32>
    %87 = arith.addf %84, %86 : vector<8x64xf32>
    %88 = vector.extract_strided_slice %80 {offsets = [0, 128], sizes = [8, 64], strides = [1, 1]} : vector<8x192xf32> to vector<8x64xf32>
    %89 = math.tanh %87 : vector<8x64xf32>
    %90 = arith.mulf %88, %89 : vector<8x64xf32>
    %91 = vector.extract_strided_slice %5 {offsets = [16, 0], sizes = [8, 256], strides = [1, 1]} : vector<64x256xf32> to vector<8x256xf32>
    %cst_19 = arith.constant dense<0.000000e+00> : vector<8x256xf32>
    %92 = tpu.matmul %71, %6, %cst_19 {dimension_numbers = #tpu.dot_dimension_numbers<[1], [0], [0], [1], [0, 0, 1, 1], [], []>} : vector<8x64xf32>, vector<64x256xf32>, vector<8x256xf32> -> vector<8x256xf32>
    %93 = arith.addf %91, %92 : vector<8x256xf32>
    %94 = vector.extract_strided_slice %93 {offsets = [0, 0], sizes = [8, 192], strides = [1, 1]} : vector<8x256xf32> to vector<8x192xf32>
    %95 = arith.negf %94 : vector<8x192xf32>
    %96 = math.exp %95 : vector<8x192xf32>
    %cst_20 = arith.constant 1.000000e+00 : f32
    %97 = vector.broadcast %cst_20 : f32 to vector<8x192xf32>
    %98 = arith.addf %97, %96 : vector<8x192xf32>
    %99 = arith.divf %97, %98 : vector<8x192xf32>
    %100 = vector.extract_strided_slice %93 {offsets = [0, 192], sizes = [8, 64], strides = [1, 1]} : vector<8x256xf32> to vector<8x64xf32>
    %101 = math.tanh %100 : vector<8x64xf32>
    %102 = vector.extract_strided_slice %99 {offsets = [0, 64], sizes = [8, 64], strides = [1, 1]} : vector<8x192xf32> to vector<8x64xf32>
    %103 = arith.mulf %102, %68 : vector<8x64xf32>
    %104 = vector.extract_strided_slice %99 {offsets = [0, 0], sizes = [8, 64], strides = [1, 1]} : vector<8x192xf32> to vector<8x64xf32>
    %105 = arith.mulf %104, %101 : vector<8x64xf32>
    %106 = arith.addf %103, %105 : vector<8x64xf32>
    %107 = vector.extract_strided_slice %99 {offsets = [0, 128], sizes = [8, 64], strides = [1, 1]} : vector<8x192xf32> to vector<8x64xf32>
    %108 = math.tanh %106 : vector<8x64xf32>
    %109 = arith.mulf %107, %108 : vector<8x64xf32>
    %110 = tpu.concatenate %109, %90 in 1 : vector<8x64xf32>, vector<8x64xf32> -> vector<8x128xf32>
    %cst_21 = arith.constant dense<0.000000e+00> : vector<8x256xf32>
    %111 = tpu.matmul %110, %7, %cst_21 {dimension_numbers = #tpu.dot_dimension_numbers<[1], [0], [0], [1], [0, 0, 1, 1], [], []>} : vector<8x128xf32>, vector<128x256xf32>, vector<8x256xf32> -> vector<8x256xf32>
    %112 = arith.addf %111, %10 : vector<8x256xf32>
    %113 = vector.extract_strided_slice %112 {offsets = [0, 0], sizes = [8, 192], strides = [1, 1]} : vector<8x256xf32> to vector<8x192xf32>
    %114 = arith.negf %113 : vector<8x192xf32>
    %115 = math.exp %114 : vector<8x192xf32>
    %cst_22 = arith.constant 1.000000e+00 : f32
    %116 = vector.broadcast %cst_22 : f32 to vector<8x192xf32>
    %117 = arith.addf %116, %115 : vector<8x192xf32>
    %118 = arith.divf %116, %117 : vector<8x192xf32>
    %119 = vector.extract_strided_slice %112 {offsets = [0, 192], sizes = [8, 64], strides = [1, 1]} : vector<8x256xf32> to vector<8x64xf32>
    %120 = math.tanh %119 : vector<8x64xf32>
    %121 = vector.extract_strided_slice %118 {offsets = [0, 64], sizes = [8, 64], strides = [1, 1]} : vector<8x192xf32> to vector<8x64xf32>
    %122 = arith.mulf %121, %87 : vector<8x64xf32>
    %123 = vector.extract_strided_slice %118 {offsets = [0, 0], sizes = [8, 64], strides = [1, 1]} : vector<8x192xf32> to vector<8x64xf32>
    %124 = arith.mulf %123, %120 : vector<8x64xf32>
    %125 = arith.addf %122, %124 : vector<8x64xf32>
    %126 = vector.extract_strided_slice %118 {offsets = [0, 128], sizes = [8, 64], strides = [1, 1]} : vector<8x192xf32> to vector<8x64xf32>
    %127 = math.tanh %125 : vector<8x64xf32>
    %128 = arith.mulf %126, %127 : vector<8x64xf32>
    %129 = vector.extract_strided_slice %5 {offsets = [24, 0], sizes = [8, 256], strides = [1, 1]} : vector<64x256xf32> to vector<8x256xf32>
    %cst_23 = arith.constant dense<0.000000e+00> : vector<8x256xf32>
    %130 = tpu.matmul %109, %6, %cst_23 {dimension_numbers = #tpu.dot_dimension_numbers<[1], [0], [0], [1], [0, 0, 1, 1], [], []>} : vector<8x64xf32>, vector<64x256xf32>, vector<8x256xf32> -> vector<8x256xf32>
    %131 = arith.addf %129, %130 : vector<8x256xf32>
    %132 = vector.extract_strided_slice %131 {offsets = [0, 0], sizes = [8, 192], strides = [1, 1]} : vector<8x256xf32> to vector<8x192xf32>
    %133 = arith.negf %132 : vector<8x192xf32>
    %134 = math.exp %133 : vector<8x192xf32>
    %cst_24 = arith.constant 1.000000e+00 : f32
    %135 = vector.broadcast %cst_24 : f32 to vector<8x192xf32>
    %136 = arith.addf %135, %134 : vector<8x192xf32>
    %137 = arith.divf %135, %136 : vector<8x192xf32>
    %138 = vector.extract_strided_slice %131 {offsets = [0, 192], sizes = [8, 64], strides = [1, 1]} : vector<8x256xf32> to vector<8x64xf32>
    %139 = math.tanh %138 : vector<8x64xf32>
    %140 = vector.extract_strided_slice %137 {offsets = [0, 64], sizes = [8, 64], strides = [1, 1]} : vector<8x192xf32> to vector<8x64xf32>
    %141 = arith.mulf %140, %106 : vector<8x64xf32>
    %142 = vector.extract_strided_slice %137 {offsets = [0, 0], sizes = [8, 64], strides = [1, 1]} : vector<8x192xf32> to vector<8x64xf32>
    %143 = arith.mulf %142, %139 : vector<8x64xf32>
    %144 = arith.addf %141, %143 : vector<8x64xf32>
    %145 = vector.extract_strided_slice %137 {offsets = [0, 128], sizes = [8, 64], strides = [1, 1]} : vector<8x192xf32> to vector<8x64xf32>
    %146 = math.tanh %144 : vector<8x64xf32>
    %147 = arith.mulf %145, %146 : vector<8x64xf32>
    %148 = tpu.concatenate %147, %128 in 1 : vector<8x64xf32>, vector<8x64xf32> -> vector<8x128xf32>
    %cst_25 = arith.constant dense<0.000000e+00> : vector<8x256xf32>
    %149 = tpu.matmul %148, %7, %cst_25 {dimension_numbers = #tpu.dot_dimension_numbers<[1], [0], [0], [1], [0, 0, 1, 1], [], []>} : vector<8x128xf32>, vector<128x256xf32>, vector<8x256xf32> -> vector<8x256xf32>
    %150 = arith.addf %149, %10 : vector<8x256xf32>
    %151 = vector.extract_strided_slice %150 {offsets = [0, 0], sizes = [8, 192], strides = [1, 1]} : vector<8x256xf32> to vector<8x192xf32>
    %152 = arith.negf %151 : vector<8x192xf32>
    %153 = math.exp %152 : vector<8x192xf32>
    %cst_26 = arith.constant 1.000000e+00 : f32
    %154 = vector.broadcast %cst_26 : f32 to vector<8x192xf32>
    %155 = arith.addf %154, %153 : vector<8x192xf32>
    %156 = arith.divf %154, %155 : vector<8x192xf32>
    %157 = vector.extract_strided_slice %150 {offsets = [0, 192], sizes = [8, 64], strides = [1, 1]} : vector<8x256xf32> to vector<8x64xf32>
    %158 = math.tanh %157 : vector<8x64xf32>
    %159 = vector.extract_strided_slice %156 {offsets = [0, 64], sizes = [8, 64], strides = [1, 1]} : vector<8x192xf32> to vector<8x64xf32>
    %160 = arith.mulf %159, %125 : vector<8x64xf32>
    %161 = vector.extract_strided_slice %156 {offsets = [0, 0], sizes = [8, 64], strides = [1, 1]} : vector<8x192xf32> to vector<8x64xf32>
    %162 = arith.mulf %161, %158 : vector<8x64xf32>
    %163 = arith.addf %160, %162 : vector<8x64xf32>
    %164 = vector.extract_strided_slice %156 {offsets = [0, 128], sizes = [8, 64], strides = [1, 1]} : vector<8x192xf32> to vector<8x64xf32>
    %165 = math.tanh %163 : vector<8x64xf32>
    %166 = arith.mulf %164, %165 : vector<8x64xf32>
    %167 = vector.extract_strided_slice %5 {offsets = [32, 0], sizes = [8, 256], strides = [1, 1]} : vector<64x256xf32> to vector<8x256xf32>
    %cst_27 = arith.constant dense<0.000000e+00> : vector<8x256xf32>
    %168 = tpu.matmul %147, %6, %cst_27 {dimension_numbers = #tpu.dot_dimension_numbers<[1], [0], [0], [1], [0, 0, 1, 1], [], []>} : vector<8x64xf32>, vector<64x256xf32>, vector<8x256xf32> -> vector<8x256xf32>
    %169 = arith.addf %167, %168 : vector<8x256xf32>
    %170 = vector.extract_strided_slice %169 {offsets = [0, 0], sizes = [8, 192], strides = [1, 1]} : vector<8x256xf32> to vector<8x192xf32>
    %171 = arith.negf %170 : vector<8x192xf32>
    %172 = math.exp %171 : vector<8x192xf32>
    %cst_28 = arith.constant 1.000000e+00 : f32
    %173 = vector.broadcast %cst_28 : f32 to vector<8x192xf32>
    %174 = arith.addf %173, %172 : vector<8x192xf32>
    %175 = arith.divf %173, %174 : vector<8x192xf32>
    %176 = vector.extract_strided_slice %169 {offsets = [0, 192], sizes = [8, 64], strides = [1, 1]} : vector<8x256xf32> to vector<8x64xf32>
    %177 = math.tanh %176 : vector<8x64xf32>
    %178 = vector.extract_strided_slice %175 {offsets = [0, 64], sizes = [8, 64], strides = [1, 1]} : vector<8x192xf32> to vector<8x64xf32>
    %179 = arith.mulf %178, %144 : vector<8x64xf32>
    %180 = vector.extract_strided_slice %175 {offsets = [0, 0], sizes = [8, 64], strides = [1, 1]} : vector<8x192xf32> to vector<8x64xf32>
    %181 = arith.mulf %180, %177 : vector<8x64xf32>
    %182 = arith.addf %179, %181 : vector<8x64xf32>
    %183 = vector.extract_strided_slice %175 {offsets = [0, 128], sizes = [8, 64], strides = [1, 1]} : vector<8x192xf32> to vector<8x64xf32>
    %184 = math.tanh %182 : vector<8x64xf32>
    %185 = arith.mulf %183, %184 : vector<8x64xf32>
    %186 = tpu.concatenate %185, %166 in 1 : vector<8x64xf32>, vector<8x64xf32> -> vector<8x128xf32>
    %cst_29 = arith.constant dense<0.000000e+00> : vector<8x256xf32>
    %187 = tpu.matmul %186, %7, %cst_29 {dimension_numbers = #tpu.dot_dimension_numbers<[1], [0], [0], [1], [0, 0, 1, 1], [], []>} : vector<8x128xf32>, vector<128x256xf32>, vector<8x256xf32> -> vector<8x256xf32>
    %188 = arith.addf %187, %10 : vector<8x256xf32>
    %189 = vector.extract_strided_slice %188 {offsets = [0, 0], sizes = [8, 192], strides = [1, 1]} : vector<8x256xf32> to vector<8x192xf32>
    %190 = arith.negf %189 : vector<8x192xf32>
    %191 = math.exp %190 : vector<8x192xf32>
    %cst_30 = arith.constant 1.000000e+00 : f32
    %192 = vector.broadcast %cst_30 : f32 to vector<8x192xf32>
    %193 = arith.addf %192, %191 : vector<8x192xf32>
    %194 = arith.divf %192, %193 : vector<8x192xf32>
    %195 = vector.extract_strided_slice %188 {offsets = [0, 192], sizes = [8, 64], strides = [1, 1]} : vector<8x256xf32> to vector<8x64xf32>
    %196 = math.tanh %195 : vector<8x64xf32>
    %197 = vector.extract_strided_slice %194 {offsets = [0, 64], sizes = [8, 64], strides = [1, 1]} : vector<8x192xf32> to vector<8x64xf32>
    %198 = arith.mulf %197, %163 : vector<8x64xf32>
    %199 = vector.extract_strided_slice %194 {offsets = [0, 0], sizes = [8, 64], strides = [1, 1]} : vector<8x192xf32> to vector<8x64xf32>
    %200 = arith.mulf %199, %196 : vector<8x64xf32>
    %201 = arith.addf %198, %200 : vector<8x64xf32>
    %202 = vector.extract_strided_slice %194 {offsets = [0, 128], sizes = [8, 64], strides = [1, 1]} : vector<8x192xf32> to vector<8x64xf32>
    %203 = math.tanh %201 : vector<8x64xf32>
    %204 = arith.mulf %202, %203 : vector<8x64xf32>
    %205 = vector.extract_strided_slice %5 {offsets = [40, 0], sizes = [8, 256], strides = [1, 1]} : vector<64x256xf32> to vector<8x256xf32>
    %cst_31 = arith.constant dense<0.000000e+00> : vector<8x256xf32>
    %206 = tpu.matmul %185, %6, %cst_31 {dimension_numbers = #tpu.dot_dimension_numbers<[1], [0], [0], [1], [0, 0, 1, 1], [], []>} : vector<8x64xf32>, vector<64x256xf32>, vector<8x256xf32> -> vector<8x256xf32>
    %207 = arith.addf %205, %206 : vector<8x256xf32>
    %208 = vector.extract_strided_slice %207 {offsets = [0, 0], sizes = [8, 192], strides = [1, 1]} : vector<8x256xf32> to vector<8x192xf32>
    %209 = arith.negf %208 : vector<8x192xf32>
    %210 = math.exp %209 : vector<8x192xf32>
    %cst_32 = arith.constant 1.000000e+00 : f32
    %211 = vector.broadcast %cst_32 : f32 to vector<8x192xf32>
    %212 = arith.addf %211, %210 : vector<8x192xf32>
    %213 = arith.divf %211, %212 : vector<8x192xf32>
    %214 = vector.extract_strided_slice %207 {offsets = [0, 192], sizes = [8, 64], strides = [1, 1]} : vector<8x256xf32> to vector<8x64xf32>
    %215 = math.tanh %214 : vector<8x64xf32>
    %216 = vector.extract_strided_slice %213 {offsets = [0, 64], sizes = [8, 64], strides = [1, 1]} : vector<8x192xf32> to vector<8x64xf32>
    %217 = arith.mulf %216, %182 : vector<8x64xf32>
    %218 = vector.extract_strided_slice %213 {offsets = [0, 0], sizes = [8, 64], strides = [1, 1]} : vector<8x192xf32> to vector<8x64xf32>
    %219 = arith.mulf %218, %215 : vector<8x64xf32>
    %220 = arith.addf %217, %219 : vector<8x64xf32>
    %221 = vector.extract_strided_slice %213 {offsets = [0, 128], sizes = [8, 64], strides = [1, 1]} : vector<8x192xf32> to vector<8x64xf32>
    %222 = math.tanh %220 : vector<8x64xf32>
    %223 = arith.mulf %221, %222 : vector<8x64xf32>
    %224 = tpu.concatenate %223, %204 in 1 : vector<8x64xf32>, vector<8x64xf32> -> vector<8x128xf32>
    %cst_33 = arith.constant dense<0.000000e+00> : vector<8x256xf32>
    %225 = tpu.matmul %224, %7, %cst_33 {dimension_numbers = #tpu.dot_dimension_numbers<[1], [0], [0], [1], [0, 0, 1, 1], [], []>} : vector<8x128xf32>, vector<128x256xf32>, vector<8x256xf32> -> vector<8x256xf32>
    %226 = arith.addf %225, %10 : vector<8x256xf32>
    %227 = vector.extract_strided_slice %226 {offsets = [0, 0], sizes = [8, 192], strides = [1, 1]} : vector<8x256xf32> to vector<8x192xf32>
    %228 = arith.negf %227 : vector<8x192xf32>
    %229 = math.exp %228 : vector<8x192xf32>
    %cst_34 = arith.constant 1.000000e+00 : f32
    %230 = vector.broadcast %cst_34 : f32 to vector<8x192xf32>
    %231 = arith.addf %230, %229 : vector<8x192xf32>
    %232 = arith.divf %230, %231 : vector<8x192xf32>
    %233 = vector.extract_strided_slice %226 {offsets = [0, 192], sizes = [8, 64], strides = [1, 1]} : vector<8x256xf32> to vector<8x64xf32>
    %234 = math.tanh %233 : vector<8x64xf32>
    %235 = vector.extract_strided_slice %232 {offsets = [0, 64], sizes = [8, 64], strides = [1, 1]} : vector<8x192xf32> to vector<8x64xf32>
    %236 = arith.mulf %235, %201 : vector<8x64xf32>
    %237 = vector.extract_strided_slice %232 {offsets = [0, 0], sizes = [8, 64], strides = [1, 1]} : vector<8x192xf32> to vector<8x64xf32>
    %238 = arith.mulf %237, %234 : vector<8x64xf32>
    %239 = arith.addf %236, %238 : vector<8x64xf32>
    %240 = vector.extract_strided_slice %232 {offsets = [0, 128], sizes = [8, 64], strides = [1, 1]} : vector<8x192xf32> to vector<8x64xf32>
    %241 = math.tanh %239 : vector<8x64xf32>
    %242 = arith.mulf %240, %241 : vector<8x64xf32>
    %243 = vector.extract_strided_slice %5 {offsets = [48, 0], sizes = [8, 256], strides = [1, 1]} : vector<64x256xf32> to vector<8x256xf32>
    %cst_35 = arith.constant dense<0.000000e+00> : vector<8x256xf32>
    %244 = tpu.matmul %223, %6, %cst_35 {dimension_numbers = #tpu.dot_dimension_numbers<[1], [0], [0], [1], [0, 0, 1, 1], [], []>} : vector<8x64xf32>, vector<64x256xf32>, vector<8x256xf32> -> vector<8x256xf32>
    %245 = arith.addf %243, %244 : vector<8x256xf32>
    %246 = vector.extract_strided_slice %245 {offsets = [0, 0], sizes = [8, 192], strides = [1, 1]} : vector<8x256xf32> to vector<8x192xf32>
    %247 = arith.negf %246 : vector<8x192xf32>
    %248 = math.exp %247 : vector<8x192xf32>
    %cst_36 = arith.constant 1.000000e+00 : f32
    %249 = vector.broadcast %cst_36 : f32 to vector<8x192xf32>
    %250 = arith.addf %249, %248 : vector<8x192xf32>
    %251 = arith.divf %249, %250 : vector<8x192xf32>
    %252 = vector.extract_strided_slice %245 {offsets = [0, 192], sizes = [8, 64], strides = [1, 1]} : vector<8x256xf32> to vector<8x64xf32>
    %253 = math.tanh %252 : vector<8x64xf32>
    %254 = vector.extract_strided_slice %251 {offsets = [0, 64], sizes = [8, 64], strides = [1, 1]} : vector<8x192xf32> to vector<8x64xf32>
    %255 = arith.mulf %254, %220 : vector<8x64xf32>
    %256 = vector.extract_strided_slice %251 {offsets = [0, 0], sizes = [8, 64], strides = [1, 1]} : vector<8x192xf32> to vector<8x64xf32>
    %257 = arith.mulf %256, %253 : vector<8x64xf32>
    %258 = arith.addf %255, %257 : vector<8x64xf32>
    %259 = vector.extract_strided_slice %251 {offsets = [0, 128], sizes = [8, 64], strides = [1, 1]} : vector<8x192xf32> to vector<8x64xf32>
    %260 = math.tanh %258 : vector<8x64xf32>
    %261 = arith.mulf %259, %260 : vector<8x64xf32>
    %262 = tpu.concatenate %261, %242 in 1 : vector<8x64xf32>, vector<8x64xf32> -> vector<8x128xf32>
    %cst_37 = arith.constant dense<0.000000e+00> : vector<8x256xf32>
    %263 = tpu.matmul %262, %7, %cst_37 {dimension_numbers = #tpu.dot_dimension_numbers<[1], [0], [0], [1], [0, 0, 1, 1], [], []>} : vector<8x128xf32>, vector<128x256xf32>, vector<8x256xf32> -> vector<8x256xf32>
    %264 = arith.addf %263, %10 : vector<8x256xf32>
    %265 = vector.extract_strided_slice %264 {offsets = [0, 0], sizes = [8, 192], strides = [1, 1]} : vector<8x256xf32> to vector<8x192xf32>
    %266 = arith.negf %265 : vector<8x192xf32>
    %267 = math.exp %266 : vector<8x192xf32>
    %cst_38 = arith.constant 1.000000e+00 : f32
    %268 = vector.broadcast %cst_38 : f32 to vector<8x192xf32>
    %269 = arith.addf %268, %267 : vector<8x192xf32>
    %270 = arith.divf %268, %269 : vector<8x192xf32>
    %271 = vector.extract_strided_slice %264 {offsets = [0, 192], sizes = [8, 64], strides = [1, 1]} : vector<8x256xf32> to vector<8x64xf32>
    %272 = math.tanh %271 : vector<8x64xf32>
    %273 = vector.extract_strided_slice %270 {offsets = [0, 64], sizes = [8, 64], strides = [1, 1]} : vector<8x192xf32> to vector<8x64xf32>
    %274 = arith.mulf %273, %239 : vector<8x64xf32>
    %275 = vector.extract_strided_slice %270 {offsets = [0, 0], sizes = [8, 64], strides = [1, 1]} : vector<8x192xf32> to vector<8x64xf32>
    %276 = arith.mulf %275, %272 : vector<8x64xf32>
    %277 = arith.addf %274, %276 : vector<8x64xf32>
    %278 = vector.extract_strided_slice %270 {offsets = [0, 128], sizes = [8, 64], strides = [1, 1]} : vector<8x192xf32> to vector<8x64xf32>
    %279 = math.tanh %277 : vector<8x64xf32>
    %280 = arith.mulf %278, %279 : vector<8x64xf32>
    %281 = vector.extract_strided_slice %5 {offsets = [56, 0], sizes = [8, 256], strides = [1, 1]} : vector<64x256xf32> to vector<8x256xf32>
    %cst_39 = arith.constant dense<0.000000e+00> : vector<8x256xf32>
    %282 = tpu.matmul %261, %6, %cst_39 {dimension_numbers = #tpu.dot_dimension_numbers<[1], [0], [0], [1], [0, 0, 1, 1], [], []>} : vector<8x64xf32>, vector<64x256xf32>, vector<8x256xf32> -> vector<8x256xf32>
    %283 = arith.addf %281, %282 : vector<8x256xf32>
    %284 = vector.extract_strided_slice %283 {offsets = [0, 0], sizes = [8, 192], strides = [1, 1]} : vector<8x256xf32> to vector<8x192xf32>
    %285 = arith.negf %284 : vector<8x192xf32>
    %286 = math.exp %285 : vector<8x192xf32>
    %cst_40 = arith.constant 1.000000e+00 : f32
    %287 = vector.broadcast %cst_40 : f32 to vector<8x192xf32>
    %288 = arith.addf %287, %286 : vector<8x192xf32>
    %289 = arith.divf %287, %288 : vector<8x192xf32>
    %290 = vector.extract_strided_slice %283 {offsets = [0, 192], sizes = [8, 64], strides = [1, 1]} : vector<8x256xf32> to vector<8x64xf32>
    %291 = math.tanh %290 : vector<8x64xf32>
    %292 = vector.extract_strided_slice %289 {offsets = [0, 64], sizes = [8, 64], strides = [1, 1]} : vector<8x192xf32> to vector<8x64xf32>
    %293 = arith.mulf %292, %258 : vector<8x64xf32>
    %294 = vector.extract_strided_slice %289 {offsets = [0, 0], sizes = [8, 64], strides = [1, 1]} : vector<8x192xf32> to vector<8x64xf32>
    %295 = arith.mulf %294, %291 : vector<8x64xf32>
    %296 = arith.addf %293, %295 : vector<8x64xf32>
    %297 = vector.extract_strided_slice %289 {offsets = [0, 128], sizes = [8, 64], strides = [1, 1]} : vector<8x192xf32> to vector<8x64xf32>
    %298 = math.tanh %296 : vector<8x64xf32>
    %299 = arith.mulf %297, %298 : vector<8x64xf32>
    %300 = tpu.concatenate %299, %280 in 1 : vector<8x64xf32>, vector<8x64xf32> -> vector<8x128xf32>
    %cst_41 = arith.constant dense<0.000000e+00> : vector<8x256xf32>
    %301 = tpu.matmul %300, %7, %cst_41 {dimension_numbers = #tpu.dot_dimension_numbers<[1], [0], [0], [1], [0, 0, 1, 1], [], []>} : vector<8x128xf32>, vector<128x256xf32>, vector<8x256xf32> -> vector<8x256xf32>
    %302 = arith.addf %301, %10 : vector<8x256xf32>
    %303 = vector.extract_strided_slice %302 {offsets = [0, 0], sizes = [8, 192], strides = [1, 1]} : vector<8x256xf32> to vector<8x192xf32>
    %304 = arith.negf %303 : vector<8x192xf32>
    %305 = math.exp %304 : vector<8x192xf32>
    %cst_42 = arith.constant 1.000000e+00 : f32
    %306 = vector.broadcast %cst_42 : f32 to vector<8x192xf32>
    %307 = arith.addf %306, %305 : vector<8x192xf32>
    %308 = arith.divf %306, %307 : vector<8x192xf32>
    %309 = vector.extract_strided_slice %302 {offsets = [0, 192], sizes = [8, 64], strides = [1, 1]} : vector<8x256xf32> to vector<8x64xf32>
    %310 = math.tanh %309 : vector<8x64xf32>
    %311 = vector.extract_strided_slice %308 {offsets = [0, 64], sizes = [8, 64], strides = [1, 1]} : vector<8x192xf32> to vector<8x64xf32>
    %312 = arith.mulf %311, %277 : vector<8x64xf32>
    %313 = vector.extract_strided_slice %308 {offsets = [0, 0], sizes = [8, 64], strides = [1, 1]} : vector<8x192xf32> to vector<8x64xf32>
    %314 = arith.mulf %313, %310 : vector<8x64xf32>
    %315 = arith.addf %312, %314 : vector<8x64xf32>
    %316 = vector.extract_strided_slice %308 {offsets = [0, 128], sizes = [8, 64], strides = [1, 1]} : vector<8x192xf32> to vector<8x64xf32>
    %317 = math.tanh %315 : vector<8x64xf32>
    %318 = arith.mulf %316, %317 : vector<8x64xf32>
    %c0_43 = arith.constant 0 : index
    %c0_44 = arith.constant 0 : index
    %319 = vector.load %arg0[%c0_43, %c0_44] : memref<8x8xf32, #tpu.memory_space<vmem>>, vector<8x8xf32>
    %cst_45 = arith.constant dense<0.000000e+00> : vector<8x64xf32>
    %320 = tpu.matmul %319, %318, %cst_45 {dimension_numbers = #tpu.dot_dimension_numbers<[1], [0], [0], [1], [0, 0, 1, 1], [], []>} : vector<8x8xf32>, vector<8x64xf32>, vector<8x64xf32> -> vector<8x64xf32>
    %c216 = arith.constant 216 : index
    %c0_46 = arith.constant 0 : index
    %321 = vector.load %arg4[%c216, %c0_46] : memref<1056x256xf32, #tpu.memory_space<vmem>>, vector<64x64xf32>
    %cst_47 = arith.constant dense<0.000000e+00> : vector<8x64xf32>
    %322 = tpu.matmul %320, %321, %cst_47 {dimension_numbers = #tpu.dot_dimension_numbers<[1], [0], [0], [1], [0, 0, 1, 1], [], []>} : vector<8x64xf32>, vector<64x64xf32>, vector<8x64xf32> -> vector<8x64xf32>
    %c280 = arith.constant 280 : index
    %c0_48 = arith.constant 0 : index
    %323 = vector.load %arg4[%c280, %c0_48] : memref<1056x256xf32, #tpu.memory_space<vmem>>, vector<1x64xf32>
    %324 = vector.broadcast %323 : vector<1x64xf32> to vector<8x64xf32>
    %325 = arith.addf %322, %324 : vector<8x64xf32>
    %cst_49 = arith.constant 0.000000e+00 : f32
    %326 = vector.broadcast %cst_49 : f32 to vector<8x64xf32>
    %327 = arith.maximumf %325, %326 : vector<8x64xf32>
    %c288 = arith.constant 288 : index
    %c0_50 = arith.constant 0 : index
    %328 = vector.load %arg4[%c288, %c0_50] : memref<1056x256xf32, #tpu.memory_space<vmem>>, vector<64x32xf32>
    %cst_51 = arith.constant dense<0.000000e+00> : vector<8x32xf32>
    %329 = tpu.matmul %327, %328, %cst_51 {dimension_numbers = #tpu.dot_dimension_numbers<[1], [0], [0], [1], [0, 0, 1, 1], [], []>} : vector<8x64xf32>, vector<64x32xf32>, vector<8x32xf32> -> vector<8x32xf32>
    %c352 = arith.constant 352 : index
    %c0_52 = arith.constant 0 : index
    %330 = vector.load %arg4[%c352, %c0_52] : memref<1056x256xf32, #tpu.memory_space<vmem>>, vector<1x32xf32>
    %331 = vector.broadcast %330 : vector<1x32xf32> to vector<8x32xf32>
    %332 = arith.addf %329, %331 : vector<8x32xf32>
    %c0_53 = arith.constant 0 : index
    %c0_54 = arith.constant 0 : index
    %333 = vector.load %arg2[%c0_53, %c0_54] : memref<48x8xf32, #tpu.memory_space<vmem>>, vector<48x8xf32>
    %c360 = arith.constant 360 : index
    %c0_55 = arith.constant 0 : index
    %334 = vector.load %arg4[%c360, %c0_55] : memref<1056x256xf32, #tpu.memory_space<vmem>>, vector<8x256xf32>
    %cst_56 = arith.constant dense<0.000000e+00> : vector<48x256xf32>
    %335 = tpu.matmul %333, %334, %cst_56 {dimension_numbers = #tpu.dot_dimension_numbers<[1], [0], [0], [1], [0, 0, 1, 1], [], []>} : vector<48x8xf32>, vector<8x256xf32>, vector<48x256xf32> -> vector<48x256xf32>
    %c432 = arith.constant 432 : index
    %c0_57 = arith.constant 0 : index
    %336 = vector.load %arg4[%c432, %c0_57] : memref<1056x256xf32, #tpu.memory_space<vmem>>, vector<1x256xf32>
    %337 = vector.broadcast %336 : vector<1x256xf32> to vector<48x256xf32>
    %338 = arith.addf %335, %337 : vector<48x256xf32>
    %c368 = arith.constant 368 : index
    %c0_58 = arith.constant 0 : index
    %339 = vector.load %arg4[%c368, %c0_58] : memref<1056x256xf32, #tpu.memory_space<vmem>>, vector<64x256xf32>
    %cst_59 = arith.constant 0.000000e+00 : f32
    %340 = vector.broadcast %cst_59 : f32 to vector<8x64xf32>
    %cst_60 = arith.constant 0.000000e+00 : f32
    %341 = vector.broadcast %cst_60 : f32 to vector<8x64xf32>
    %342 = vector.extract_strided_slice %338 {offsets = [0, 0], sizes = [8, 256], strides = [1, 1]} : vector<48x256xf32> to vector<8x256xf32>
    %cst_61 = arith.constant dense<0.000000e+00> : vector<8x256xf32>
    %343 = tpu.matmul %340, %339, %cst_61 {dimension_numbers = #tpu.dot_dimension_numbers<[1], [0], [0], [1], [0, 0, 1, 1], [], []>} : vector<8x64xf32>, vector<64x256xf32>, vector<8x256xf32> -> vector<8x256xf32>
    %344 = arith.addf %342, %343 : vector<8x256xf32>
    %345 = vector.extract_strided_slice %344 {offsets = [0, 0], sizes = [8, 192], strides = [1, 1]} : vector<8x256xf32> to vector<8x192xf32>
    %346 = arith.negf %345 : vector<8x192xf32>
    %347 = math.exp %346 : vector<8x192xf32>
    %cst_62 = arith.constant 1.000000e+00 : f32
    %348 = vector.broadcast %cst_62 : f32 to vector<8x192xf32>
    %349 = arith.addf %348, %347 : vector<8x192xf32>
    %350 = arith.divf %348, %349 : vector<8x192xf32>
    %351 = vector.extract_strided_slice %344 {offsets = [0, 192], sizes = [8, 64], strides = [1, 1]} : vector<8x256xf32> to vector<8x64xf32>
    %352 = math.tanh %351 : vector<8x64xf32>
    %353 = vector.extract_strided_slice %350 {offsets = [0, 64], sizes = [8, 64], strides = [1, 1]} : vector<8x192xf32> to vector<8x64xf32>
    %354 = arith.mulf %353, %341 : vector<8x64xf32>
    %355 = vector.extract_strided_slice %350 {offsets = [0, 0], sizes = [8, 64], strides = [1, 1]} : vector<8x192xf32> to vector<8x64xf32>
    %356 = arith.mulf %355, %352 : vector<8x64xf32>
    %357 = arith.addf %354, %356 : vector<8x64xf32>
    %358 = vector.extract_strided_slice %350 {offsets = [0, 128], sizes = [8, 64], strides = [1, 1]} : vector<8x192xf32> to vector<8x64xf32>
    %359 = math.tanh %357 : vector<8x64xf32>
    %360 = arith.mulf %358, %359 : vector<8x64xf32>
    %361 = vector.extract_strided_slice %338 {offsets = [8, 0], sizes = [8, 256], strides = [1, 1]} : vector<48x256xf32> to vector<8x256xf32>
    %cst_63 = arith.constant dense<0.000000e+00> : vector<8x256xf32>
    %362 = tpu.matmul %360, %339, %cst_63 {dimension_numbers = #tpu.dot_dimension_numbers<[1], [0], [0], [1], [0, 0, 1, 1], [], []>} : vector<8x64xf32>, vector<64x256xf32>, vector<8x256xf32> -> vector<8x256xf32>
    %363 = arith.addf %361, %362 : vector<8x256xf32>
    %364 = vector.extract_strided_slice %363 {offsets = [0, 0], sizes = [8, 192], strides = [1, 1]} : vector<8x256xf32> to vector<8x192xf32>
    %365 = arith.negf %364 : vector<8x192xf32>
    %366 = math.exp %365 : vector<8x192xf32>
    %cst_64 = arith.constant 1.000000e+00 : f32
    %367 = vector.broadcast %cst_64 : f32 to vector<8x192xf32>
    %368 = arith.addf %367, %366 : vector<8x192xf32>
    %369 = arith.divf %367, %368 : vector<8x192xf32>
    %370 = vector.extract_strided_slice %363 {offsets = [0, 192], sizes = [8, 64], strides = [1, 1]} : vector<8x256xf32> to vector<8x64xf32>
    %371 = math.tanh %370 : vector<8x64xf32>
    %372 = vector.extract_strided_slice %369 {offsets = [0, 64], sizes = [8, 64], strides = [1, 1]} : vector<8x192xf32> to vector<8x64xf32>
    %373 = arith.mulf %372, %357 : vector<8x64xf32>
    %374 = vector.extract_strided_slice %369 {offsets = [0, 0], sizes = [8, 64], strides = [1, 1]} : vector<8x192xf32> to vector<8x64xf32>
    %375 = arith.mulf %374, %371 : vector<8x64xf32>
    %376 = arith.addf %373, %375 : vector<8x64xf32>
    %377 = vector.extract_strided_slice %369 {offsets = [0, 128], sizes = [8, 64], strides = [1, 1]} : vector<8x192xf32> to vector<8x64xf32>
    %378 = math.tanh %376 : vector<8x64xf32>
    %379 = arith.mulf %377, %378 : vector<8x64xf32>
    %380 = vector.extract_strided_slice %338 {offsets = [16, 0], sizes = [8, 256], strides = [1, 1]} : vector<48x256xf32> to vector<8x256xf32>
    %cst_65 = arith.constant dense<0.000000e+00> : vector<8x256xf32>
    %381 = tpu.matmul %379, %339, %cst_65 {dimension_numbers = #tpu.dot_dimension_numbers<[1], [0], [0], [1], [0, 0, 1, 1], [], []>} : vector<8x64xf32>, vector<64x256xf32>, vector<8x256xf32> -> vector<8x256xf32>
    %382 = arith.addf %380, %381 : vector<8x256xf32>
    %383 = vector.extract_strided_slice %382 {offsets = [0, 0], sizes = [8, 192], strides = [1, 1]} : vector<8x256xf32> to vector<8x192xf32>
    %384 = arith.negf %383 : vector<8x192xf32>
    %385 = math.exp %384 : vector<8x192xf32>
    %cst_66 = arith.constant 1.000000e+00 : f32
    %386 = vector.broadcast %cst_66 : f32 to vector<8x192xf32>
    %387 = arith.addf %386, %385 : vector<8x192xf32>
    %388 = arith.divf %386, %387 : vector<8x192xf32>
    %389 = vector.extract_strided_slice %382 {offsets = [0, 192], sizes = [8, 64], strides = [1, 1]} : vector<8x256xf32> to vector<8x64xf32>
    %390 = math.tanh %389 : vector<8x64xf32>
    %391 = vector.extract_strided_slice %388 {offsets = [0, 64], sizes = [8, 64], strides = [1, 1]} : vector<8x192xf32> to vector<8x64xf32>
    %392 = arith.mulf %391, %376 : vector<8x64xf32>
    %393 = vector.extract_strided_slice %388 {offsets = [0, 0], sizes = [8, 64], strides = [1, 1]} : vector<8x192xf32> to vector<8x64xf32>
    %394 = arith.mulf %393, %390 : vector<8x64xf32>
    %395 = arith.addf %392, %394 : vector<8x64xf32>
    %396 = vector.extract_strided_slice %388 {offsets = [0, 128], sizes = [8, 64], strides = [1, 1]} : vector<8x192xf32> to vector<8x64xf32>
    %397 = math.tanh %395 : vector<8x64xf32>
    %398 = arith.mulf %396, %397 : vector<8x64xf32>
    %399 = vector.extract_strided_slice %338 {offsets = [24, 0], sizes = [8, 256], strides = [1, 1]} : vector<48x256xf32> to vector<8x256xf32>
    %cst_67 = arith.constant dense<0.000000e+00> : vector<8x256xf32>
    %400 = tpu.matmul %398, %339, %cst_67 {dimension_numbers = #tpu.dot_dimension_numbers<[1], [0], [0], [1], [0, 0, 1, 1], [], []>} : vector<8x64xf32>, vector<64x256xf32>, vector<8x256xf32> -> vector<8x256xf32>
    %401 = arith.addf %399, %400 : vector<8x256xf32>
    %402 = vector.extract_strided_slice %401 {offsets = [0, 0], sizes = [8, 192], strides = [1, 1]} : vector<8x256xf32> to vector<8x192xf32>
    %403 = arith.negf %402 : vector<8x192xf32>
    %404 = math.exp %403 : vector<8x192xf32>
    %cst_68 = arith.constant 1.000000e+00 : f32
    %405 = vector.broadcast %cst_68 : f32 to vector<8x192xf32>
    %406 = arith.addf %405, %404 : vector<8x192xf32>
    %407 = arith.divf %405, %406 : vector<8x192xf32>
    %408 = vector.extract_strided_slice %401 {offsets = [0, 192], sizes = [8, 64], strides = [1, 1]} : vector<8x256xf32> to vector<8x64xf32>
    %409 = math.tanh %408 : vector<8x64xf32>
    %410 = vector.extract_strided_slice %407 {offsets = [0, 64], sizes = [8, 64], strides = [1, 1]} : vector<8x192xf32> to vector<8x64xf32>
    %411 = arith.mulf %410, %395 : vector<8x64xf32>
    %412 = vector.extract_strided_slice %407 {offsets = [0, 0], sizes = [8, 64], strides = [1, 1]} : vector<8x192xf32> to vector<8x64xf32>
    %413 = arith.mulf %412, %409 : vector<8x64xf32>
    %414 = arith.addf %411, %413 : vector<8x64xf32>
    %415 = vector.extract_strided_slice %407 {offsets = [0, 128], sizes = [8, 64], strides = [1, 1]} : vector<8x192xf32> to vector<8x64xf32>
    %416 = math.tanh %414 : vector<8x64xf32>
    %417 = arith.mulf %415, %416 : vector<8x64xf32>
    %418 = vector.extract_strided_slice %338 {offsets = [32, 0], sizes = [8, 256], strides = [1, 1]} : vector<48x256xf32> to vector<8x256xf32>
    %cst_69 = arith.constant dense<0.000000e+00> : vector<8x256xf32>
    %419 = tpu.matmul %417, %339, %cst_69 {dimension_numbers = #tpu.dot_dimension_numbers<[1], [0], [0], [1], [0, 0, 1, 1], [], []>} : vector<8x64xf32>, vector<64x256xf32>, vector<8x256xf32> -> vector<8x256xf32>
    %420 = arith.addf %418, %419 : vector<8x256xf32>
    %421 = vector.extract_strided_slice %420 {offsets = [0, 0], sizes = [8, 192], strides = [1, 1]} : vector<8x256xf32> to vector<8x192xf32>
    %422 = arith.negf %421 : vector<8x192xf32>
    %423 = math.exp %422 : vector<8x192xf32>
    %cst_70 = arith.constant 1.000000e+00 : f32
    %424 = vector.broadcast %cst_70 : f32 to vector<8x192xf32>
    %425 = arith.addf %424, %423 : vector<8x192xf32>
    %426 = arith.divf %424, %425 : vector<8x192xf32>
    %427 = vector.extract_strided_slice %420 {offsets = [0, 192], sizes = [8, 64], strides = [1, 1]} : vector<8x256xf32> to vector<8x64xf32>
    %428 = math.tanh %427 : vector<8x64xf32>
    %429 = vector.extract_strided_slice %426 {offsets = [0, 64], sizes = [8, 64], strides = [1, 1]} : vector<8x192xf32> to vector<8x64xf32>
    %430 = arith.mulf %429, %414 : vector<8x64xf32>
    %431 = vector.extract_strided_slice %426 {offsets = [0, 0], sizes = [8, 64], strides = [1, 1]} : vector<8x192xf32> to vector<8x64xf32>
    %432 = arith.mulf %431, %428 : vector<8x64xf32>
    %433 = arith.addf %430, %432 : vector<8x64xf32>
    %434 = vector.extract_strided_slice %426 {offsets = [0, 128], sizes = [8, 64], strides = [1, 1]} : vector<8x192xf32> to vector<8x64xf32>
    %435 = math.tanh %433 : vector<8x64xf32>
    %436 = arith.mulf %434, %435 : vector<8x64xf32>
    %437 = vector.extract_strided_slice %338 {offsets = [40, 0], sizes = [8, 256], strides = [1, 1]} : vector<48x256xf32> to vector<8x256xf32>
    %cst_71 = arith.constant dense<0.000000e+00> : vector<8x256xf32>
    %438 = tpu.matmul %436, %339, %cst_71 {dimension_numbers = #tpu.dot_dimension_numbers<[1], [0], [0], [1], [0, 0, 1, 1], [], []>} : vector<8x64xf32>, vector<64x256xf32>, vector<8x256xf32> -> vector<8x256xf32>
    %439 = arith.addf %437, %438 : vector<8x256xf32>
    %440 = vector.extract_strided_slice %439 {offsets = [0, 0], sizes = [8, 192], strides = [1, 1]} : vector<8x256xf32> to vector<8x192xf32>
    %441 = arith.negf %440 : vector<8x192xf32>
    %442 = math.exp %441 : vector<8x192xf32>
    %cst_72 = arith.constant 1.000000e+00 : f32
    %443 = vector.broadcast %cst_72 : f32 to vector<8x192xf32>
    %444 = arith.addf %443, %442 : vector<8x192xf32>
    %445 = arith.divf %443, %444 : vector<8x192xf32>
    %446 = vector.extract_strided_slice %439 {offsets = [0, 192], sizes = [8, 64], strides = [1, 1]} : vector<8x256xf32> to vector<8x64xf32>
    %447 = math.tanh %446 : vector<8x64xf32>
    %448 = vector.extract_strided_slice %445 {offsets = [0, 64], sizes = [8, 64], strides = [1, 1]} : vector<8x192xf32> to vector<8x64xf32>
    %449 = arith.mulf %448, %433 : vector<8x64xf32>
    %450 = vector.extract_strided_slice %445 {offsets = [0, 0], sizes = [8, 64], strides = [1, 1]} : vector<8x192xf32> to vector<8x64xf32>
    %451 = arith.mulf %450, %447 : vector<8x64xf32>
    %452 = arith.addf %449, %451 : vector<8x64xf32>
    %453 = vector.extract_strided_slice %445 {offsets = [0, 128], sizes = [8, 64], strides = [1, 1]} : vector<8x192xf32> to vector<8x64xf32>
    %454 = math.tanh %452 : vector<8x64xf32>
    %455 = arith.mulf %453, %454 : vector<8x64xf32>
    %c440 = arith.constant 440 : index
    %c0_73 = arith.constant 0 : index
    %456 = vector.load %arg4[%c440, %c0_73] : memref<1056x256xf32, #tpu.memory_space<vmem>>, vector<32x64xf32>
    %cst_74 = arith.constant dense<0.000000e+00> : vector<8x64xf32>
    %457 = tpu.matmul %332, %456, %cst_74 {dimension_numbers = #tpu.dot_dimension_numbers<[1], [0], [0], [1], [0, 0, 1, 1], [], []>} : vector<8x32xf32>, vector<32x64xf32>, vector<8x64xf32> -> vector<8x64xf32>
    %c472 = arith.constant 472 : index
    %c0_75 = arith.constant 0 : index
    %458 = vector.load %arg4[%c472, %c0_75] : memref<1056x256xf32, #tpu.memory_space<vmem>>, vector<1x64xf32>
    %459 = vector.broadcast %458 : vector<1x64xf32> to vector<8x64xf32>
    %460 = arith.addf %457, %459 : vector<8x64xf32>
    %cst_76 = arith.constant 0.000000e+00 : f32
    %461 = vector.broadcast %cst_76 : f32 to vector<8x64xf32>
    %462 = arith.maximumf %460, %461 : vector<8x64xf32>
    %463 = tpu.concatenate %455, %462 in 1 : vector<8x64xf32>, vector<8x64xf32> -> vector<8x128xf32>
    %c480 = arith.constant 480 : index
    %c0_77 = arith.constant 0 : index
    %464 = vector.load %arg4[%c480, %c0_77] : memref<1056x256xf32, #tpu.memory_space<vmem>>, vector<128x64xf32>
    %cst_78 = arith.constant dense<0.000000e+00> : vector<8x64xf32>
    %465 = tpu.matmul %463, %464, %cst_78 {dimension_numbers = #tpu.dot_dimension_numbers<[1], [0], [0], [1], [0, 0, 1, 1], [], []>} : vector<8x128xf32>, vector<128x64xf32>, vector<8x64xf32> -> vector<8x64xf32>
    %c608 = arith.constant 608 : index
    %c0_79 = arith.constant 0 : index
    %466 = vector.load %arg4[%c608, %c0_79] : memref<1056x256xf32, #tpu.memory_space<vmem>>, vector<1x64xf32>
    %467 = vector.broadcast %466 : vector<1x64xf32> to vector<8x64xf32>
    %468 = arith.addf %465, %467 : vector<8x64xf32>
    %cst_80 = arith.constant 0.000000e+00 : f32
    %469 = vector.broadcast %cst_80 : f32 to vector<8x64xf32>
    %470 = arith.maximumf %468, %469 : vector<8x64xf32>
    %c616 = arith.constant 616 : index
    %c0_81 = arith.constant 0 : index
    %471 = vector.load %arg4[%c616, %c0_81] : memref<1056x256xf32, #tpu.memory_space<vmem>>, vector<64x32xf32>
    %cst_82 = arith.constant dense<0.000000e+00> : vector<8x32xf32>
    %472 = tpu.matmul %470, %471, %cst_82 {dimension_numbers = #tpu.dot_dimension_numbers<[1], [0], [0], [1], [0, 0, 1, 1], [], []>} : vector<8x64xf32>, vector<64x32xf32>, vector<8x32xf32> -> vector<8x32xf32>
    %c680 = arith.constant 680 : index
    %c0_83 = arith.constant 0 : index
    %473 = vector.load %arg4[%c680, %c0_83] : memref<1056x256xf32, #tpu.memory_space<vmem>>, vector<1x32xf32>
    %474 = vector.broadcast %473 : vector<1x32xf32> to vector<8x32xf32>
    %475 = arith.addf %472, %474 : vector<8x32xf32>
    %c0_84 = arith.constant 0 : index
    %c0_85 = arith.constant 0 : index
    %476 = vector.load %arg3[%c0_84, %c0_85] : memref<8x16xf32, #tpu.memory_space<vmem>>, vector<8x16xf32>
    %477 = tpu.concatenate %332, %475, %476 in 1 : vector<8x32xf32>, vector<8x32xf32>, vector<8x16xf32> -> vector<8x80xf32>
    %c688 = arith.constant 688 : index
    %c0_86 = arith.constant 0 : index
    %478 = vector.load %arg4[%c688, %c0_86] : memref<1056x256xf32, #tpu.memory_space<vmem>>, vector<80x64xf32>
    %cst_87 = arith.constant dense<0.000000e+00> : vector<8x64xf32>
    %479 = tpu.matmul %477, %478, %cst_87 {dimension_numbers = #tpu.dot_dimension_numbers<[1], [0], [0], [1], [0, 0, 1, 1], [], []>} : vector<8x80xf32>, vector<80x64xf32>, vector<8x64xf32> -> vector<8x64xf32>
    %c768 = arith.constant 768 : index
    %c0_88 = arith.constant 0 : index
    %480 = vector.load %arg4[%c768, %c0_88] : memref<1056x256xf32, #tpu.memory_space<vmem>>, vector<1x64xf32>
    %481 = vector.broadcast %480 : vector<1x64xf32> to vector<8x64xf32>
    %482 = arith.addf %479, %481 : vector<8x64xf32>
    %cst_89 = arith.constant 0.000000e+00 : f32
    %483 = vector.broadcast %cst_89 : f32 to vector<8x64xf32>
    %484 = arith.maximumf %482, %483 : vector<8x64xf32>
    %c776 = arith.constant 776 : index
    %c0_90 = arith.constant 0 : index
    %485 = vector.load %arg4[%c776, %c0_90] : memref<1056x256xf32, #tpu.memory_space<vmem>>, vector<64x64xf32>
    %cst_91 = arith.constant dense<0.000000e+00> : vector<8x64xf32>
    %486 = tpu.matmul %484, %485, %cst_91 {dimension_numbers = #tpu.dot_dimension_numbers<[1], [0], [0], [1], [0, 0, 1, 1], [], []>} : vector<8x64xf32>, vector<64x64xf32>, vector<8x64xf32> -> vector<8x64xf32>
    %c840 = arith.constant 840 : index
    %c0_92 = arith.constant 0 : index
    %487 = vector.load %arg4[%c840, %c0_92] : memref<1056x256xf32, #tpu.memory_space<vmem>>, vector<1x64xf32>
    %488 = vector.broadcast %487 : vector<1x64xf32> to vector<8x64xf32>
    %489 = arith.addf %486, %488 : vector<8x64xf32>
    %cst_93 = arith.constant 0.000000e+00 : f32
    %490 = vector.broadcast %cst_93 : f32 to vector<8x64xf32>
    %491 = arith.maximumf %489, %490 : vector<8x64xf32>
    %c848 = arith.constant 848 : index
    %c0_94 = arith.constant 0 : index
    %492 = vector.load %arg4[%c848, %c0_94] : memref<1056x256xf32, #tpu.memory_space<vmem>>, vector<64x256xf32>
    %cst_95 = arith.constant dense<0.000000e+00> : vector<8x256xf32>
    %493 = tpu.matmul %491, %492, %cst_95 {dimension_numbers = #tpu.dot_dimension_numbers<[1], [0], [0], [1], [0, 0, 1, 1], [], []>} : vector<8x64xf32>, vector<64x256xf32>, vector<8x256xf32> -> vector<8x256xf32>
    %c976 = arith.constant 976 : index
    %c0_96 = arith.constant 0 : index
    %494 = vector.load %arg4[%c976, %c0_96] : memref<1056x256xf32, #tpu.memory_space<vmem>>, vector<1x256xf32>
    %495 = vector.broadcast %494 : vector<1x256xf32> to vector<8x256xf32>
    %496 = arith.addf %493, %495 : vector<8x256xf32>
    %c912 = arith.constant 912 : index
    %c0_97 = arith.constant 0 : index
    %497 = vector.load %arg4[%c912, %c0_97] : memref<1056x256xf32, #tpu.memory_space<vmem>>, vector<64x256xf32>
    %cst_98 = arith.constant 0.000000e+00 : f32
    %498 = vector.broadcast %cst_98 : f32 to vector<8x64xf32>
    %cst_99 = arith.constant 0.000000e+00 : f32
    %499 = vector.broadcast %cst_99 : f32 to vector<8x64xf32>
    %cst_100 = arith.constant dense<0.000000e+00> : vector<8x256xf32>
    %500 = tpu.matmul %498, %497, %cst_100 {dimension_numbers = #tpu.dot_dimension_numbers<[1], [0], [0], [1], [0, 0, 1, 1], [], []>} : vector<8x64xf32>, vector<64x256xf32>, vector<8x256xf32> -> vector<8x256xf32>
    %501 = arith.addf %496, %500 : vector<8x256xf32>
    %502 = vector.extract_strided_slice %501 {offsets = [0, 0], sizes = [8, 192], strides = [1, 1]} : vector<8x256xf32> to vector<8x192xf32>
    %503 = arith.negf %502 : vector<8x192xf32>
    %504 = math.exp %503 : vector<8x192xf32>
    %cst_101 = arith.constant 1.000000e+00 : f32
    %505 = vector.broadcast %cst_101 : f32 to vector<8x192xf32>
    %506 = arith.addf %505, %504 : vector<8x192xf32>
    %507 = arith.divf %505, %506 : vector<8x192xf32>
    %508 = vector.extract_strided_slice %501 {offsets = [0, 192], sizes = [8, 64], strides = [1, 1]} : vector<8x256xf32> to vector<8x64xf32>
    %509 = math.tanh %508 : vector<8x64xf32>
    %510 = vector.extract_strided_slice %507 {offsets = [0, 64], sizes = [8, 64], strides = [1, 1]} : vector<8x192xf32> to vector<8x64xf32>
    %511 = arith.mulf %510, %499 : vector<8x64xf32>
    %512 = vector.extract_strided_slice %507 {offsets = [0, 0], sizes = [8, 64], strides = [1, 1]} : vector<8x192xf32> to vector<8x64xf32>
    %513 = arith.mulf %512, %509 : vector<8x64xf32>
    %514 = arith.addf %511, %513 : vector<8x64xf32>
    %515 = vector.extract_strided_slice %507 {offsets = [0, 128], sizes = [8, 64], strides = [1, 1]} : vector<8x192xf32> to vector<8x64xf32>
    %516 = math.tanh %514 : vector<8x64xf32>
    %517 = arith.mulf %515, %516 : vector<8x64xf32>
    %cst_102 = arith.constant dense<0.000000e+00> : vector<8x256xf32>
    %518 = tpu.matmul %517, %497, %cst_102 {dimension_numbers = #tpu.dot_dimension_numbers<[1], [0], [0], [1], [0, 0, 1, 1], [], []>} : vector<8x64xf32>, vector<64x256xf32>, vector<8x256xf32> -> vector<8x256xf32>
    %519 = arith.addf %496, %518 : vector<8x256xf32>
    %520 = vector.extract_strided_slice %519 {offsets = [0, 0], sizes = [8, 192], strides = [1, 1]} : vector<8x256xf32> to vector<8x192xf32>
    %521 = arith.negf %520 : vector<8x192xf32>
    %522 = math.exp %521 : vector<8x192xf32>
    %cst_103 = arith.constant 1.000000e+00 : f32
    %523 = vector.broadcast %cst_103 : f32 to vector<8x192xf32>
    %524 = arith.addf %523, %522 : vector<8x192xf32>
    %525 = arith.divf %523, %524 : vector<8x192xf32>
    %526 = vector.extract_strided_slice %519 {offsets = [0, 192], sizes = [8, 64], strides = [1, 1]} : vector<8x256xf32> to vector<8x64xf32>
    %527 = math.tanh %526 : vector<8x64xf32>
    %528 = vector.extract_strided_slice %525 {offsets = [0, 64], sizes = [8, 64], strides = [1, 1]} : vector<8x192xf32> to vector<8x64xf32>
    %529 = arith.mulf %528, %514 : vector<8x64xf32>
    %530 = vector.extract_strided_slice %525 {offsets = [0, 0], sizes = [8, 64], strides = [1, 1]} : vector<8x192xf32> to vector<8x64xf32>
    %531 = arith.mulf %530, %527 : vector<8x64xf32>
    %532 = arith.addf %529, %531 : vector<8x64xf32>
    %533 = vector.extract_strided_slice %525 {offsets = [0, 128], sizes = [8, 64], strides = [1, 1]} : vector<8x192xf32> to vector<8x64xf32>
    %534 = math.tanh %532 : vector<8x64xf32>
    %535 = arith.mulf %533, %534 : vector<8x64xf32>
    %cst_104 = arith.constant dense<0.000000e+00> : vector<8x256xf32>
    %536 = tpu.matmul %535, %497, %cst_104 {dimension_numbers = #tpu.dot_dimension_numbers<[1], [0], [0], [1], [0, 0, 1, 1], [], []>} : vector<8x64xf32>, vector<64x256xf32>, vector<8x256xf32> -> vector<8x256xf32>
    %537 = arith.addf %496, %536 : vector<8x256xf32>
    %538 = vector.extract_strided_slice %537 {offsets = [0, 0], sizes = [8, 192], strides = [1, 1]} : vector<8x256xf32> to vector<8x192xf32>
    %539 = arith.negf %538 : vector<8x192xf32>
    %540 = math.exp %539 : vector<8x192xf32>
    %cst_105 = arith.constant 1.000000e+00 : f32
    %541 = vector.broadcast %cst_105 : f32 to vector<8x192xf32>
    %542 = arith.addf %541, %540 : vector<8x192xf32>
    %543 = arith.divf %541, %542 : vector<8x192xf32>
    %544 = vector.extract_strided_slice %537 {offsets = [0, 192], sizes = [8, 64], strides = [1, 1]} : vector<8x256xf32> to vector<8x64xf32>
    %545 = math.tanh %544 : vector<8x64xf32>
    %546 = vector.extract_strided_slice %543 {offsets = [0, 64], sizes = [8, 64], strides = [1, 1]} : vector<8x192xf32> to vector<8x64xf32>
    %547 = arith.mulf %546, %532 : vector<8x64xf32>
    %548 = vector.extract_strided_slice %543 {offsets = [0, 0], sizes = [8, 64], strides = [1, 1]} : vector<8x192xf32> to vector<8x64xf32>
    %549 = arith.mulf %548, %545 : vector<8x64xf32>
    %550 = arith.addf %547, %549 : vector<8x64xf32>
    %551 = vector.extract_strided_slice %543 {offsets = [0, 128], sizes = [8, 64], strides = [1, 1]} : vector<8x192xf32> to vector<8x64xf32>
    %552 = math.tanh %550 : vector<8x64xf32>
    %553 = arith.mulf %551, %552 : vector<8x64xf32>
    %cst_106 = arith.constant dense<0.000000e+00> : vector<8x256xf32>
    %554 = tpu.matmul %553, %497, %cst_106 {dimension_numbers = #tpu.dot_dimension_numbers<[1], [0], [0], [1], [0, 0, 1, 1], [], []>} : vector<8x64xf32>, vector<64x256xf32>, vector<8x256xf32> -> vector<8x256xf32>
    %555 = arith.addf %496, %554 : vector<8x256xf32>
    %556 = vector.extract_strided_slice %555 {offsets = [0, 0], sizes = [8, 192], strides = [1, 1]} : vector<8x256xf32> to vector<8x192xf32>
    %557 = arith.negf %556 : vector<8x192xf32>
    %558 = math.exp %557 : vector<8x192xf32>
    %cst_107 = arith.constant 1.000000e+00 : f32
    %559 = vector.broadcast %cst_107 : f32 to vector<8x192xf32>
    %560 = arith.addf %559, %558 : vector<8x192xf32>
    %561 = arith.divf %559, %560 : vector<8x192xf32>
    %562 = vector.extract_strided_slice %555 {offsets = [0, 192], sizes = [8, 64], strides = [1, 1]} : vector<8x256xf32> to vector<8x64xf32>
    %563 = math.tanh %562 : vector<8x64xf32>
    %564 = vector.extract_strided_slice %561 {offsets = [0, 64], sizes = [8, 64], strides = [1, 1]} : vector<8x192xf32> to vector<8x64xf32>
    %565 = arith.mulf %564, %550 : vector<8x64xf32>
    %566 = vector.extract_strided_slice %561 {offsets = [0, 0], sizes = [8, 64], strides = [1, 1]} : vector<8x192xf32> to vector<8x64xf32>
    %567 = arith.mulf %566, %563 : vector<8x64xf32>
    %568 = arith.addf %565, %567 : vector<8x64xf32>
    %569 = vector.extract_strided_slice %561 {offsets = [0, 128], sizes = [8, 64], strides = [1, 1]} : vector<8x192xf32> to vector<8x64xf32>
    %570 = math.tanh %568 : vector<8x64xf32>
    %571 = arith.mulf %569, %570 : vector<8x64xf32>
    %cst_108 = arith.constant dense<0.000000e+00> : vector<8x256xf32>
    %572 = tpu.matmul %571, %497, %cst_108 {dimension_numbers = #tpu.dot_dimension_numbers<[1], [0], [0], [1], [0, 0, 1, 1], [], []>} : vector<8x64xf32>, vector<64x256xf32>, vector<8x256xf32> -> vector<8x256xf32>
    %573 = arith.addf %496, %572 : vector<8x256xf32>
    %574 = vector.extract_strided_slice %573 {offsets = [0, 0], sizes = [8, 192], strides = [1, 1]} : vector<8x256xf32> to vector<8x192xf32>
    %575 = arith.negf %574 : vector<8x192xf32>
    %576 = math.exp %575 : vector<8x192xf32>
    %cst_109 = arith.constant 1.000000e+00 : f32
    %577 = vector.broadcast %cst_109 : f32 to vector<8x192xf32>
    %578 = arith.addf %577, %576 : vector<8x192xf32>
    %579 = arith.divf %577, %578 : vector<8x192xf32>
    %580 = vector.extract_strided_slice %573 {offsets = [0, 192], sizes = [8, 64], strides = [1, 1]} : vector<8x256xf32> to vector<8x64xf32>
    %581 = math.tanh %580 : vector<8x64xf32>
    %582 = vector.extract_strided_slice %579 {offsets = [0, 64], sizes = [8, 64], strides = [1, 1]} : vector<8x192xf32> to vector<8x64xf32>
    %583 = arith.mulf %582, %568 : vector<8x64xf32>
    %584 = vector.extract_strided_slice %579 {offsets = [0, 0], sizes = [8, 64], strides = [1, 1]} : vector<8x192xf32> to vector<8x64xf32>
    %585 = arith.mulf %584, %581 : vector<8x64xf32>
    %586 = arith.addf %583, %585 : vector<8x64xf32>
    %587 = vector.extract_strided_slice %579 {offsets = [0, 128], sizes = [8, 64], strides = [1, 1]} : vector<8x192xf32> to vector<8x64xf32>
    %588 = math.tanh %586 : vector<8x64xf32>
    %589 = arith.mulf %587, %588 : vector<8x64xf32>
    %590 = tpu.concatenate %517, %535, %553, %571, %589 in 0 : vector<8x64xf32>, vector<8x64xf32>, vector<8x64xf32>, vector<8x64xf32>, vector<8x64xf32> -> vector<40x64xf32>
    %c984 = arith.constant 984 : index
    %c0_110 = arith.constant 0 : index
    %591 = vector.load %arg4[%c984, %c0_110] : memref<1056x256xf32, #tpu.memory_space<vmem>>, vector<64x128xf32>
    %cst_111 = arith.constant dense<0.000000e+00> : vector<40x128xf32>
    %592 = tpu.matmul %590, %591, %cst_111 {dimension_numbers = #tpu.dot_dimension_numbers<[1], [0], [0], [1], [0, 0, 1, 1], [], []>} : vector<40x64xf32>, vector<64x128xf32>, vector<40x128xf32> -> vector<40x128xf32>
    %c1048 = arith.constant 1048 : index
    %c0_112 = arith.constant 0 : index
    %593 = vector.load %arg4[%c1048, %c0_112] : memref<1056x256xf32, #tpu.memory_space<vmem>>, vector<1x128xf32>
    %594 = vector.broadcast %593 : vector<1x128xf32> to vector<40x128xf32>
    %595 = arith.addf %592, %594 : vector<40x128xf32>
    %c0_113 = arith.constant 0 : index
    %c0_114 = arith.constant 0 : index
    %596 = vector.load %arg5[%c0_113, %c0_114] : memref<40x128xf32, #tpu.memory_space<vmem>>, vector<40x128xf32>
    tpu.vector_store %arg5[%c0_113, %c0_114], %595 {strides = array<i32>} : memref<40x128xf32, #tpu.memory_space<vmem>>, vector<40x128xf32>,
    return
  }
}

</mosaic_0001>

<bundles_post_ra>
// kernel: tomnet_forward.1
= control target key start
LH: loop header
LB: loop body
LE: loop exit
PB: predicated region body
PF: predicated region fallthrough
CT: control target
= control target key end

     0   :  { %vm37_vm0 = vcmask 64512   ;;  %v6022_v19 = vmov 0.0   ;;  %s3955_s8 = smov 64   ;;  %vm199_vm9 = vcmask 523264   ;;  %s3956_s21 = smov 32   ;;  %s6016_s4 = inlined_call_operand.vmem [shape: f32[1056,256], index: 4, kind: input, shape index: {}]   ;;  %s6017_s1 = inlined_call_operand.vmem [shape: f32[64,8], index: 1, kind: input, shape index: {}]   ;;  %s6018_s0 = inlined_call_operand.vmem [shape: f32[8,8], index: 0, kind: input, shape index: {}]   ;;  %s6019_s2 = inlined_call_operand.vmem [shape: f32[48,8], index: 2, kind: input, shape index: {}]   ;;  %s6020_s3 = inlined_call_operand.vmem [shape: f32[8,16], index: 3, kind: input, shape index: {}]   ;;  %s6021_s5 = inlined_call_operand.vmem [shape: f32[40,128], index: 5, kind: output, shape index: {}]  }
   0x1   :  { %v3990_v0 = vld [vmem:[%s6016_s4 + $0x88] sm:$0xff]  ;;  %v3995_v1 = vld [vmem:[%s6016_s4 + $0x78] sm:$0xff]  ;;  %v20_v4 = vld [vmem:[%s6017_s1] sm:$0xff] }
   0x2   :  { %231 = vmatpush.msra.mxu3 %v3990_v0  ;;  %v4001_v2 = vld [vmem:[%s6016_s4 + $0x68] sm:$0xff]  ;;  %v4013_v5 = vld [vmem:[%s6016_s4 + $0x80] sm:$0xff]  ;;  %v4018_v6 = vld [vmem:[%s6016_s4 + $0x70] sm:$0xff] }
   0x3   :  { %v29_v3 = vld [vmem:[%s6016_s4 + $0x8] sm:$0xff]  ;;  %v4023_v7 = vld [vmem:[%s6016_s4 + $0x58] sm:$0xff]  ;;  %211 = vmatpush.msra.mxu2 %v4013_v5  ;;  %v4031_v8 = vld [vmem:[%s6016_s4 + $0x60] sm:$0xff] }
   0x4   :  { %232 = vmatpush.msra.mxu3 %v3995_v1  ;;  %118 = vmatpush.msra.mxu1 %v29_v3  ;;  %v4036_v9 = vld [vmem:[%s6016_s4 + $0x48] sm:$0xff]  ;;  %v28_v10 = vld [vmem:[%s6016_s4] sm:$0xff]  ;;  %v4046_v11 = vld [vmem:[%s6016_s4 + $0x50] sm:$0xff] }
   0x5   :  { %3454 = vmatmul.msk.f32.vlgmr.msra.gmra.mxu1 %vm37_vm0, %v20_v4  ;;  %212 = vmatpush.msra.mxu2 %v4018_v6  ;;  %v4051_v12 = vld [vmem:[%s6016_s4 + $0x38] sm:$0xff]  ;;  %v4059_v13 = vld [vmem:[%s6016_s4 + $0x40] sm:$0xff]  ;;  %v4064_v14 = vld [vmem:[%s6016_s4 + $0x28] sm:$0xff] }
   0x6   :  { %233 = vmatpush.msra.mxu3 %v4001_v2  ;;  %77 = vmatpush.msra.mxu0 %v28_v10  ;;  %v4071_v15 = vld [vmem:[%s6016_s4 + $0x30] sm:$0xff]  ;;  %v4076_v16 = vld [vmem:[%s6016_s4 + $0x18] sm:$0xff]  ;;  %v4083_v17 = vld [vmem:[%s6016_s4 + $0x20] sm:$0xff] }
   0x7   :  { %213 = vmatpush.msra.mxu2 %v4031_v8  ;;  %3446 = vmatmul.msk.f32.vlgmr.msra.gmra.mxu0 %vm37_vm0, %v20_v4  ;;  %v4090_v18 = vld [vmem:[%s6016_s4 + $0x10] sm:$0xff]  ;;  %v4121_v48 = vld [vmem:[%s6016_s4 + $0x198] sm:$0xff]  ;;  %v4126_v49 = vld [vmem:[%s6016_s4 + $0x180] sm:$0xff] }
   0x8   :  { %234 = vmatpush.msra.mxu3 %v4023_v7  ;;  %v3445_v20 = vld [vmem:[%s6016_s4 + $0x90] ss:$8 sm:$0x3]  ;;  %v4133_v50 = vld [vmem:[%s6016_s4 + $0x188] sm:$0xff]  ;;  %524 = vmatpush.msrb.mxu1 %v4121_v48  ;;  %v4152_v53 = vld [vmem:[%s6016_s4 + $0x160] sm:$0xff] }
   0x9   :  { %214 = vmatpush.msra.mxu2 %v4046_v11  ;;  %v4099_v21 = vperm.slane %v3445_v20, 1  ;;  %v4106_v27 = vperm.slane %v3445_v20, 0  ;;  %v4116_v47 = vld [vmem:[%s6016_s4 + $0x190] sm:$0xff]  ;;  %v4143_v52 = vld [vmem:[%s6016_s4 + $0x178] sm:$0xff]  ;;  %v4157_v54 = vld [vmem:[%s6016_s4 + $0x168] sm:$0xff] }
   0xa   :  { %235 = vmatpush.msra.mxu3 %v4036_v9  ;;  %v4138_v51 = vld [vmem:[%s6016_s4 + $0x170] sm:$0xff]  ;;  %504 = vmatpush.msrb.mxu0 %v4116_v47  ;;  %v4171_v56 = vld [vmem:[%s6016_s4 + $0x158] sm:$0xff]  ;;  %v4180_v57 = vld [vmem:[%s6016_s4 + $0x140] sm:$0xff] }
   0xb   :  { %215 = vmatpush.msra.mxu2 %v4059_v13  ;;  %6050 = vst [vmem:[#allocation2_spill] sm:$0xff] %v4106_v27  ;;  %525 = vmatpush.msrb.mxu1 %v4133_v50  ;;  %v4166_v55 = vld [vmem:[%s6016_s4 + $0x150] sm:$0xff]  ;;  %v4185_v58 = vld [vmem:[%s6016_s4 + $0x148] sm:$0xff]  ;;  %v4199_v60 = vld [vmem:[%s6016_s4 + $0x138] sm:$0xff] }
   0xc   :  { %236 = vmatpush.msra.mxu3 %v4051_v12  ;;  %505 = vmatpush.msrb.mxu0 %v4126_v49  ;;  %v4194_v59 = vld [vmem:[%s6016_s4 + $0x130] sm:$0xff]  ;;  %v4208_v61 = vld [vmem:[%s6016_s4 + $0x120] sm:$0xff]  ;;  %v4213_v62 = vld [vmem:[%s6016_s4 + $0x128] sm:$0xff] }
   0xd   :  { %216 = vmatpush.msra.mxu2 %v4071_v15  ;;  %526 = vmatpush.msrb.mxu1 %v4143_v52  ;;  %v4222_v63 = vld [vmem:[%s6016_s4 + $0x110] sm:$0xff]  ;;  %v4227_v3 = vld [vmem:[%s6016_s4 + $0x118] sm:$0xff]  ;;  %v4236_v4 = vld [vmem:[%s6016_s4 + $0x100] sm:$0xff] }
   0xe   :  { %237 = vmatpush.msra.mxu3 %v4064_v14  ;;  %506 = vmatpush.msrb.mxu0 %v4138_v51  ;;  %v4241_v10 = vld [vmem:[%s6016_s4 + $0x108] sm:$0xff]  ;;  %v4250_v20 = vld [vmem:[%s6016_s4 + $0xf0] sm:$0xff] }
   0xf   :  { %217 = vmatpush.msra.mxu2 %v4083_v17  ;;  %527 = vmatpush.msrb.mxu1 %v4157_v54 }
  0x10   :  { %238 = vmatpush.msra.mxu3 %v4076_v16  ;;  %507 = vmatpush.msrb.mxu0 %v4152_v53 }
  0x11   :  { %239 = vmatmul.f32.vlgmr.msra.gmra.mxu3 %v6022_v19  ;;  %218 = vmatpush.msra.mxu2 %v4090_v18 }
  0x12   :  { %219 = vmatmul.f32.vlgmr.msra.gmra.mxu2 %v6022_v19  ;;  %322 = vmatpush.msrb.mxu3 %v4121_v48 }
  0x13   :  { %302 = vmatpush.msrb.mxu2 %v4116_v47  ;;  %528 = vmatpush.msrb.mxu1 %v4171_v56 }
  0x14   :  { %323 = vmatpush.msrb.mxu3 %v4133_v50  ;;  %508 = vmatpush.msrb.mxu0 %v4166_v55 }
  0x15   :  { %303 = vmatpush.msrb.mxu2 %v4126_v49  ;;  %529 = vmatpush.msrb.mxu1 %v4185_v58 }
  0x16   :  { %324 = vmatpush.msrb.mxu3 %v4143_v52  ;;  %509 = vmatpush.msrb.mxu0 %v4180_v57 }
  0x17   :  { %304 = vmatpush.msrb.mxu2 %v4138_v51  ;;  %530 = vmatpush.msrb.mxu1 %v4199_v60 }
  0x18   :  { %325 = vmatpush.msrb.mxu3 %v4157_v54  ;;  %510 = vmatpush.msrb.mxu0 %v4194_v59 }
  0x19   :  { %305 = vmatpush.msrb.mxu2 %v4152_v53  ;;  %531 = vmatpush.msrb.mxu1 %v4213_v62 }
  0x1a   :  { %326 = vmatpush.msrb.mxu3 %v4171_v56  ;;  %511 = vmatpush.msrb.mxu0 %v4208_v61 }
  0x1b   :  { %306 = vmatpush.msrb.mxu2 %v4166_v55  ;;  %532 = vmatpush.msrb.mxu1 %v4227_v3 }
  0x1c   :  { %327 = vmatpush.msrb.mxu3 %v4185_v58  ;;  %512 = vmatpush.msrb.mxu0 %v4222_v63 }
  0x1d   :  { %307 = vmatpush.msrb.mxu2 %v4180_v57  ;;  %533 = vmatpush.msrb.mxu1 %v4241_v10 }
  0x1e   :  { %328 = vmatpush.msrb.mxu3 %v4199_v60  ;;  %513 = vmatpush.msrb.mxu0 %v4236_v4 }
  0x1f   :  { %308 = vmatpush.msrb.mxu2 %v4194_v59 }
  0x20   :  { %329 = vmatpush.msrb.mxu3 %v4213_v62  ;;  %514 = vmatpush.msrb.mxu0 %v4250_v20 }
  0x21   :  { %309 = vmatpush.msrb.mxu2 %v4208_v61 }
  0x22   :  { %330 = vmatpush.msrb.mxu3 %v4227_v3 }
  0x23   :  { %310 = vmatpush.msrb.mxu2 %v4222_v63 }
  0x24   :  { %331 = vmatpush.msrb.mxu3 %v4241_v10 }
  0x25   :  { %311 = vmatpush.msrb.mxu2 %v4236_v4 }
  0x27   :  { %312 = vmatpush.msrb.mxu2 %v4250_v20 }
  0x82   :  { %v120_v22 = vpop.f32.mrf.mxu1 }
  0x83   :  { %v121_v23 = vadd.f32 %v120_v22, %v4099_v21  ;;  %v4255_v22 = vld [vmem:[%s6016_s4 + $0xf8] sm:$0xff] }
  0x84   :  { %v79_v28 = vpop.f32.mrf.mxu0  ;;  %332 = vmatpush.msrb.mxu3 %v4255_v22  ;;  %534 = vmatpush.msrb.mxu1 %v4255_v22 }
  0x85   :  { %v80_v29 = vadd.f32 %v79_v28, %v4106_v27 }
  0x94   :  { %v240_v24 = vpop.f32.mrf.mxu3 }
  0x95   :  { %v4102_v25 = vadd.f32 %v240_v24, %v121_v23  ;;  %v220_v30 = vpop.f32.mrf.mxu2  ;;  %v4264_v23 = vld [vmem:[%s6016_s4 + $0xe0] sm:$0xff]  ;;  %v4269_v24 = vld [vmem:[%s6016_s4 + $0xe8] sm:$0xff] }
  0x96   :  { %v243_v31 = vadd.f32 %v220_v30, %v80_v29  ;;  %v4279_v29 = vld [vmem:[%s6016_s4 + $0xd0] sm:$0xff]  ;;  %v4284_v30 = vld [vmem:[%s6016_s4 + $0xd8] sm:$0xff]  ;;  %313 = vmatpush.msrb.mxu2 %v4264_v23  ;;  %333 = vmatpush.msrb.mxu3 %v4269_v24 }
  0x97   :  { %3582 = vtanh.f32 %v4102_v25  ;;  %535 = vmatpush.msrb.mxu1 %v4269_v24  ;;  %515 = vmatpush.msrb.mxu0 %v4264_v23 }
  0x98   :  { %v3463_v32 = vmul.f32 -1.442695, %v243_v31  ;;  %314 = vmatpush.msrb.mxu2 %v4279_v29  ;;  %334 = vmatpush.msrb.mxu3 %v4284_v30 }
  0x99   :  { %536 = vmatpush.msrb.mxu1 %v4284_v30  ;;  %516 = vmatpush.msrb.mxu0 %v4279_v29 }
  0x9a   :  { %3584 = vpow2.f32 %v3463_v32  ;;  %v4295_v32 = vld [vmem:[%s6016_s4 + $0xc0] sm:$0xff] }
  0x9b   :  { %315 = vmatpush.msrb.mxu2 %v4295_v32  ;;  %517 = vmatpush.msrb.mxu0 %v4295_v32 }
  0x9d   :  { %v3583_v26 = vpop.eup %3582 }
  0x9e   :  { %286 = vrot.lane.b32.xlu0 %v3583_v26, %s3955_s8 }
  0xa0   :  { %v3585_v33 = vpop.eup %3584 }
  0xa1   :  { %v251_v34 = vadd.f32 1.0, %v3585_v33  ;;  %v4300_v33 = vld [vmem:[%s6016_s4 + $0xc8] sm:$0xff] }
  0xa2   :  { %335 = vmatpush.msrb.mxu3 %v4300_v33  ;;  %537 = vmatpush.msrb.mxu1 %v4300_v33 }
  0xa3   :  { %3586 = vrcp.f32 %v251_v34  ;;  %vm258_vm1 = vweird.f32 %v251_v34  ;;  %v264_v39 = vand.u32 2147483648, %v251_v34  ;;  %v262_v41 = vand.u32 2147483647, %v251_v34 }
  0xa5   :  { %v265_v42 = vor.u32 1.1754944e-38, %v264_v39  ;;  %vm263_vm4 = vcmp.eq.f32.partialorder %v262_v41, 8.507059e+37  ;;  %v3464_v39 = vmul.f32 -1.442695, %v4102_v25 }
  0xa9   :  { %v3587_v35 = vpop.eup %3586 }
  0xaa   :  { %v254_v36 = vmul.f32 %v3587_v35, %v251_v34  ;;  %vm259_vm2 = vweird.f32 %v3587_v35  ;;  %v4310_v34 = vld [vmem:[%s6016_s4 + $0xb0] sm:$0xff] }
  0xab   :  { %vm260_vm3 = vmor %vm258_vm1, %vm259_vm2  ;;  %316 = vmatpush.msrb.mxu2 %v4310_v34  ;;  %518 = vmatpush.msrb.mxu0 %v4310_v34 }
  0xac   :  { %v255_v37 = vsub.f32 1.0, %v254_v36  ;;  %v4324_v36 = vld [vmem:[%s6016_s4 + $0xa0] sm:$0xff] }
  0xad   :  { %6051 = vst [vmem:[#allocation3_spill] sm:$0xff] %v4324_v36  ;;  %317 = vmatpush.msrb.mxu2 %v4324_v36  ;;  %519 = vmatpush.msrb.mxu0 %v4324_v36 }
  0xae   :  { %v256_v38 = vmul.f32 %v3587_v35, %v255_v37  ;;  %v4329_v37 = vld [vmem:[%s6016_s4 + $0xa8] sm:$0xff] }
  0xaf   :  { %409 = vmatpush.msra.mxu2 %v4013_v5  ;;  %706 = vmatpush.msra.mxu0 %v4116_v47 }
  0xb0   :  { %v257_v40 = vadd.f32 %v3587_v35, %v256_v38 }
  0xb1   :  { %410 = vmatpush.msra.mxu2 %v4018_v6  ;;  %707 = vmatpush.msra.mxu0 %v4126_v49 }
  0xb2   :  { %v261_v43 = vsel %vm260_vm3, %v3587_v35, %v257_v40  ;;  %v4315_v35 = vld [vmem:[%s6016_s4 + $0xb8] sm:$0xff] }
  0xb3   :  { %v4109_v45 = vsel %vm263_vm4, %v265_v42, %v261_v43  ;;  %336 = vmatpush.msrb.mxu3 %v4315_v35  ;;  %538 = vmatpush.msrb.mxu1 %v4315_v35  ;;  %v21_v43 = vld [vmem:[%s6017_s1 + $0x8] sm:$0xff] }
  0xb4   :  { %v284_v26 = vmul.f32 0.0, %v4109_v45  ;;  %411 = vmatpush.msra.mxu2 %v4031_v8  ;;  %708 = vmatpush.msra.mxu0 %v4138_v51 }
  0xb5   :  { %337 = vmatpush.msrb.mxu3 %v4329_v37  ;;  %539 = vmatpush.msrb.mxu1 %v4329_v37 }
  0xb6   :  { %412 = vmatpush.msra.mxu2 %v4046_v11  ;;  %709 = vmatpush.msra.mxu0 %v4152_v53 }
  0xb7   :  { %429 = vmatpush.msra.mxu3 %v3990_v0  ;;  %631 = vmatpush.msra.mxu1 %v3990_v0 }
  0xb8   :  { %413 = vmatpush.msra.mxu2 %v4059_v13  ;;  %710 = vmatpush.msra.mxu0 %v4166_v55 }
  0xb9   :  { %430 = vmatpush.msra.mxu3 %v3995_v1  ;;  %632 = vmatpush.msra.mxu1 %v3995_v1 }
  0xba   :  { %414 = vmatpush.msra.mxu2 %v4071_v15  ;;  %711 = vmatpush.msra.mxu0 %v4180_v57 }
  0xbb   :  { %431 = vmatpush.msra.mxu3 %v4001_v2  ;;  %633 = vmatpush.msra.mxu1 %v4001_v2 }
  0xbc   :  { %415 = vmatpush.msra.mxu2 %v4083_v17  ;;  %712 = vmatpush.msra.mxu0 %v4194_v59 }
  0xbd   :  { %432 = vmatpush.msra.mxu3 %v4023_v7  ;;  %634 = vmatpush.msra.mxu1 %v4023_v7 }
  0xbe   :  { %416 = vmatpush.msra.mxu2 %v4090_v18  ;;  %713 = vmatpush.msra.mxu0 %v4208_v61 }
  0xbf   :  { %433 = vmatpush.msra.mxu3 %v4036_v9  ;;  %635 = vmatpush.msra.mxu1 %v4036_v9 }
  0xc0   :  { %714 = vmatpush.msra.mxu0 %v4222_v63  ;;  %3455 = vmatmul.msk.f32.gmra.mxu1 %vm37_vm0, %v21_v43 }
  0xc1   :  { %434 = vmatpush.msra.mxu3 %v4051_v12  ;;  %636 = vmatpush.msra.mxu1 %v4051_v12 }
  0xc2   :  { %715 = vmatpush.msra.mxu0 %v4236_v4 }
  0xc3   :  { %435 = vmatpush.msra.mxu3 %v4064_v14  ;;  %637 = vmatpush.msra.mxu1 %v4064_v14 }
  0xc4   :  { %716 = vmatpush.msra.mxu0 %v4250_v20 }
  0xc5   :  { %436 = vmatpush.msra.mxu3 %v4076_v16  ;;  %638 = vmatpush.msra.mxu1 %v4076_v16 }
  0xc6   :  { %717 = vmatpush.msra.mxu0 %v4264_v23 }
  0xc7   :  { %3447 = vmatmul.msk.f32.gmra.mxu0 %vm37_vm0, %v21_v43 }
  0xc8   :  { %718 = vmatpush.msra.mxu0 %v4279_v29 }
  0xca   :  { %719 = vmatpush.msra.mxu0 %v4295_v32 }
  0xcc   :  { %720 = vmatpush.msra.mxu0 %v4310_v34 }
  0xce   :  { %721 = vmatpush.msra.mxu0 %v4324_v36 }
 0x110   :  { %v287_v44 = vpop.permute.xlu0 %286 }
 0x111   :  { %v289_v46 = vmul.f32 %v287_v44, %v4109_v45 }
 0x113   :  { %291 = vrot.lane.b32.xlu0 %v289_v46, %s3955_s8 }
 0x185   :  { %v292_v28 = vpop.permute.xlu0 %291 }
 0x186   :  { %v4288_v31 = vadd.f32 %v292_v28, %v284_v26 }
 0x188   :  { %3588 = vtanh.f32 %v4288_v31 }
 0x189   :  { %3590 = vpow2.f32 %v3464_v39 }
 0x18e   :  { %v3589_v38 = vpop.eup %3588 }
 0x18f   :  { %297 = vrot.lane.b32.xlu1 %v3589_v38, %s3955_s8  ;;  %v3591_v40 = vpop.eup %3590 }
 0x190   :  { %v252_v41 = vadd.f32 1.0, %v3591_v40 }
 0x192   :  { %3592 = vrcp.f32 %v252_v41  ;;  %v279_v28 = vand.u32 2147483648, %v252_v41  ;;  %vm273_vm6 = vweird.f32 %v252_v41  ;;  %v277_v25 = vand.u32 2147483647, %v252_v41 }
 0x194   :  { %v280_v39 = vor.u32 1.1754944e-38, %v279_v28  ;;  %vm278_vm8 = vcmp.eq.f32.partialorder %v277_v25, 8.507059e+37 }
 0x198   :  { %v3593_v42 = vpop.eup %3592 }
 0x199   :  { %v269_v44 = vmul.f32 %v3593_v42, %v252_v41  ;;  %vm274_vm5 = vweird.f32 %v3593_v42 }
 0x19a   :  { %vm275_vm7 = vmor %vm273_vm6, %vm274_vm5 }
 0x19b   :  { %v270_v45 = vsub.f32 1.0, %v269_v44 }
 0x19d   :  { %v271_v46 = vmul.f32 %v3593_v42, %v270_v45 }
 0x19f   :  { %v272_v26 = vadd.f32 %v3593_v42, %v271_v46 }
 0x1a1   :  { %v276_v38 = vsel %vm275_vm7, %v3593_v42, %v272_v26  ;;  %v82_v42 = vpop.f32.mrf.mxu0 }
 0x1a2   :  { %v281_v40 = vsel %vm278_vm8, %v280_v39, %v276_v38  ;;  %v83_v43 = vadd.f32 %v82_v42, %v4106_v27 }
 0x201   :  { %v298_v19 = vpop.permute.xlu1 %297 }
 0x202   :  { %v300_v36 = vmul.f32 %v298_v19, %v281_v40 }
 0x204   :  { %3465 = vmatmul.msk.f32.vlgmr.msrb.gmra.mxu2 %vm199_vm9, %v300_v36  ;;  %3466 = vmatmul.msk.f32.vlgmr.msrb.gmra.mxu3 %vm199_vm9, %v300_v36 }
 0x205   :  { %611 = vmatpush.msrb.mxu2 %v4013_v5  ;;  %928 = vmatpush.msrb.mxu3 %v4121_v48 }
 0x207   :  { %612 = vmatpush.msrb.mxu2 %v4018_v6  ;;  %929 = vmatpush.msrb.mxu3 %v4133_v50 }
 0x209   :  { %613 = vmatpush.msrb.mxu2 %v4031_v8  ;;  %930 = vmatpush.msrb.mxu3 %v4143_v52 }
 0x20b   :  { %614 = vmatpush.msrb.mxu2 %v4046_v11  ;;  %931 = vmatpush.msrb.mxu3 %v4157_v54 }
 0x20c   :  { %3469 = vmatmul.msk.f32.vlgmr.msra.gmra.mxu2 %vm199_vm9, %v300_v36  ;;  %3470 = vmatmul.msk.f32.vlgmr.msra.gmra.mxu3 %vm199_vm9, %v300_v36 }
 0x20d   :  { %615 = vmatpush.msrb.mxu2 %v4059_v13  ;;  %932 = vmatpush.msrb.mxu3 %v4171_v56 }
 0x20f   :  { %616 = vmatpush.msrb.mxu2 %v4071_v15  ;;  %933 = vmatpush.msrb.mxu3 %v4185_v58 }
 0x211   :  { %617 = vmatpush.msrb.mxu2 %v4083_v17  ;;  %934 = vmatpush.msrb.mxu3 %v4199_v60 }
 0x213   :  { %618 = vmatpush.msrb.mxu2 %v4090_v18  ;;  %935 = vmatpush.msrb.mxu3 %v4213_v62 }
 0x215   :  { %813 = vmatpush.msra.mxu2 %v4013_v5  ;;  %936 = vmatpush.msrb.mxu3 %v4227_v3  ;;  %v3462_v5 = vld [vmem:[%s6016_s4 + $0x1a0] ss:$8 sm:$0x3] }
 0x216   :  { %v4448_v26 = vperm.slane %v3462_v5, 0 }
 0x217   :  { %814 = vmatpush.msra.mxu2 %v4018_v6  ;;  %937 = vmatpush.msrb.mxu3 %v4241_v10  ;;  %v4435_v6 = vperm.slane %v3462_v5, 1 }
 0x218   :  { %6053 = vst [vmem:[#allocation5_spill] sm:$0xff] %v4448_v26 }
 0x219   :  { %815 = vmatpush.msra.mxu2 %v4031_v8  ;;  %938 = vmatpush.msrb.mxu3 %v4255_v22  ;;  %6052 = vst [vmem:[#allocation4_spill] sm:$0xff] %v4435_v6 }
 0x21b   :  { %816 = vmatpush.msra.mxu2 %v4046_v11  ;;  %939 = vmatpush.msrb.mxu3 %v4269_v24 }
 0x21d   :  { %817 = vmatpush.msra.mxu2 %v4059_v13  ;;  %940 = vmatpush.msrb.mxu3 %v4284_v30  ;;  %v123_v13 = vpop.f32.mrf.mxu1 }
 0x21f   :  { %818 = vmatpush.msra.mxu2 %v4071_v15  ;;  %941 = vmatpush.msrb.mxu3 %v4300_v33  ;;  %v124_v15 = vadd.f32 %v123_v13, %v4099_v21 }
 0x221   :  { %819 = vmatpush.msra.mxu2 %v4083_v17  ;;  %942 = vmatpush.msrb.mxu3 %v4315_v35 }
 0x223   :  { %820 = vmatpush.msra.mxu2 %v4090_v18  ;;  %943 = vmatpush.msrb.mxu3 %v4329_v37 }
 0x225   :  { %1237 = vmatpush.msra.mxu3 %v3990_v0 }
 0x227   :  { %1238 = vmatpush.msra.mxu3 %v3995_v1 }
 0x229   :  { %1239 = vmatpush.msra.mxu3 %v4001_v2 }
 0x22b   :  { %1240 = vmatpush.msra.mxu3 %v4023_v7 }
 0x22d   :  { %1241 = vmatpush.msra.mxu3 %v4036_v9 }
 0x22f   :  { %1242 = vmatpush.msra.mxu3 %v4051_v12 }
 0x231   :  { %1243 = vmatpush.msra.mxu3 %v4064_v14 }
 0x233   :  { %1244 = vmatpush.msra.mxu3 %v4076_v16 }
 0x287   :  { %v339_v8 = vpop.f32.mrf.mxu3  ;;  %v319_v41 = vpop.f32.mrf.mxu2 }
 0x288   :  { %v4438_v11 = vadd.f32 %v339_v8, %v4435_v6  ;;  %v320_v25 = vadd.f32 %v319_v41, %v4448_v26 }
 0x28a   :  { %3594 = vtanh.f32 %v4438_v11  ;;  %v3467_v39 = vmul.f32 -1.442695, %v320_v25 }
 0x28f   :  { %v438_v17 = vpop.f32.mrf.mxu3  ;;  %v418_v44 = vpop.f32.mrf.mxu2 }
 0x290   :  { %v3595_v18 = vpop.eup %3594  ;;  %v4442_v19 = vadd.f32 %v438_v17, %v124_v15  ;;  %v441_v45 = vadd.f32 %v418_v44, %v83_v43 }
 0x291   :  { %383 = vrot.lane.b32.xlu1 %v3595_v18, %s3955_s8 }
 0x292   :  { %3596 = vtanh.f32 %v4442_v19  ;;  %v3471_v46 = vmul.f32 -1.442695, %v441_v45 }
 0x294   :  { %3598 = vpow2.f32 %v3471_v46 }
 0x298   :  { %v3597_v36 = vpop.eup %3596 }
 0x299   :  { %484 = vrot.lane.b32.xlu2 %v3597_v36, %s3955_s8 }
 0x29a   :  { %v3599_v28 = vpop.eup %3598 }
 0x29b   :  { %v449_v38 = vadd.f32 1.0, %v3599_v28 }
 0x29d   :  { %3600 = vrcp.f32 %v449_v38  ;;  %v462_v43 = vand.u32 2147483648, %v449_v38  ;;  %vm456_vm11 = vweird.f32 %v449_v38  ;;  %v460_v5 = vand.u32 2147483647, %v449_v38 }
 0x29e   :  { %3602 = vpow2.f32 %v3467_v39 }
 0x29f   :  { %v463_v45 = vor.u32 1.1754944e-38, %v462_v43  ;;  %vm461_vm13 = vcmp.eq.f32.partialorder %v460_v5, 8.507059e+37 }
 0x2a3   :  { %v3601_v40 = vpop.eup %3600 }
 0x2a4   :  { %v3603_v8 = vpop.eup %3602  ;;  %v452_v13 = vmul.f32 %v3601_v40, %v449_v38  ;;  %vm457_vm10 = vweird.f32 %v3601_v40 }
 0x2a5   :  { %v348_v15 = vadd.f32 1.0, %v3603_v8  ;;  %vm458_vm12 = vmor %vm456_vm11, %vm457_vm10 }
 0x2a6   :  { %v453_v17 = vsub.f32 1.0, %v452_v13 }
 0x2a7   :  { %3604 = vrcp.f32 %v348_v15  ;;  %vm355_vm15 = vweird.f32 %v348_v15 }
 0x2a8   :  { %v454_v18 = vmul.f32 %v3601_v40, %v453_v17  ;;  %v361_v17 = vand.u32 2147483648, %v348_v15 }
 0x2aa   :  { %v455_v36 = vadd.f32 %v3601_v40, %v454_v18  ;;  %v359_v18 = vand.u32 2147483647, %v348_v15  ;;  %v362_v38 = vor.u32 1.1754944e-38, %v361_v17 }
 0x2ac   :  { %v459_v44 = vsel %vm458_vm12, %v3601_v40, %v455_v36  ;;  %vm360_vm2 = vcmp.eq.f32.partialorder %v359_v18, 8.507059e+37 }
 0x2ad   :  { %v3605_v42 = vpop.eup %3604  ;;  %v464_v28 = vsel %vm461_vm13, %v463_v45, %v459_v44 }
 0x2ae   :  { %v351_v41 = vmul.f32 %v3605_v42, %v348_v15  ;;  %vm356_vm14 = vweird.f32 %v3605_v42  ;;  %v482_v45 = vmul.f32 %v464_v28, %v4288_v31  ;;  %v22_v31 = vld [vmem:[%s6017_s1 + $0x10] sm:$0xff] }
 0x2af   :  { %vm357_vm1 = vmor %vm355_vm15, %vm356_vm14  ;;  %3448 = vmatmul.msk.f32.gmra.mxu0 %vm37_vm0, %v22_v31  ;;  %3456 = vmatmul.msk.f32.gmra.mxu1 %vm37_vm0, %v22_v31 }
 0x2b0   :  { %v352_v39 = vsub.f32 1.0, %v351_v41 }
 0x2b2   :  { %v353_v8 = vmul.f32 %v3605_v42, %v352_v39 }
 0x2b4   :  { %v354_v13 = vadd.f32 %v3605_v42, %v353_v8 }
 0x2b6   :  { %v358_v26 = vsel %vm357_vm1, %v3605_v42, %v354_v13  ;;  %v3472_v42 = vmul.f32 -1.442695, %v4442_v19  ;;  %v3468_v13 = vmul.f32 -1.442695, %v4438_v11 }
 0x2b7   :  { %v363_v36 = vsel %vm360_vm2, %v362_v38, %v358_v26 }
 0x2b8   :  { %v381_v5 = vmul.f32 0.0, %v363_v36 }
 0x2f3   :  { %v485_v46 = vpop.permute.xlu2 %484 }
 0x2f4   :  { %v487_v25 = vmul.f32 %v485_v46, %v464_v28 }
 0x2f6   :  { %489 = vrot.lane.b32.xlu0 %v487_v25, %s3955_s8 }
 0x303   :  { %v384_v40 = vpop.permute.xlu1 %383 }
 0x304   :  { %v386_v43 = vmul.f32 %v384_v40, %v363_v36  ;;  %v23_v40 = vld [vmem:[%s6017_s1 + $0x18] sm:$0xff] }
 0x305   :  { %3449 = vmatmul.msk.f32.gmra.mxu0 %vm37_vm0, %v23_v40  ;;  %3457 = vmatmul.msk.f32.gmra.mxu1 %vm37_vm0, %v23_v40 }
 0x306   :  { %388 = vrot.lane.b32.xlu2 %v386_v43, %s3955_s8  ;;  %v24_v43 = vld [vmem:[%s6017_s1 + $0x20] sm:$0xff] }
 0x30d   :  { %3450 = vmatmul.msk.f32.gmra.mxu0 %vm37_vm0, %v24_v43  ;;  %3458 = vmatmul.msk.f32.gmra.mxu1 %vm37_vm0, %v24_v43  ;;  %v6060_v43 = vld [vmem:[#allocation5_spill] sm:$0xff] }
 0x360   :  { %v389_v44 = vpop.permute.xlu2 %388 }
 0x361   :  { %v4453_v41 = vadd.f32 %v389_v44, %v381_v5 }
 0x363   :  { %3606 = vtanh.f32 %v4453_v41 }
 0x368   :  { %v490_v46 = vpop.permute.xlu0 %489 }
 0x369   :  { %v3607_v25 = vpop.eup %3606  ;;  %v4457_v15 = vadd.f32 %v490_v46, %v482_v45 }
 0x36a   :  { %394 = vrot.lane.b32.xlu1 %v3607_v25, %s3955_s8 }
 0x36b   :  { %3608 = vtanh.f32 %v4457_v15 }
 0x36c   :  { %3610 = vpow2.f32 %v3472_v42 }
 0x371   :  { %v3609_v26 = vpop.eup %3608 }
 0x372   :  { %495 = vrot.lane.b32.xlu2 %v3609_v26, %s3955_s8  ;;  %v3611_v39 = vpop.eup %3610 }
 0x373   :  { %v450_v8 = vadd.f32 1.0, %v3611_v39 }
 0x375   :  { %3612 = vrcp.f32 %v450_v8  ;;  %v477_v44 = vand.u32 2147483648, %v450_v8  ;;  %vm471_vm4 = vweird.f32 %v450_v8  ;;  %v475_v45 = vand.u32 2147483647, %v450_v8 }
 0x376   :  { %3614 = vpow2.f32 %v3468_v13 }
 0x377   :  { %v478_v26 = vor.u32 1.1754944e-38, %v477_v44  ;;  %vm476_vm6 = vcmp.eq.f32.partialorder %v475_v45, 8.507059e+37 }
 0x37b   :  { %v3613_v28 = vpop.eup %3612 }
 0x37c   :  { %v3615_v17 = vpop.eup %3614  ;;  %v467_v18 = vmul.f32 %v3613_v28, %v450_v8  ;;  %vm472_vm3 = vweird.f32 %v3613_v28 }
 0x37d   :  { %v349_v38 = vadd.f32 1.0, %v3615_v17  ;;  %vm473_vm5 = vmor %vm471_vm4, %vm472_vm3  ;;  %v25_v17 = vld [vmem:[%s6017_s1 + $0x28] sm:$0xff] }
 0x37e   :  { %v468_v19 = vsub.f32 1.0, %v467_v18  ;;  %3451 = vmatmul.msk.f32.gmra.mxu0 %vm37_vm0, %v25_v17  ;;  %3459 = vmatmul.msk.f32.gmra.mxu1 %vm37_vm0, %v25_v17  ;;  %v26_v18 = vld [vmem:[%s6017_s1 + $0x30] sm:$0xff] }
 0x37f   :  { %3616 = vrcp.f32 %v349_v38  ;;  %vm370_vm8 = vweird.f32 %v349_v38  ;;  %v374_v40 = vand.u32 2147483647, %v349_v38 }
 0x380   :  { %v469_v11 = vmul.f32 %v3613_v28, %v468_v19  ;;  %v376_v19 = vand.u32 2147483648, %v349_v38 }
 0x381   :  { %vm375_vm11 = vcmp.eq.f32.partialorder %v374_v40, 8.507059e+37 }
 0x382   :  { %v470_v36 = vadd.f32 %v3613_v28, %v469_v11 }
 0x384   :  { %v474_v46 = vsel %vm473_vm5, %v3613_v28, %v470_v36 }
 0x385   :  { %v3617_v5 = vpop.eup %3616  ;;  %v479_v42 = vsel %vm476_vm6, %v478_v26, %v474_v46 }
 0x386   :  { %v366_v25 = vmul.f32 %v3617_v5, %v349_v38  ;;  %vm371_vm7 = vweird.f32 %v3617_v5  ;;  %3452 = vmatmul.msk.f32.gmra.mxu0 %vm37_vm0, %v26_v18  ;;  %3460 = vmatmul.msk.f32.gmra.mxu1 %vm37_vm0, %v26_v18  ;;  %v27_v38 = vld [vmem:[%s6017_s1 + $0x38] sm:$0xff] }
 0x387   :  { %vm372_vm10 = vmor %vm370_vm8, %vm371_vm7 }
 0x388   :  { %v367_v31 = vsub.f32 1.0, %v366_v25 }
 0x38a   :  { %v368_v8 = vmul.f32 %v3617_v5, %v367_v31 }
 0x38c   :  { %v369_v28 = vadd.f32 %v3617_v5, %v368_v8 }
 0x38e   :  { %3453 = vmatmul.msk.f32.gmra.mxu0 %vm37_vm0, %v27_v38  ;;  %3461 = vmatmul.msk.f32.gmra.mxu1 %vm37_vm0, %v27_v38 }
 0x3cc   :  { %v496_v39 = vpop.permute.xlu2 %495 }
 0x3cd   :  { %v498_v13 = vmul.f32 %v496_v39, %v479_v42 }
 0x3cf   :  { %3475 = vmatmul.msk.f32.vlgmr.msrb.gmra.mxu2 %vm199_vm9, %v498_v13 }
 0x3d0   :  { %908 = vmatpush.msrb.mxu2 %v4116_v47  ;;  %v373_v47 = vsel %vm372_vm10, %v3617_v5, %v369_v28 }
 0x3d2   :  { %909 = vmatpush.msrb.mxu2 %v4126_v49  ;;  %v377_v49 = vor.u32 1.1754944e-38, %v376_v19 }
 0x3d4   :  { %910 = vmatpush.msrb.mxu2 %v4138_v51  ;;  %v378_v11 = vsel %vm375_vm11, %v377_v49, %v373_v47 }
 0x3d6   :  { %911 = vmatpush.msrb.mxu2 %v4152_v53  ;;  %v6054_v53 = vld [vmem:[#allocation3_spill] sm:$0xff] }
 0x3d8   :  { %912 = vmatpush.msrb.mxu2 %v4166_v55 }
 0x3da   :  { %913 = vmatpush.msrb.mxu2 %v4180_v57 }
 0x3dc   :  { %v395_v36 = vpop.permute.xlu1 %394  ;;  %914 = vmatpush.msrb.mxu2 %v4194_v59 }
 0x3dd   :  { %v397_v51 = vmul.f32 %v395_v36, %v378_v11 }
 0x3de   :  { %915 = vmatpush.msrb.mxu2 %v4208_v61 }
 0x3df   :  { %500 = vrot.lane.b32.xlu0 %v397_v51, %s3955_s8 }
 0x3e0   :  { %916 = vmatpush.msrb.mxu2 %v4222_v63 }
 0x3e2   :  { %917 = vmatpush.msrb.mxu2 %v4236_v4 }
 0x3e4   :  { %918 = vmatpush.msrb.mxu2 %v4250_v20 }
 0x3e6   :  { %919 = vmatpush.msrb.mxu2 %v4264_v23 }
 0x3e8   :  { %920 = vmatpush.msrb.mxu2 %v4279_v29 }
 0x3ea   :  { %921 = vmatpush.msrb.mxu2 %v4295_v32 }
 0x3ec   :  { %922 = vmatpush.msrb.mxu2 %v4310_v34 }
 0x3ee   :  { %923 = vmatpush.msrb.mxu2 %v6054_v53 }
 0x451   :  { %v501_v55 = vpop.permute.xlu0 %500 }
 0x452   :  { %v503_v57 = vsel %vm199_vm9, %v498_v13, %v501_v55 }
 0x453   :  { %520 = vmatmul.f32.vlgmr.msrb.gmra.mxu0 %v503_v57  ;;  %540 = vmatmul.f32.vlgmr.msrb.gmra.mxu1 %v503_v57 }
 0x454   :  { %726 = vmatpush.msrb.mxu1 %v4121_v48  ;;  %833 = vmatpush.msrb.mxu0 %v3990_v0  ;;  %v126_v48 = vpop.f32.mrf.mxu1 }
 0x456   :  { %727 = vmatpush.msrb.mxu1 %v4133_v50  ;;  %834 = vmatpush.msrb.mxu0 %v3995_v1 }
 0x458   :  { %728 = vmatpush.msrb.mxu1 %v4143_v52  ;;  %835 = vmatpush.msrb.mxu0 %v4001_v2 }
 0x45a   :  { %729 = vmatpush.msrb.mxu1 %v4157_v54  ;;  %836 = vmatpush.msrb.mxu0 %v4023_v7 }
 0x45b   :  { %3476 = vmatmul.msk.f32.vlgmr.msra.gmra.mxu1 %vm199_vm9, %v498_v13 }
 0x45c   :  { %730 = vmatpush.msrb.mxu1 %v4171_v56  ;;  %837 = vmatpush.msrb.mxu0 %v4036_v9  ;;  %v4546_v50 = vpop.f32.mrf.mxu1  ;;  %v85_v56 = vpop.f32.mrf.mxu0 }
 0x45d   :  { %v86_v63 = vadd.f32 %v85_v56, %v4106_v27 }
 0x45e   :  { %731 = vmatpush.msrb.mxu1 %v4185_v58  ;;  %838 = vmatpush.msrb.mxu0 %v4051_v12 }
 0x460   :  { %732 = vmatpush.msrb.mxu1 %v4199_v60  ;;  %839 = vmatpush.msrb.mxu0 %v4064_v14 }
 0x462   :  { %733 = vmatpush.msrb.mxu1 %v4213_v62  ;;  %840 = vmatpush.msrb.mxu0 %v4076_v16 }
 0x464   :  { %734 = vmatpush.msrb.mxu1 %v4227_v3  ;;  %v4548_v52 = vpop.f32.mrf.mxu1  ;;  %v4566_v59 = vpop.f32.mrf.mxu0 }
 0x465   :  { %v620_v3 = vpop.f32.mrf.mxu2 }
 0x466   :  { %735 = vmatpush.msrb.mxu1 %v4241_v10  ;;  %v643_v4 = vadd.f32 %v620_v3, %v86_v63 }
 0x468   :  { %736 = vmatpush.msrb.mxu1 %v4255_v22  ;;  %v3477_v20 = vmul.f32 -1.442695, %v643_v4 }
 0x46a   :  { %737 = vmatpush.msrb.mxu1 %v4269_v24 }
 0x46c   :  { %738 = vmatpush.msrb.mxu1 %v4284_v30  ;;  %v4568_v60 = vpop.f32.mrf.mxu0 }
 0x46e   :  { %739 = vmatpush.msrb.mxu1 %v4300_v33 }
 0x470   :  { %740 = vmatpush.msrb.mxu1 %v4315_v35 }
 0x472   :  { %741 = vmatpush.msrb.mxu1 %v4329_v37 }
 0x474   :  { %1035 = vmatpush.msra.mxu1 %v3990_v0  ;;  %v4550_v0 = vpop.f32.mrf.mxu1  ;;  %v4570_v61 = vpop.f32.mrf.mxu0 }
 0x475   :  { %6057 = vst [vmem:[#allocation7_spill] sm:$0xff] %v4570_v61 }
 0x476   :  { %1036 = vmatpush.msra.mxu1 %v3995_v1 }
 0x478   :  { %1037 = vmatpush.msra.mxu1 %v4001_v2 }
 0x47a   :  { %1038 = vmatpush.msra.mxu1 %v4023_v7 }
 0x47c   :  { %1039 = vmatpush.msra.mxu1 %v4036_v9  ;;  %v4552_v1 = vpop.f32.mrf.mxu1  ;;  %v4572_v62 = vpop.f32.mrf.mxu0 }
 0x47d   :  { %6055 = vst [vmem:[#allocation3_spill] sm:$0xff] %v4552_v1  ;;  %v92_v1 = vadd.f32 %v4568_v60, %v4106_v27 }
 0x47e   :  { %1040 = vmatpush.msra.mxu1 %v4051_v12  ;;  %v127_v12 = vadd.f32 %v126_v48, %v4099_v21  ;;  %6058 = vst [vmem:[#allocation8_spill] sm:$0xff] %v4572_v62 }
 0x480   :  { %1041 = vmatpush.msra.mxu1 %v4064_v14 }
 0x482   :  { %1042 = vmatpush.msra.mxu1 %v4076_v16 }
 0x484   :  { %v4554_v2 = vpop.f32.mrf.mxu1  ;;  %v4575_v10 = vpop.f32.mrf.mxu0 }
 0x485   :  { %6056 = vst [vmem:[#allocation6_spill] sm:$0xff] %v4554_v2 }
 0x486   :  { %6059 = vst [vmem:[#allocation9_spill] sm:$0xff] %v4575_v10 }
 0x4d0   :  { %v541_v7 = vpop.f32.mrf.mxu1  ;;  %v521_v23 = vpop.f32.mrf.mxu0 }
 0x4d1   :  { %v4557_v9 = vadd.f32 %v541_v7, %v4435_v6  ;;  %v522_v5 = vadd.f32 %v521_v23, %v6060_v43 }
 0x4d3   :  { %3618 = vtanh.f32 %v4557_v9  ;;  %v3473_v45 = vmul.f32 -1.442695, %v522_v5 }
 0x4d8   :  { %v640_v14 = vpop.f32.mrf.mxu1 }
 0x4d9   :  { %v3619_v16 = vpop.eup %3618  ;;  %v4561_v54 = vadd.f32 %v640_v14, %v127_v12 }
 0x4da   :  { %585 = vrot.lane.b32.xlu1 %v3619_v16, %s3955_s8 }
 0x4db   :  { %3620 = vtanh.f32 %v4561_v54  ;;  %v3478_v5 = vmul.f32 -1.442695, %v4561_v54 }
 0x4dc   :  { %3622 = vpow2.f32 %v3477_v20 }
 0x4e1   :  { %v3621_v58 = vpop.eup %3620 }
 0x4e2   :  { %686 = vrot.lane.b32.xlu2 %v3621_v58, %s3955_s8  ;;  %v3623_v29 = vpop.eup %3622 }
 0x4e3   :  { %v651_v44 = vadd.f32 1.0, %v3623_v29 }
 0x4e5   :  { %3624 = vrcp.f32 %v651_v44  ;;  %v664_v8 = vand.u32 2147483648, %v651_v44  ;;  %vm658_vm13 = vweird.f32 %v651_v44  ;;  %v662_v28 = vand.u32 2147483647, %v651_v44 }
 0x4e6   :  { %3626 = vpow2.f32 %v3473_v45 }
 0x4e7   :  { %v665_v40 = vor.u32 1.1754944e-38, %v664_v8  ;;  %vm663_vm15 = vcmp.eq.f32.partialorder %v662_v28, 8.507059e+37 }
 0x4eb   :  { %v3625_v46 = vpop.eup %3624 }
 0x4ec   :  { %v3627_v25 = vpop.eup %3626  ;;  %v654_v26 = vmul.f32 %v3625_v46, %v651_v44  ;;  %vm659_vm12 = vweird.f32 %v3625_v46 }
 0x4ed   :  { %v550_v42 = vadd.f32 1.0, %v3627_v25  ;;  %vm660_vm14 = vmor %vm658_vm13, %vm659_vm12 }
 0x4ee   :  { %v655_v39 = vsub.f32 1.0, %v654_v26 }
 0x4ef   :  { %3628 = vrcp.f32 %v550_v42  ;;  %v563_v55 = vand.u32 2147483648, %v550_v42  ;;  %vm557_vm2 = vweird.f32 %v550_v42  ;;  %v561_v57 = vand.u32 2147483647, %v550_v42 }
 0x4f0   :  { %v656_v13 = vmul.f32 %v3625_v46, %v655_v39 }
 0x4f1   :  { %v564_v7 = vor.u32 1.1754944e-38, %v563_v55  ;;  %vm562_vm4 = vcmp.eq.f32.partialorder %v561_v57, 8.507059e+37 }
 0x4f2   :  { %v657_v31 = vadd.f32 %v3625_v46, %v656_v13 }
 0x4f4   :  { %v661_v18 = vsel %vm660_vm14, %v3625_v46, %v657_v31 }
 0x4f5   :  { %v3629_v17 = vpop.eup %3628  ;;  %v666_v47 = vsel %vm663_vm15, %v665_v40, %v661_v18 }
 0x4f6   :  { %v553_v19 = vmul.f32 %v3629_v17, %v550_v42  ;;  %vm558_vm1 = vweird.f32 %v3629_v17  ;;  %v684_v56 = vmul.f32 %v666_v47, %v4457_v15  ;;  %v3474_v15 = vmul.f32 -1.442695, %v4557_v9 }
 0x4f7   :  { %vm559_vm3 = vmor %vm557_vm2, %vm558_vm1 }
 0x4f8   :  { %v554_v36 = vsub.f32 1.0, %v553_v19 }
 0x4fa   :  { %v555_v51 = vmul.f32 %v3629_v17, %v554_v36 }
 0x4fc   :  { %v556_v38 = vadd.f32 %v3629_v17, %v555_v51 }
 0x4fe   :  { %v560_v48 = vsel %vm559_vm3, %v3629_v17, %v556_v38 }
 0x4ff   :  { %v565_v14 = vsel %vm562_vm4, %v564_v7, %v560_v48 }
 0x500   :  { %v583_v4 = vmul.f32 %v565_v14, %v4453_v41 }
 0x53c   :  { %v687_v49 = vpop.permute.xlu2 %686 }
 0x53d   :  { %v689_v11 = vmul.f32 %v687_v49, %v666_v47 }
 0x53f   :  { %691 = vrot.lane.b32.xlu1 %v689_v11, %s3955_s8 }
 0x54c   :  { %v586_v12 = vpop.permute.xlu1 %585 }
 0x54d   :  { %v588_v16 = vmul.f32 %v586_v12, %v565_v14  ;;  %v4597_v12 = vld [vmem:[%s6016_s4 + $0x80] sm:$0xff]  ;;  %v4603_v14 = vld [vmem:[%s6016_s4 + $0x70] sm:$0xff] }
 0x54f   :  { %590 = vrot.lane.b32.xlu0 %v588_v16, %s3955_s8  ;;  %v4609_v16 = vld [vmem:[%s6016_s4 + $0x60] sm:$0xff] }
 0x5b1   :  { %v692_v58 = vpop.permute.xlu1 %691 }
 0x5b2   :  { %v4581_v63 = vadd.f32 %v692_v58, %v684_v56  ;;  %v4615_v56 = vld [vmem:[%s6016_s4 + $0x50] sm:$0xff]  ;;  %v4621_v58 = vld [vmem:[%s6016_s4 + $0x40] sm:$0xff] }
 0x5b4   :  { %3630 = vtanh.f32 %v4581_v63 }
 0x5ba   :  { %v3631_v3 = vpop.eup %3630 }
 0x5bb   :  { %697 = vrot.lane.b32.xlu0 %v3631_v3, %s3955_s8  ;;  %v4627_v3 = vld [vmem:[%s6016_s4 + $0x30] sm:$0xff] }
 0x5c1   :  { %v591_v20 = vpop.permute.xlu0 %590 }
 0x5c2   :  { %v4586_v23 = vadd.f32 %v591_v20, %v583_v4  ;;  %v4633_v4 = vld [vmem:[%s6016_s4 + $0x20] sm:$0xff]  ;;  %v4639_v20 = vld [vmem:[%s6016_s4 + $0x10] sm:$0xff] }
 0x5c4   :  { %3632 = vtanh.f32 %v4586_v23 }
 0x5c5   :  { %3634 = vpow2.f32 %v3474_v15 }
 0x5c6   :  { %3636 = vpow2.f32 %v3478_v5  ;;  %v4647_v5 = vld [vmem:[%s6016_s4 + $0x198] sm:$0xff] }
 0x5ca   :  { %v3633_v29 = vpop.eup %3632 }
 0x5cb   :  { %596 = vrot.lane.b32.xlu2 %v3633_v29, %s3955_s8  ;;  %v3635_v44 = vpop.eup %3634 }
 0x5cc   :  { %v551_v45 = vadd.f32 1.0, %v3635_v44  ;;  %v3637_v46 = vpop.eup %3636  ;;  %v4654_v44 = vld [vmem:[%s6016_s4 + $0x188] sm:$0xff] }
 0x5cd   :  { %v652_v25 = vadd.f32 1.0, %v3637_v46  ;;  %v4668_v46 = vld [vmem:[%s6016_s4 + $0x168] sm:$0xff] }
 0x5ce   :  { %3638 = vrcp.f32 %v551_v45  ;;  %v578_v9 = vand.u32 2147483648, %v551_v45  ;;  %vm572_vm6 = vweird.f32 %v551_v45  ;;  %v576_v28 = vand.u32 2147483647, %v551_v45 }
 0x5cf   :  { %3640 = vrcp.f32 %v652_v25  ;;  %v679_v36 = vand.u32 2147483648, %v652_v25  ;;  %vm673_vm11 = vweird.f32 %v652_v25  ;;  %v677_v51 = vand.u32 2147483647, %v652_v25 }
 0x5d0   :  { %v579_v19 = vor.u32 1.1754944e-38, %v578_v9  ;;  %vm577_vm8 = vcmp.eq.f32.partialorder %v576_v28, 8.507059e+37  ;;  %v4734_v9 = vld [vmem:[%s6016_s4 + $0x160] sm:$0xff]  ;;  %v4741_v28 = vld [vmem:[%s6016_s4 + $0x150] sm:$0xff] }
 0x5d1   :  { %v680_v55 = vor.u32 1.1754944e-38, %v679_v36  ;;  %vm678_vm13 = vcmp.eq.f32.partialorder %v677_v51, 8.507059e+37 }
 0x5d4   :  { %v3639_v41 = vpop.eup %3638 }
 0x5d5   :  { %v568_v26 = vmul.f32 %v3639_v41, %v551_v45  ;;  %v3641_v39 = vpop.eup %3640  ;;  %vm573_vm5 = vweird.f32 %v3639_v41  ;;  %v4661_v45 = vld [vmem:[%s6016_s4 + $0x178] sm:$0xff] }
 0x5d6   :  { %v669_v31 = vmul.f32 %v3641_v39, %v652_v25  ;;  %vm574_vm7 = vmor %vm572_vm6, %vm573_vm5  ;;  %vm674_vm10 = vweird.f32 %v3641_v39  ;;  %v4676_v25 = vld [vmem:[%s6016_s4 + $0x158] sm:$0xff] }
 0x5d7   :  { %v569_v42 = vsub.f32 1.0, %v568_v26  ;;  %vm675_vm12 = vmor %vm673_vm11, %vm674_vm10  ;;  %v4690_v26 = vld [vmem:[%s6016_s4 + $0x138] sm:$0xff] }
 0x5d8   :  { %v670_v8 = vsub.f32 1.0, %v669_v31  ;;  %v4715_v31 = vld [vmem:[%s6016_s4 + $0x180] sm:$0xff] }
 0x5d9   :  { %v570_v13 = vmul.f32 %v3639_v41, %v569_v42  ;;  %v4697_v42 = vld [vmem:[%s6016_s4 + $0x128] sm:$0xff] }
 0x5da   :  { %v671_v18 = vmul.f32 %v3641_v39, %v670_v8  ;;  %v4727_v8 = vld [vmem:[%s6016_s4 + $0x170] sm:$0xff] }
 0x5db   :  { %v571_v17 = vadd.f32 %v3639_v41, %v570_v13  ;;  %v4709_v13 = vld [vmem:[%s6016_s4 + $0x118] sm:$0xff] }
 0x5dc   :  { %v672_v11 = vadd.f32 %v3641_v39, %v671_v18  ;;  %v4793_v18 = vld [vmem:[%s6016_s4 + $0xd0] sm:$0xff] }
 0x5dd   :  { %v575_v54 = vsel %vm574_vm7, %v3639_v41, %v571_v17  ;;  %v4683_v41 = vld [vmem:[%s6016_s4 + $0x148] sm:$0xff]  ;;  %6061 = vst [vmem:[#allocation5_spill] sm:$0xff] %v4793_v18 }
 0x5de   :  { %v580_v40 = vsel %vm577_vm8, %v579_v19, %v575_v54  ;;  %v676_v38 = vsel %vm675_vm12, %v3641_v39, %v672_v11  ;;  %v4703_v39 = vld [vmem:[%s6016_s4 + $0x190] sm:$0xff]  ;;  %v4721_v17 = vld [vmem:[%s6016_s4 + $0x108] sm:$0xff] }
 0x5df   :  { %v681_v57 = vsel %vm678_vm13, %v680_v55, %v676_v38  ;;  %v4781_v54 = vld [vmem:[%s6016_s4 + $0xf0] sm:$0xff] }
 0x625   :  { %v597_v47 = vpop.permute.xlu2 %596 }
 0x626   :  { %v599_v49 = vmul.f32 %v597_v47, %v580_v40 }
 0x628   :  { %702 = vrot.lane.b32.xlu1 %v599_v49, %s3955_s8  ;;  %v130_v49 = vadd.f32 %v4546_v50, %v4099_v21 }
 0x62d   :  { %v698_v48 = vpop.permute.xlu0 %697 }
 0x62e   :  { %v700_v7 = vmul.f32 %v698_v48, %v681_v57  ;;  %v89_v48 = vadd.f32 %v4566_v59, %v4106_v27 }
 0x630   :  { %3481 = vmatmul.msk.f32.vlgmr.msra.gmra.mxu2 %vm199_vm9, %v700_v7 }
 0x631   :  { %1217 = vmatpush.msra.mxu2 %v4597_v12 }
 0x633   :  { %1218 = vmatpush.msra.mxu2 %v4603_v14 }
 0x635   :  { %1219 = vmatpush.msra.mxu2 %v4609_v16 }
 0x637   :  { %1220 = vmatpush.msra.mxu2 %v4615_v56 }
 0x639   :  { %1221 = vmatpush.msra.mxu2 %v4621_v58 }
 0x63b   :  { %1222 = vmatpush.msra.mxu2 %v4627_v3 }
 0x63d   :  { %1223 = vmatpush.msra.mxu2 %v4633_v4 }
 0x63f   :  { %1224 = vmatpush.msra.mxu2 %v4639_v20 }
 0x69a   :  { %v703_v29 = vpop.permute.xlu1 %702 }
 0x69b   :  { %v705_v15 = vsel %vm199_vm9, %v700_v7, %v703_v29 }
 0x69c   :  { %722 = vmatmul.f32.vlgmr.msra.gmra.mxu0 %v705_v15  ;;  %742 = vmatmul.f32.vlgmr.msrb.gmra.mxu1 %v705_v15 }
 0x69d   :  { %1015 = vmatpush.msra.mxu0 %v4597_v12  ;;  %1130 = vmatpush.msrb.mxu1 %v4647_v5 }
 0x69f   :  { %1016 = vmatpush.msra.mxu0 %v4603_v14  ;;  %1131 = vmatpush.msrb.mxu1 %v4654_v44 }
 0x6a1   :  { %1017 = vmatpush.msra.mxu0 %v4609_v16  ;;  %1132 = vmatpush.msrb.mxu1 %v4661_v45 }
 0x6a3   :  { %1018 = vmatpush.msra.mxu0 %v4615_v56  ;;  %1133 = vmatpush.msrb.mxu1 %v4668_v46 }
 0x6a4   :  { %3482 = vmatmul.msk.f32.vlgmr.msrb.gmra.mxu0 %vm199_vm9, %v700_v7 }
 0x6a5   :  { %1019 = vmatpush.msra.mxu0 %v4621_v58  ;;  %1134 = vmatpush.msrb.mxu1 %v4676_v25 }
 0x6a7   :  { %1020 = vmatpush.msra.mxu0 %v4627_v3  ;;  %1135 = vmatpush.msrb.mxu1 %v4683_v41 }
 0x6a9   :  { %1021 = vmatpush.msra.mxu0 %v4633_v4  ;;  %1136 = vmatpush.msrb.mxu1 %v4690_v26 }
 0x6ab   :  { %1022 = vmatpush.msra.mxu0 %v4639_v20  ;;  %1137 = vmatpush.msrb.mxu1 %v4697_v42 }
 0x6ad   :  { %1110 = vmatpush.msrb.mxu0 %v4703_v39  ;;  %1138 = vmatpush.msrb.mxu1 %v4709_v13 }
 0x6af   :  { %1111 = vmatpush.msrb.mxu0 %v4715_v31  ;;  %1139 = vmatpush.msrb.mxu1 %v4721_v17 }
 0x6b1   :  { %1112 = vmatpush.msrb.mxu0 %v4727_v8  ;;  %1140 = vmatpush.msrb.mxu1 %v4255_v22  ;;  %v4748_v22 = vld [vmem:[%s6016_s4 + $0x140] sm:$0xff] }
 0x6b3   :  { %1113 = vmatpush.msrb.mxu0 %v4734_v9  ;;  %1141 = vmatpush.msrb.mxu1 %v4269_v24  ;;  %v4755_v24 = vld [vmem:[%s6016_s4 + $0x130] sm:$0xff]  ;;  %v822_v50 = vpop.f32.mrf.mxu2 }
 0x6b4   :  { %v845_v29 = vadd.f32 %v822_v50, %v89_v48 }
 0x6b5   :  { %1114 = vmatpush.msrb.mxu0 %v4741_v28  ;;  %1142 = vmatpush.msrb.mxu1 %v4284_v30  ;;  %v4762_v30 = vld [vmem:[%s6016_s4 + $0x120] sm:$0xff] }
 0x6b7   :  { %1115 = vmatpush.msrb.mxu0 %v4748_v22  ;;  %1143 = vmatpush.msrb.mxu1 %v4300_v33  ;;  %v4769_v33 = vld [vmem:[%s6016_s4 + $0x110] sm:$0xff] }
 0x6b9   :  { %1116 = vmatpush.msrb.mxu0 %v4755_v24  ;;  %1144 = vmatpush.msrb.mxu1 %v4315_v35  ;;  %v4775_v35 = vld [vmem:[%s6016_s4 + $0x100] sm:$0xff] }
 0x6bb   :  { %1117 = vmatpush.msrb.mxu0 %v4762_v30  ;;  %1145 = vmatpush.msrb.mxu1 %v4329_v37  ;;  %v4787_v37 = vld [vmem:[%s6016_s4 + $0xe0] sm:$0xff] }
 0x6bd   :  { %1118 = vmatpush.msrb.mxu0 %v4769_v33 }
 0x6bf   :  { %1119 = vmatpush.msrb.mxu0 %v4775_v35 }
 0x6c1   :  { %1120 = vmatpush.msrb.mxu0 %v4781_v54 }
 0x6c3   :  { %1121 = vmatpush.msrb.mxu0 %v4787_v37 }
 0x6c5   :  { %1122 = vmatpush.msrb.mxu0 %v4793_v18 }
 0x6c7   :  { %1123 = vmatpush.msrb.mxu0 %v4295_v32 }
 0x6c9   :  { %1124 = vmatpush.msrb.mxu0 %v4310_v34 }
 0x6cb   :  { %1125 = vmatpush.msrb.mxu0 %v6054_v53 }
 0x719   :  { %v723_v19 = vpop.f32.mrf.mxu0  ;;  %v743_v40 = vpop.f32.mrf.mxu1 }
 0x71a   :  { %v4800_v47 = vadd.f32 %v743_v40, %v4435_v6  ;;  %v724_v34 = vadd.f32 %v723_v19, %v6060_v43  ;;  %v3483_v40 = vmul.f32 -1.442695, %v845_v29 }
 0x71c   :  { %3642 = vtanh.f32 %v4800_v47  ;;  %v3479_v53 = vmul.f32 -1.442695, %v724_v34 }
 0x721   :  { %v842_v11 = vpop.f32.mrf.mxu0 }
 0x722   :  { %v3643_v36 = vpop.eup %3642  ;;  %v4805_v51 = vadd.f32 %v842_v11, %v130_v49 }
 0x723   :  { %787 = vrot.lane.b32.xlu2 %v3643_v36, %s3955_s8 }
 0x724   :  { %3644 = vtanh.f32 %v4805_v51 }
 0x725   :  { %3646 = vpow2.f32 %v3479_v53 }
 0x72a   :  { %v3645_v32 = vpop.eup %3644 }
 0x72b   :  { %888 = vrot.lane.b32.xlu0 %v3645_v32, %s3955_s8  ;;  %v3647_v38 = vpop.eup %3646 }
 0x72c   :  { %v752_v55 = vadd.f32 1.0, %v3647_v38 }
 0x72e   :  { %3648 = vrcp.f32 %v752_v55  ;;  %v765_v36 = vand.u32 2147483648, %v752_v55  ;;  %vm759_vm15 = vweird.f32 %v752_v55  ;;  %v763_v19 = vand.u32 2147483647, %v752_v55 }
 0x72f   :  { %3650 = vpow2.f32 %v3483_v40 }
 0x730   :  { %v766_v53 = vor.u32 1.1754944e-38, %v765_v36  ;;  %vm764_vm2 = vcmp.eq.f32.partialorder %v763_v19, 8.507059e+37 }
 0x734   :  { %v3649_v57 = vpop.eup %3648 }
 0x735   :  { %v755_v7 = vmul.f32 %v3649_v57, %v752_v55  ;;  %vm760_vm14 = vweird.f32 %v3649_v57  ;;  %v3651_v32 = vpop.eup %3650 }
 0x736   :  { %vm761_vm1 = vmor %vm759_vm15, %vm760_vm14  ;;  %v853_v38 = vadd.f32 1.0, %v3651_v32 }
 0x737   :  { %v756_v15 = vsub.f32 1.0, %v755_v7 }
 0x738   :  { %3652 = vrcp.f32 %v853_v38  ;;  %v866_v40 = vand.u32 2147483648, %v853_v38  ;;  %vm860_vm4 = vweird.f32 %v853_v38  ;;  %v864_v55 = vand.u32 2147483647, %v853_v38 }
 0x739   :  { %v757_v49 = vmul.f32 %v3649_v57, %v756_v15 }
 0x73a   :  { %vm865_vm6 = vcmp.eq.f32.partialorder %v864_v55, 8.507059e+37 }
 0x73b   :  { %v758_v11 = vadd.f32 %v3649_v57, %v757_v49  ;;  %v867_v49 = vor.u32 1.1754944e-38, %v866_v40 }
 0x73d   :  { %v762_v34 = vsel %vm761_vm1, %v3649_v57, %v758_v11 }
 0x73e   :  { %v767_v2 = vsel %vm764_vm2, %v766_v53, %v762_v34  ;;  %v3653_v50 = vpop.eup %3652 }
 0x73f   :  { %v856_v48 = vmul.f32 %v3653_v50, %v853_v38  ;;  %vm861_vm3 = vweird.f32 %v3653_v50 }
 0x740   :  { %vm862_vm5 = vmor %vm860_vm4, %vm861_vm3 }
 0x741   :  { %v857_v7 = vsub.f32 1.0, %v856_v48 }
 0x743   :  { %v858_v29 = vmul.f32 %v3653_v50, %v857_v7 }
 0x745   :  { %v859_v15 = vadd.f32 %v3653_v50, %v858_v29 }
 0x747   :  { %v863_v57 = vsel %vm862_vm5, %v3653_v50, %v859_v15 }
 0x748   :  { %v868_v11 = vsel %vm865_vm6, %v867_v49, %v863_v57 }
 0x749   :  { %v886_v53 = vmul.f32 %v868_v11, %v4581_v63 }
 0x77d   :  { %v788_v10 = vpop.permute.xlu2 %787 }
 0x77e   :  { %v790_v59 = vmul.f32 %v788_v10, %v767_v2  ;;  %v785_v10 = vmul.f32 %v767_v2, %v4586_v23  ;;  %v3480_v2 = vmul.f32 -1.442695, %v4800_v47  ;;  %v3484_v23 = vmul.f32 -1.442695, %v4805_v51 }
 0x780   :  { %792 = vrot.lane.b32.xlu1 %v790_v59, %s3955_s8 }
 0x79d   :  { %v889_v36 = vpop.permute.xlu0 %888 }
 0x79e   :  { %v891_v19 = vmul.f32 %v889_v36, %v868_v11 }
 0x7a0   :  { %893 = vrot.lane.b32.xlu2 %v891_v19, %s3955_s8 }
 0x7f2   :  { %v793_v32 = vpop.permute.xlu1 %792 }
 0x7f3   :  { %v4816_v34 = vadd.f32 %v793_v32, %v785_v10 }
 0x7f5   :  { %3654 = vtanh.f32 %v4816_v34 }
 0x7fa   :  { %v894_v59 = vpop.permute.xlu2 %893 }
 0x7fb   :  { %v3655_v38 = vpop.eup %3654  ;;  %v4820_v48 = vadd.f32 %v894_v59, %v886_v53 }
 0x7fc   :  { %798 = vrot.lane.b32.xlu0 %v3655_v38, %s3955_s8 }
 0x7fd   :  { %3656 = vtanh.f32 %v4820_v48 }
 0x7fe   :  { %3658 = vpow2.f32 %v3480_v2 }
 0x7ff   :  { %3660 = vpow2.f32 %v3484_v23 }
 0x803   :  { %v3657_v50 = vpop.eup %3656 }
 0x804   :  { %899 = vrot.lane.b32.xlu1 %v3657_v50, %s3955_s8  ;;  %v3659_v7 = vpop.eup %3658 }
 0x805   :  { %v753_v29 = vadd.f32 1.0, %v3659_v7  ;;  %v3661_v63 = vpop.eup %3660 }
 0x806   :  { %v854_v15 = vadd.f32 1.0, %v3661_v63 }
 0x807   :  { %3662 = vrcp.f32 %v753_v29  ;;  %v780_v47 = vand.u32 2147483648, %v753_v29  ;;  %vm774_vm8 = vweird.f32 %v753_v29  ;;  %v778_v32 = vand.u32 2147483647, %v753_v29 }
 0x808   :  { %3664 = vrcp.f32 %v854_v15  ;;  %v881_v7 = vand.u32 2147483648, %v854_v15  ;;  %vm875_vm13 = vweird.f32 %v854_v15  ;;  %v879_v63 = vand.u32 2147483647, %v854_v15 }
 0x809   :  { %v781_v59 = vor.u32 1.1754944e-38, %v780_v47  ;;  %vm779_vm11 = vcmp.eq.f32.partialorder %v778_v32, 8.507059e+37  ;;  %v4869_v47 = vld [vmem:[%s6016_s4 + $0x38] sm:$0xff]  ;;  %v4876_v32 = vld [vmem:[%s6016_s4 + $0x28] sm:$0xff] }
 0x80a   :  { %vm880_vm15 = vcmp.eq.f32.partialorder %v879_v63, 8.507059e+37  ;;  %v4943_v63 = vld [vmem:[%s6016_s4 + $0xb0] sm:$0xff] }
 0x80b   :  { %6066 = vst [vmem:[#allocation14_spill] sm:$0xff] %v4943_v63 }
 0x80d   :  { %v3663_v40 = vpop.eup %3662 }
 0x80e   :  { %v770_v55 = vmul.f32 %v3663_v40, %v753_v29  ;;  %v3665_v49 = vpop.eup %3664  ;;  %vm775_vm7 = vweird.f32 %v3663_v40 }
 0x80f   :  { %v871_v36 = vmul.f32 %v3665_v49, %v854_v15  ;;  %vm776_vm10 = vmor %vm774_vm8, %vm775_vm7  ;;  %vm876_vm12 = vweird.f32 %v3665_v49  ;;  %v4841_v15 = vld [vmem:[%s6016_s4 + $0x78] sm:$0xff] }
 0x810   :  { %v771_v57 = vsub.f32 1.0, %v770_v55  ;;  %vm877_vm14 = vmor %vm875_vm13, %vm876_vm12 }
 0x811   :  { %v872_v10 = vsub.f32 1.0, %v871_v36  ;;  %v4834_v36 = vld [vmem:[%s6016_s4 + $0x88] sm:$0xff] }
 0x812   :  { %v772_v11 = vmul.f32 %v3663_v40, %v771_v57  ;;  %v882_v57 = vor.u32 1.1754944e-38, %v881_v7  ;;  %v4937_v7 = vld [vmem:[%s6016_s4 + $0xc8] sm:$0xff] }
 0x813   :  { %v873_v53 = vmul.f32 %v3665_v49, %v872_v10  ;;  %v4862_v10 = vld [vmem:[%s6016_s4 + $0x48] sm:$0xff]  ;;  %6065 = vst [vmem:[#allocation13_spill] sm:$0xff] %v4937_v7 }
 0x814   :  { %v773_v19 = vadd.f32 %v3663_v40, %v772_v11 }
 0x815   :  { %v874_v23 = vadd.f32 %v3665_v49, %v873_v53 }
 0x816   :  { %v777_v51 = vsel %vm776_vm10, %v3663_v40, %v773_v19  ;;  %v4855_v19 = vld [vmem:[%s6016_s4 + $0x58] sm:$0xff] }
 0x817   :  { %v782_v38 = vsel %vm779_vm11, %v781_v59, %v777_v51  ;;  %v878_v55 = vsel %vm877_vm14, %v3665_v49, %v874_v23  ;;  %v4848_v49 = vld [vmem:[%s6016_s4 + $0x68] sm:$0xff]  ;;  %v4883_v51 = vld [vmem:[%s6016_s4 + $0x18] sm:$0xff]  ;;  %v4931_v23 = vld [vmem:[%s6016_s4 + $0xc0] sm:$0xff] }
 0x818   :  { %v883_v29 = vsel %vm880_vm15, %v882_v57, %v878_v55  ;;  %6064 = vst [vmem:[#allocation12_spill] sm:$0xff] %v4931_v23  ;;  %v4949_v55 = vld [vmem:[%s6016_s4 + $0xb8] sm:$0xff]  ;;  %v4955_v57 = vld [vmem:[%s6016_s4 + $0xa0] sm:$0xff] }
 0x819   :  { %6067 = vst [vmem:[#allocation15_spill] sm:$0xff] %v4949_v55 }
 0x81a   :  { %6068 = vst [vmem:[#allocation16_spill] sm:$0xff] %v4955_v57 }
 0x86e   :  { %v799_v50 = vpop.permute.xlu0 %798 }
 0x86f   :  { %v801_v2 = vmul.f32 %v799_v50, %v782_v38  ;;  %v4911_v38 = vld [vmem:[%s6016_s4 + $0xf8] sm:$0xff]  ;;  %v4918_v50 = vld [vmem:[%s6016_s4 + $0xe8] sm:$0xff] }
 0x870   :  { %6062 = vst [vmem:[#allocation10_spill] sm:$0xff] %v4918_v50 }
 0x871   :  { %904 = vrot.lane.b32.xlu2 %v801_v2, %s3955_s8  ;;  %v4925_v2 = vld [vmem:[%s6016_s4 + $0xd8] sm:$0xff] }
 0x872   :  { %6063 = vst [vmem:[#allocation11_spill] sm:$0xff] %v4925_v2 }
 0x876   :  { %v900_v11 = vpop.permute.xlu1 %899 }
 0x877   :  { %v902_v40 = vmul.f32 %v900_v11, %v883_v29  ;;  %v4961_v29 = vld [vmem:[%s6016_s4 + $0xa8] sm:$0xff]  ;;  %v133_v11 = vadd.f32 %v4548_v52, %v4099_v21 }
 0x878   :  { %6069 = vst [vmem:[#allocation17_spill] sm:$0xff] %v4961_v29 }
 0x879   :  { %3487 = vmatmul.msk.f32.vlgmr.msra.gmra.mxu0 %vm199_vm9, %v902_v40  ;;  %3488 = vmatmul.msk.f32.vlgmr.msra.gmra.mxu1 %vm199_vm9, %v902_v40 }
 0x87a   :  { %1419 = vmatpush.msra.mxu0 %v4597_v12  ;;  %1439 = vmatpush.msra.mxu1 %v4834_v36 }
 0x87c   :  { %1420 = vmatpush.msra.mxu0 %v4603_v14  ;;  %1440 = vmatpush.msra.mxu1 %v4841_v15 }
 0x87e   :  { %1421 = vmatpush.msra.mxu0 %v4609_v16  ;;  %1441 = vmatpush.msra.mxu1 %v4848_v49 }
 0x880   :  { %1422 = vmatpush.msra.mxu0 %v4615_v56  ;;  %1442 = vmatpush.msra.mxu1 %v4855_v19 }
 0x882   :  { %1423 = vmatpush.msra.mxu0 %v4621_v58  ;;  %1443 = vmatpush.msra.mxu1 %v4862_v10 }
 0x884   :  { %1424 = vmatpush.msra.mxu0 %v4627_v3  ;;  %1444 = vmatpush.msra.mxu1 %v4869_v47 }
 0x886   :  { %1425 = vmatpush.msra.mxu0 %v4633_v4  ;;  %1445 = vmatpush.msra.mxu1 %v4876_v32 }
 0x888   :  { %1426 = vmatpush.msra.mxu0 %v4639_v20  ;;  %1446 = vmatpush.msra.mxu1 %v4883_v51 }
 0x8cb   :  { %v905_v53 = vpop.permute.xlu2 %904 }
 0x8cc   :  { %v907_v59 = vsel %vm199_vm9, %v902_v40, %v905_v53 }
 0x8cd   :  { %924 = vmatmul.f32.vlgmr.msrb.gmra.mxu2 %v907_v59  ;;  %944 = vmatmul.f32.vlgmr.msrb.gmra.mxu3 %v907_v59 }
 0x8ce   :  { %1312 = vmatpush.msrb.mxu2 %v4703_v39  ;;  %1332 = vmatpush.msrb.mxu3 %v4647_v5 }
 0x8d0   :  { %1313 = vmatpush.msrb.mxu2 %v4715_v31  ;;  %1333 = vmatpush.msrb.mxu3 %v4654_v44 }
 0x8d2   :  { %1314 = vmatpush.msrb.mxu2 %v4727_v8  ;;  %1334 = vmatpush.msrb.mxu3 %v4661_v45 }
 0x8d4   :  { %1315 = vmatpush.msrb.mxu2 %v4734_v9  ;;  %1335 = vmatpush.msrb.mxu3 %v4668_v46 }
 0x8d6   :  { %1316 = vmatpush.msrb.mxu2 %v4741_v28  ;;  %1336 = vmatpush.msrb.mxu3 %v4676_v25 }
 0x8d8   :  { %1317 = vmatpush.msrb.mxu2 %v4748_v22  ;;  %1337 = vmatpush.msrb.mxu3 %v4683_v41 }
 0x8da   :  { %1318 = vmatpush.msrb.mxu2 %v4755_v24  ;;  %1338 = vmatpush.msrb.mxu3 %v4690_v26 }
 0x8dc   :  { %1319 = vmatpush.msrb.mxu2 %v4762_v30  ;;  %1339 = vmatpush.msrb.mxu3 %v4697_v42 }
 0x8de   :  { %1320 = vmatpush.msrb.mxu2 %v4769_v33  ;;  %1340 = vmatpush.msrb.mxu3 %v4709_v13 }
 0x8e0   :  { %1321 = vmatpush.msrb.mxu2 %v4775_v35  ;;  %1341 = vmatpush.msrb.mxu3 %v4721_v17 }
 0x8e2   :  { %1322 = vmatpush.msrb.mxu2 %v4781_v54  ;;  %1342 = vmatpush.msrb.mxu3 %v4911_v38 }
 0x8e4   :  { %1323 = vmatpush.msrb.mxu2 %v4787_v37  ;;  %1343 = vmatpush.msrb.mxu3 %v4918_v50 }
 0x8e6   :  { %1324 = vmatpush.msrb.mxu2 %v4793_v18  ;;  %1344 = vmatpush.msrb.mxu3 %v4925_v2 }
 0x8e8   :  { %1325 = vmatpush.msrb.mxu2 %v4931_v23  ;;  %1345 = vmatpush.msrb.mxu3 %v4937_v7 }
 0x8ea   :  { %1326 = vmatpush.msrb.mxu2 %v4943_v63  ;;  %1346 = vmatpush.msrb.mxu3 %v4949_v55 }
 0x8ec   :  { %1327 = vmatpush.msrb.mxu2 %v4955_v57  ;;  %1347 = vmatpush.msrb.mxu3 %v4961_v29 }
 0x8f6   :  { %v1044_v40 = vpop.f32.mrf.mxu1  ;;  %v1024_v62 = vpop.f32.mrf.mxu0 }
 0x8f7   :  { %v4966_v53 = vadd.f32 %v1044_v40, %v133_v11  ;;  %v1047_v61 = vadd.f32 %v1024_v62, %v92_v1 }
 0x8f9   :  { %3666 = vtanh.f32 %v4966_v53  ;;  %v3489_v57 = vmul.f32 -1.442695, %v1047_v61 }
 0x8fb   :  { %3668 = vpow2.f32 %v3489_v57 }
 0x8ff   :  { %v3667_v59 = vpop.eup %3666 }
 0x900   :  { %1090 = vrot.lane.b32.xlu1 %v3667_v59, %s3955_s8 }
 0x901   :  { %v3669_v55 = vpop.eup %3668 }
 0x902   :  { %v1055_v52 = vadd.f32 1.0, %v3669_v55 }
 0x904   :  { %v1068_v1 = vand.u32 2147483648, %v1055_v52  ;;  %vm1062_vm2 = vweird.f32 %v1055_v52  ;;  %v1066_v61 = vand.u32 2147483647, %v1055_v52 }
 0x906   :  { %v1069_v57 = vor.u32 1.1754944e-38, %v1068_v1  ;;  %vm1067_vm4 = vcmp.eq.f32.partialorder %v1066_v61, 8.507059e+37 }
 0x950   :  { %v945_v29 = vpop.f32.mrf.mxu3  ;;  %v925_v27 = vpop.f32.mrf.mxu2 }
 0x951   :  { %v4973_v63 = vadd.f32 %v945_v29, %v4435_v6 }
 0x953   :  { %3670 = vtanh.f32 %v4973_v63 }
 0x954   :  { %3672 = vrcp.f32 %v1055_v52 }
 0x959   :  { %v3671_v11 = vpop.eup %3670 }
 0x95a   :  { %989 = vrot.lane.b32.xlu0 %v3671_v11, %s3955_s8  ;;  %v3673_v40 = vpop.eup %3672  ;;  %v926_v11 = vadd.f32 %v925_v27, %v6060_v43 }
 0x95b   :  { %v1058_v59 = vmul.f32 %v3673_v40, %v1055_v52  ;;  %vm1063_vm1 = vweird.f32 %v3673_v40 }
 0x95c   :  { %vm1064_vm3 = vmor %vm1062_vm2, %vm1063_vm1  ;;  %v3485_v2 = vmul.f32 -1.442695, %v926_v11 }
 0x95d   :  { %v1059_v7 = vsub.f32 1.0, %v1058_v59 }
 0x95e   :  { %3674 = vpow2.f32 %v3485_v2 }
 0x95f   :  { %v1060_v23 = vmul.f32 %v3673_v40, %v1059_v7 }
 0x961   :  { %v1061_v60 = vadd.f32 %v3673_v40, %v1060_v23 }
 0x963   :  { %v1065_v62 = vsel %vm1064_vm3, %v3673_v40, %v1061_v60 }
 0x964   :  { %v1070_v29 = vsel %vm1067_vm4, %v1069_v57, %v1065_v62  ;;  %v3675_v7 = vpop.eup %3674 }
 0x965   :  { %v954_v23 = vadd.f32 1.0, %v3675_v7  ;;  %v1088_v2 = vmul.f32 %v1070_v29, %v4820_v48 }
 0x967   :  { %3676 = vrcp.f32 %v954_v23  ;;  %v967_v60 = vand.u32 2147483648, %v954_v23  ;;  %vm961_vm6 = vweird.f32 %v954_v23  ;;  %v965_v1 = vand.u32 2147483647, %v954_v23 }
 0x969   :  { %vm966_vm8 = vcmp.eq.f32.partialorder %v965_v1, 8.507059e+37 }
 0x96d   :  { %v3677_v59 = vpop.eup %3676 }
 0x96e   :  { %v957_v18 = vmul.f32 %v3677_v59, %v954_v23  ;;  %vm962_vm5 = vweird.f32 %v3677_v59 }
 0x96f   :  { %vm963_vm7 = vmor %vm961_vm6, %vm962_vm5 }
 0x970   :  { %v958_v52 = vsub.f32 1.0, %v957_v18 }
 0x972   :  { %v1091_v55 = vpop.permute.xlu1 %1090  ;;  %v959_v50 = vmul.f32 %v3677_v59, %v958_v52 }
 0x973   :  { %v1093_v6 = vmul.f32 %v1091_v55, %v1070_v29 }
 0x974   :  { %v960_v40 = vadd.f32 %v3677_v59, %v959_v50  ;;  %v3490_v50 = vmul.f32 -1.442695, %v4966_v53 }
 0x975   :  { %1095 = vrot.lane.b32.xlu0 %v1093_v6, %s3955_s8  ;;  %v968_v6 = vor.u32 1.1754944e-38, %v967_v60 }
 0x976   :  { %v964_v61 = vsel %vm963_vm7, %v3677_v59, %v960_v40 }
 0x977   :  { %v969_v27 = vsel %vm966_vm8, %v968_v6, %v964_v61 }
 0x978   :  { %v987_v23 = vmul.f32 %v969_v27, %v4816_v34 }
 0x9cc   :  { %v990_v62 = vpop.permute.xlu0 %989 }
 0x9cd   :  { %v992_v57 = vmul.f32 %v990_v62, %v969_v27 }
 0x9cf   :  { %994 = vrot.lane.b32.xlu2 %v992_v57, %s3955_s8 }
 0x9e7   :  { %v1096_v55 = vpop.permute.xlu0 %1095 }
 0x9e8   :  { %v4981_v11 = vadd.f32 %v1096_v55, %v1088_v2 }
 0x9ea   :  { %3678 = vtanh.f32 %v4981_v11 }
 0x9eb   :  { %3680 = vpow2.f32 %v3490_v50 }
 0x9f0   :  { %v3679_v18 = vpop.eup %3678 }
 0x9f1   :  { %1101 = vrot.lane.b32.xlu2 %v3679_v18, %s3955_s8  ;;  %v3681_v7 = vpop.eup %3680 }
 0x9f2   :  { %v1056_v40 = vadd.f32 1.0, %v3681_v7 }
 0x9f4   :  { %v1083_v53 = vand.u32 2147483648, %v1056_v40  ;;  %vm1077_vm11 = vweird.f32 %v1056_v40  ;;  %v1081_v62 = vand.u32 2147483647, %v1056_v40 }
 0x9f6   :  { %v1084_v27 = vor.u32 1.1754944e-38, %v1083_v53  ;;  %vm1082_vm13 = vcmp.eq.f32.partialorder %v1081_v62, 8.507059e+37  ;;  %v6079_v62 = vld [vmem:[#allocation2_spill] sm:$0xff] }
 0xa29   :  { %v995_v59 = vpop.permute.xlu2 %994 }
 0xa2a   :  { %v4987_v52 = vadd.f32 %v995_v59, %v987_v23  ;;  %v6071_v59 = vld [vmem:[#allocation5_spill] sm:$0xff] }
 0xa2c   :  { %3682 = vtanh.f32 %v4987_v52 }
 0xa2d   :  { %3684 = vrcp.f32 %v1056_v40 }
 0xa32   :  { %v3683_v48 = vpop.eup %3682 }
 0xa33   :  { %1000 = vrot.lane.b32.xlu1 %v3683_v48, %s3955_s8  ;;  %v3685_v29 = vpop.eup %3684  ;;  %v6073_v48 = vld [vmem:[#allocation12_spill] sm:$0xff] }
 0xa34   :  { %v1073_v60 = vmul.f32 %v3685_v29, %v1056_v40  ;;  %vm1078_vm10 = vweird.f32 %v3685_v29  ;;  %v6072_v40 = vld [vmem:[#allocation11_spill] sm:$0xff] }
 0xa35   :  { %vm1079_vm12 = vmor %vm1077_vm11, %vm1078_vm10 }
 0xa36   :  { %v1074_v1 = vsub.f32 1.0, %v1073_v60  ;;  %v6075_v60 = vld [vmem:[#allocation14_spill] sm:$0xff] }
 0xa38   :  { %v1075_v61 = vmul.f32 %v3685_v29, %v1074_v1  ;;  %v6076_v1 = vld [vmem:[#allocation15_spill] sm:$0xff] }
 0xa3a   :  { %v1076_v6 = vadd.f32 %v3685_v29, %v1075_v61  ;;  %v6077_v61 = vld [vmem:[#allocation16_spill] sm:$0xff] }
 0xa3c   :  { %v1080_v34 = vsel %vm1079_vm12, %v3685_v29, %v1076_v6  ;;  %v6074_v29 = vld [vmem:[#allocation13_spill] sm:$0xff] }
 0xa3d   :  { %v1085_v57 = vsel %vm1082_vm13, %v1084_v27, %v1080_v34  ;;  %v6078_v6 = vld [vmem:[#allocation17_spill] sm:$0xff]  ;;  %v6080_v34 = vld [vmem:[#allocation7_spill] sm:$0xff] }
 0xa3e   :  { %v95_v27 = vadd.f32 %v6080_v34, %v6079_v62 }
 0xa4b   :  { %v1102_v2 = vpop.permute.xlu2 %1101 }
 0xa4c   :  { %v1104_v55 = vmul.f32 %v1102_v2, %v1085_v57 }
 0xa4e   :  { %3493 = vmatmul.msk.f32.vlgmr.msra.gmra.mxu2 %vm199_vm9, %v1104_v55  ;;  %3494 = vmatmul.msk.f32.vlgmr.msra.gmra.mxu3 %vm199_vm9, %v1104_v55 }
 0xa4f   :  { %1621 = vmatpush.msra.mxu2 %v4597_v12  ;;  %1641 = vmatpush.msra.mxu3 %v4834_v36  ;;  %v3486_v12 = vmul.f32 -1.442695, %v4973_v63 }
 0xa51   :  { %1622 = vmatpush.msra.mxu2 %v4603_v14  ;;  %1642 = vmatpush.msra.mxu3 %v4841_v15  ;;  %3686 = vpow2.f32 %v3486_v12 }
 0xa53   :  { %1623 = vmatpush.msra.mxu2 %v4609_v16  ;;  %1643 = vmatpush.msra.mxu3 %v4848_v49 }
 0xa55   :  { %1624 = vmatpush.msra.mxu2 %v4615_v56  ;;  %1644 = vmatpush.msra.mxu3 %v4855_v19 }
 0xa57   :  { %1625 = vmatpush.msra.mxu2 %v4621_v58  ;;  %1645 = vmatpush.msra.mxu3 %v4862_v10  ;;  %v3687_v14 = vpop.eup %3686 }
 0xa58   :  { %v955_v16 = vadd.f32 1.0, %v3687_v14 }
 0xa59   :  { %1626 = vmatpush.msra.mxu2 %v4627_v3  ;;  %1646 = vmatpush.msra.mxu3 %v4869_v47 }
 0xa5a   :  { %3688 = vrcp.f32 %v955_v16  ;;  %v982_v49 = vand.u32 2147483648, %v955_v16  ;;  %vm976_vm15 = vweird.f32 %v955_v16 }
 0xa5b   :  { %1627 = vmatpush.msra.mxu2 %v4633_v4  ;;  %1647 = vmatpush.msra.mxu3 %v4876_v32  ;;  %v980_v4 = vand.u32 2147483647, %v955_v16 }
 0xa5d   :  { %1628 = vmatpush.msra.mxu2 %v4639_v20  ;;  %1648 = vmatpush.msra.mxu3 %v4883_v51  ;;  %v983_v20 = vor.u32 1.1754944e-38, %v982_v49  ;;  %vm981_vm2 = vcmp.eq.f32.partialorder %v980_v4, 8.507059e+37  ;;  %v136_v51 = vadd.f32 %v4550_v0, %v4099_v21  ;;  %v6070_v0 = vld [vmem:[#allocation10_spill] sm:$0xff] }
 0xa60   :  { %v3689_v56 = vpop.eup %3688 }
 0xa61   :  { %v972_v58 = vmul.f32 %v3689_v56, %v955_v16  ;;  %vm977_vm14 = vweird.f32 %v3689_v56 }
 0xa62   :  { %vm978_vm1 = vmor %vm976_vm15, %vm977_vm14 }
 0xa63   :  { %v973_v36 = vsub.f32 1.0, %v972_v58 }
 0xa65   :  { %v974_v3 = vmul.f32 %v3689_v56, %v973_v36  ;;  %v6081_v36 = vld [vmem:[#allocation4_spill] sm:$0xff] }
 0xa67   :  { %v975_v15 = vadd.f32 %v3689_v56, %v974_v3 }
 0xa69   :  { %v979_v19 = vsel %vm978_vm1, %v3689_v56, %v975_v15 }
 0xa6a   :  { %v984_v10 = vsel %vm981_vm2, %v983_v20, %v979_v19 }
 0xaa5   :  { %v1001_v47 = vpop.permute.xlu1 %1000 }
 0xaa6   :  { %v1003_v32 = vmul.f32 %v1001_v47, %v984_v10 }
 0xaa8   :  { %1106 = vrot.lane.b32.xlu0 %v1003_v32, %s3955_s8 }
 0xad1   :  { %v1246_v63 = vpop.f32.mrf.mxu3  ;;  %v1226_v53 = vpop.f32.mrf.mxu2 }
 0xad2   :  { %v5013_v18 = vadd.f32 %v1246_v63, %v136_v51  ;;  %v1249_v57 = vadd.f32 %v1226_v53, %v95_v27 }
 0xad4   :  { %3690 = vtanh.f32 %v5013_v18  ;;  %v3495_v2 = vmul.f32 -1.442695, %v1249_v57 }
 0xad6   :  { %3692 = vpow2.f32 %v3495_v2 }
 0xada   :  { %v3691_v50 = vpop.eup %3690 }
 0xadb   :  { %1292 = vrot.lane.b32.xlu2 %v3691_v50, %s3955_s8 }
 0xb1a   :  { %v1107_v7 = vpop.permute.xlu0 %1106 }
 0xb1b   :  { %v1109_v23 = vsel %vm199_vm9, %v1104_v55, %v1107_v7  ;;  %v3693_v55 = vpop.eup %3692 }
 0xb1c   :  { %1126 = vmatmul.f32.vlgmr.msrb.gmra.mxu0 %v1109_v23  ;;  %1146 = vmatmul.f32.vlgmr.msrb.gmra.mxu1 %v1109_v23  ;;  %v1257_v12 = vadd.f32 1.0, %v3693_v55 }
 0xb1d   :  { %1514 = vmatpush.msrb.mxu0 %v4703_v39  ;;  %1534 = vmatpush.msrb.mxu1 %v4647_v5 }
 0xb1e   :  { %3694 = vrcp.f32 %v1257_v12  ;;  %v1270_v19 = vand.u32 2147483648, %v1257_v12  ;;  %vm1264_vm4 = vweird.f32 %v1257_v12  ;;  %v1268_v20 = vand.u32 2147483647, %v1257_v12 }
 0xb1f   :  { %1515 = vmatpush.msrb.mxu0 %v4715_v31  ;;  %1535 = vmatpush.msrb.mxu1 %v4654_v44 }
 0xb20   :  { %v1271_v32 = vor.u32 1.1754944e-38, %v1270_v19  ;;  %vm1269_vm6 = vcmp.eq.f32.partialorder %v1268_v20, 8.507059e+37 }
 0xb21   :  { %1516 = vmatpush.msrb.mxu0 %v4727_v8  ;;  %1536 = vmatpush.msrb.mxu1 %v4661_v45 }
 0xb23   :  { %1517 = vmatpush.msrb.mxu0 %v4734_v9  ;;  %1537 = vmatpush.msrb.mxu1 %v4668_v46 }
 0xb24   :  { %v3695_v14 = vpop.eup %3694 }
 0xb25   :  { %1518 = vmatpush.msrb.mxu0 %v4741_v28  ;;  %1538 = vmatpush.msrb.mxu1 %v4676_v25  ;;  %v1260_v16 = vmul.f32 %v3695_v14, %v1257_v12  ;;  %vm1265_vm3 = vweird.f32 %v3695_v14 }
 0xb26   :  { %vm1266_vm5 = vmor %vm1264_vm4, %vm1265_vm3 }
 0xb27   :  { %1519 = vmatpush.msrb.mxu0 %v4748_v22  ;;  %1539 = vmatpush.msrb.mxu1 %v4683_v41  ;;  %v1261_v56 = vsub.f32 1.0, %v1260_v16 }
 0xb29   :  { %1520 = vmatpush.msrb.mxu0 %v4755_v24  ;;  %1540 = vmatpush.msrb.mxu1 %v4690_v26  ;;  %v1262_v15 = vmul.f32 %v3695_v14, %v1261_v56 }
 0xb2b   :  { %1521 = vmatpush.msrb.mxu0 %v4762_v30  ;;  %1541 = vmatpush.msrb.mxu1 %v4697_v42  ;;  %v1263_v49 = vadd.f32 %v3695_v14, %v1262_v15 }
 0xb2d   :  { %1522 = vmatpush.msrb.mxu0 %v4769_v33  ;;  %1542 = vmatpush.msrb.mxu1 %v4709_v13  ;;  %v1267_v10 = vsel %vm1266_vm5, %v3695_v14, %v1263_v49 }
 0xb2e   :  { %v1272_v51 = vsel %vm1269_vm6, %v1271_v32, %v1267_v10  ;;  %v3496_v32 = vmul.f32 -1.442695, %v5013_v18 }
 0xb2f   :  { %1523 = vmatpush.msrb.mxu0 %v4775_v35  ;;  %1543 = vmatpush.msrb.mxu1 %v4721_v17  ;;  %v1290_v19 = vmul.f32 %v1272_v51, %v4981_v11 }
 0xb31   :  { %1524 = vmatpush.msrb.mxu0 %v4781_v54  ;;  %1544 = vmatpush.msrb.mxu1 %v4911_v38 }
 0xb33   :  { %1525 = vmatpush.msrb.mxu0 %v4787_v37  ;;  %1545 = vmatpush.msrb.mxu1 %v6070_v0 }
 0xb35   :  { %1526 = vmatpush.msrb.mxu0 %v6071_v59  ;;  %1546 = vmatpush.msrb.mxu1 %v6072_v40  ;;  %v1293_v47 = vpop.permute.xlu2 %1292 }
 0xb36   :  { %v1295_v63 = vmul.f32 %v1293_v47, %v1272_v51 }
 0xb37   :  { %1527 = vmatpush.msrb.mxu0 %v6073_v48  ;;  %1547 = vmatpush.msrb.mxu1 %v6074_v29 }
 0xb39   :  { %1528 = vmatpush.msrb.mxu0 %v6075_v60  ;;  %1548 = vmatpush.msrb.mxu1 %v6076_v1 }
 0xb3b   :  { %1529 = vmatpush.msrb.mxu0 %v6077_v61  ;;  %1549 = vmatpush.msrb.mxu1 %v6078_v6 }
 0xb99   :  { %v1147_v58 = vpop.f32.mrf.mxu1  ;;  %v1127_v50 = vpop.f32.mrf.mxu0 }
 0xb9a   :  { %v5053_v3 = vadd.f32 %v1147_v58, %v6081_v36  ;;  %v1128_v7 = vadd.f32 %v1127_v50, %v6060_v43 }
 0xb9c   :  { %3696 = vtanh.f32 %v5053_v3  ;;  %v3491_v23 = vmul.f32 -1.442695, %v1128_v7 }
 0xb9e   :  { %3698 = vpow2.f32 %v3491_v23 }
 0xba2   :  { %v3697_v4 = vpop.eup %3696 }
 0xba3   :  { %1191 = vrot.lane.b32.xlu1 %v3697_v4, %s3955_s8 }
 0xba4   :  { %v3699_v53 = vpop.eup %3698 }
 0xba5   :  { %v1156_v34 = vadd.f32 1.0, %v3699_v53 }
 0xba7   :  { %3700 = vrcp.f32 %v1156_v34  ;;  %v1169_v14 = vand.u32 2147483648, %v1156_v34  ;;  %vm1163_vm8 = vweird.f32 %v1156_v34  ;;  %v1167_v16 = vand.u32 2147483647, %v1156_v34 }
 0xba9   :  { %v1170_v58 = vor.u32 1.1754944e-38, %v1169_v14  ;;  %vm1168_vm11 = vcmp.eq.f32.partialorder %v1167_v16, 8.507059e+37 }
 0xbab   :  { %1297 = vrot.lane.b32.xlu1 %v1295_v63, %s3955_s8 }
 0xbad   :  { %v3701_v27 = vpop.eup %3700 }
 0xbae   :  { %v1159_v57 = vmul.f32 %v3701_v27, %v1156_v34  ;;  %vm1164_vm7 = vweird.f32 %v3701_v27 }
 0xbaf   :  { %vm1165_vm10 = vmor %vm1163_vm8, %vm1164_vm7 }
 0xbb0   :  { %v1160_v2 = vsub.f32 1.0, %v1159_v57 }
 0xbb2   :  { %v1161_v55 = vmul.f32 %v3701_v27, %v1160_v2 }
 0xbb4   :  { %v1162_v12 = vadd.f32 %v3701_v27, %v1161_v55 }
 0xbb6   :  { %v1166_v56 = vsel %vm1165_vm10, %v3701_v27, %v1162_v12 }
 0xbb7   :  { %v1171_v49 = vsel %vm1168_vm11, %v1170_v58, %v1166_v56  ;;  %v3492_v58 = vmul.f32 -1.442695, %v5053_v3 }
 0xbb8   :  { %v1189_v53 = vmul.f32 %v1171_v49, %v4987_v52 }
 0xc15   :  { %v1192_v15 = vpop.permute.xlu1 %1191 }
 0xc16   :  { %v1194_v4 = vmul.f32 %v1192_v15, %v1171_v49 }
 0xc18   :  { %1196 = vrot.lane.b32.xlu0 %v1194_v4, %s3955_s8 }
 0xc1d   :  { %v1298_v20 = vpop.permute.xlu1 %1297 }
 0xc1e   :  { %v5061_v10 = vadd.f32 %v1298_v20, %v1290_v19 }
 0xc20   :  { %3702 = vtanh.f32 %v5061_v10 }
 0xc21   :  { %3704 = vpow2.f32 %v3496_v32 }
 0xc26   :  { %v3703_v47 = vpop.eup %3702 }
 0xc27   :  { %1303 = vrot.lane.b32.xlu0 %v3703_v47, %s3955_s8  ;;  %v3705_v63 = vpop.eup %3704 }
 0xc28   :  { %v1258_v50 = vadd.f32 1.0, %v3705_v63 }
 0xc2a   :  { %3706 = vrcp.f32 %v1258_v50  ;;  %v1285_v55 = vand.u32 2147483648, %v1258_v50  ;;  %vm1279_vm13 = vweird.f32 %v1258_v50  ;;  %v1283_v18 = vand.u32 2147483647, %v1258_v50 }
 0xc2c   :  { %v1286_v14 = vor.u32 1.1754944e-38, %v1285_v55  ;;  %vm1284_vm15 = vcmp.eq.f32.partialorder %v1283_v18, 8.507059e+37 }
 0xc30   :  { %v3707_v7 = vpop.eup %3706 }
 0xc31   :  { %v1275_v23 = vmul.f32 %v3707_v7, %v1258_v50  ;;  %vm1280_vm12 = vweird.f32 %v3707_v7 }
 0xc32   :  { %vm1281_vm14 = vmor %vm1279_vm13, %vm1280_vm12 }
 0xc33   :  { %v1276_v11 = vsub.f32 1.0, %v1275_v23 }
 0xc35   :  { %v1277_v27 = vmul.f32 %v3707_v7, %v1276_v11  ;;  %v6082_v11 = vld [vmem:[#allocation3_spill] sm:$0xff] }
 0xc37   :  { %v1278_v57 = vadd.f32 %v3707_v7, %v1277_v27  ;;  %v139_v27 = vadd.f32 %v6082_v11, %v4099_v21 }
 0xc39   :  { %v1282_v12 = vsel %vm1281_vm14, %v3707_v7, %v1278_v57 }
 0xc3a   :  { %v1287_v52 = vsel %vm1284_vm15, %v1286_v14, %v1282_v12 }
 0xc8a   :  { %v1197_v34 = vpop.permute.xlu0 %1196 }
 0xc8b   :  { %v5067_v51 = vadd.f32 %v1197_v34, %v1189_v53 }
 0xc8d   :  { %3708 = vtanh.f32 %v5067_v51 }
 0xc8e   :  { %3710 = vpow2.f32 %v3492_v58 }
 0xc93   :  { %v3709_v2 = vpop.eup %3708 }
 0xc94   :  { %1202 = vrot.lane.b32.xlu2 %v3709_v2, %s3955_s8  ;;  %v3711_v15 = vpop.eup %3710 }
 0xc95   :  { %v1157_v49 = vadd.f32 1.0, %v3711_v15 }
 0xc97   :  { %3712 = vrcp.f32 %v1157_v49  ;;  %v1184_v63 = vand.u32 2147483648, %v1157_v49  ;;  %vm1178_vm2 = vweird.f32 %v1157_v49  ;;  %v1182_v50 = vand.u32 2147483647, %v1157_v49 }
 0xc99   :  { %v1304_v16 = vpop.permute.xlu0 %1303  ;;  %v1185_v23 = vor.u32 1.1754944e-38, %v1184_v63  ;;  %vm1183_vm4 = vcmp.eq.f32.partialorder %v1182_v50, 8.507059e+37 }
 0xc9a   :  { %v1306_v56 = vmul.f32 %v1304_v16, %v1287_v52 }
 0xc9c   :  { %3499 = vmatmul.msk.f32.vlgmr.msra.gmra.mxu0 %vm199_vm9, %v1306_v56  ;;  %3500 = vmatmul.msk.f32.vlgmr.msra.gmra.mxu1 %vm199_vm9, %v1306_v56 }
 0xc9d   :  { %v3713_v4 = vpop.eup %3712 }
 0xc9e   :  { %v1174_v19 = vmul.f32 %v3713_v4, %v1157_v49  ;;  %vm1179_vm1 = vweird.f32 %v3713_v4 }
 0xc9f   :  { %vm1180_vm3 = vmor %vm1178_vm2, %vm1179_vm1 }
 0xca0   :  { %v1175_v20 = vsub.f32 1.0, %v1174_v19 }
 0xca2   :  { %v1176_v47 = vmul.f32 %v3713_v4, %v1175_v20 }
 0xca4   :  { %v1177_v32 = vadd.f32 %v3713_v4, %v1176_v47 }
 0xca6   :  { %v1181_v7 = vsel %vm1180_vm3, %v3713_v4, %v1177_v32 }
 0xca7   :  { %v1186_v53 = vsel %vm1183_vm4, %v1185_v23, %v1181_v7 }
 0xcee   :  { %v1203_v34 = vpop.permute.xlu2 %1202 }
 0xcef   :  { %v1205_v3 = vmul.f32 %v1203_v34, %v1186_v53 }
 0xcf1   :  { %1308 = vrot.lane.b32.xlu1 %v1205_v3, %s3955_s8 }
 0xd19   :  { %v1448_v57 = vpop.f32.mrf.mxu1 }
 0xd1a   :  { %v5077_v2 = vadd.f32 %v1448_v57, %v139_v27 }
 0xd1c   :  { %3714 = vtanh.f32 %v5077_v2  ;;  %v3502_v32 = vmul.f32 -1.442695, %v5077_v2 }
 0xd22   :  { %v3715_v55 = vpop.eup %3714 }
 0xd23   :  { %1494 = vrot.lane.b32.xlu0 %v3715_v55, %s3955_s8 }
 0xd63   :  { %v1309_v18 = vpop.permute.xlu1 %1308 }
 0xd64   :  { %v1311_v12 = vsel %vm199_vm9, %v1306_v56, %v1309_v18 }
 0xd65   :  { %1328 = vmatmul.f32.vlgmr.msrb.gmra.mxu2 %v1311_v12  ;;  %1348 = vmatmul.f32.vlgmr.msrb.gmra.mxu3 %v1311_v12 }
 0xd66   :  { %1716 = vmatpush.msrb.mxu2 %v4703_v39  ;;  %1736 = vmatpush.msrb.mxu3 %v4647_v5  ;;  %v1428_v5 = vpop.f32.mrf.mxu0 }
 0xd68   :  { %1717 = vmatpush.msrb.mxu2 %v4715_v31  ;;  %1737 = vmatpush.msrb.mxu3 %v4654_v44  ;;  %v6083_v44 = vld [vmem:[#allocation8_spill] sm:$0xff] }
 0xd6a   :  { %1718 = vmatpush.msrb.mxu2 %v4727_v8  ;;  %1738 = vmatpush.msrb.mxu3 %v4661_v45  ;;  %v98_v45 = vadd.f32 %v6083_v44, %v6079_v62 }
 0xd6c   :  { %1719 = vmatpush.msrb.mxu2 %v4734_v9  ;;  %1739 = vmatpush.msrb.mxu3 %v4668_v46  ;;  %v1451_v46 = vadd.f32 %v1428_v5, %v98_v45 }
 0xd6e   :  { %1720 = vmatpush.msrb.mxu2 %v4741_v28  ;;  %1740 = vmatpush.msrb.mxu3 %v4676_v25  ;;  %v3501_v25 = vmul.f32 -1.442695, %v1451_v46 }
 0xd70   :  { %1721 = vmatpush.msrb.mxu2 %v4748_v22  ;;  %1741 = vmatpush.msrb.mxu3 %v4683_v41  ;;  %3716 = vpow2.f32 %v3501_v25 }
 0xd72   :  { %1722 = vmatpush.msrb.mxu2 %v4755_v24  ;;  %1742 = vmatpush.msrb.mxu3 %v4690_v26 }
 0xd74   :  { %1723 = vmatpush.msrb.mxu2 %v4762_v30  ;;  %1743 = vmatpush.msrb.mxu3 %v4697_v42 }
 0xd76   :  { %1724 = vmatpush.msrb.mxu2 %v4769_v33  ;;  %1744 = vmatpush.msrb.mxu3 %v4709_v13  ;;  %v3717_v41 = vpop.eup %3716 }
 0xd77   :  { %v1459_v26 = vadd.f32 1.0, %v3717_v41 }
 0xd78   :  { %1725 = vmatpush.msrb.mxu2 %v4775_v35  ;;  %1745 = vmatpush.msrb.mxu3 %v4721_v17 }
 0xd79   :  { %3718 = vrcp.f32 %v1459_v26  ;;  %v1472_v22 = vand.u32 2147483648, %v1459_v26  ;;  %vm1466_vm6 = vweird.f32 %v1459_v26  ;;  %v1470_v24 = vand.u32 2147483647, %v1459_v26 }
 0xd7a   :  { %1726 = vmatpush.msrb.mxu2 %v4781_v54  ;;  %1746 = vmatpush.msrb.mxu3 %v4911_v38 }
 0xd7b   :  { %v1473_v35 = vor.u32 1.1754944e-38, %v1472_v22  ;;  %vm1471_vm8 = vcmp.eq.f32.partialorder %v1470_v24, 8.507059e+37 }
 0xd7c   :  { %1727 = vmatpush.msrb.mxu2 %v4787_v37  ;;  %1747 = vmatpush.msrb.mxu3 %v6070_v0 }
 0xd7e   :  { %1728 = vmatpush.msrb.mxu2 %v6071_v59  ;;  %1748 = vmatpush.msrb.mxu3 %v6072_v40 }
 0xd7f   :  { %v3719_v42 = vpop.eup %3718 }
 0xd80   :  { %1729 = vmatpush.msrb.mxu2 %v6073_v48  ;;  %1749 = vmatpush.msrb.mxu3 %v6074_v29  ;;  %v1462_v39 = vmul.f32 %v3719_v42, %v1459_v26  ;;  %vm1467_vm5 = vweird.f32 %v3719_v42 }
 0xd81   :  { %vm1468_vm7 = vmor %vm1466_vm6, %vm1467_vm5 }
 0xd82   :  { %1730 = vmatpush.msrb.mxu2 %v6075_v60  ;;  %1750 = vmatpush.msrb.mxu3 %v6076_v1  ;;  %v1463_v13 = vsub.f32 1.0, %v1462_v39 }
 0xd84   :  { %1731 = vmatpush.msrb.mxu2 %v6077_v61  ;;  %1751 = vmatpush.msrb.mxu3 %v6078_v6  ;;  %v1464_v8 = vmul.f32 %v3719_v42, %v1463_v13 }
 0xd86   :  { %v1465_v9 = vadd.f32 %v3719_v42, %v1464_v8 }
 0xd88   :  { %v1469_v30 = vsel %vm1468_vm7, %v3719_v42, %v1465_v9 }
 0xd89   :  { %v1474_v54 = vsel %vm1471_vm8, %v1473_v35, %v1469_v30  ;;  %v6084_v30 = vld [vmem:[#allocation6_spill] sm:$0xff] }
 0xd8a   :  { %v1492_v4 = vmul.f32 %v1474_v54, %v5061_v10 }
 0xd95   :  { %v1495_v33 = vpop.permute.xlu0 %1494 }
 0xd96   :  { %v1497_v37 = vmul.f32 %v1495_v33, %v1474_v54  ;;  %v142_v33 = vadd.f32 %v6084_v30, %v4099_v21 }
 0xde8   :  { %v1349_v31 = vpop.f32.mrf.mxu3  ;;  %v1329_v38 = vpop.f32.mrf.mxu2 }
 0xde9   :  { %v5117_v17 = vadd.f32 %v1349_v31, %v6081_v36  ;;  %v1330_v0 = vadd.f32 %v1329_v38, %v6060_v43 }
 0xdeb   :  { %3720 = vtanh.f32 %v5117_v17  ;;  %v3497_v59 = vmul.f32 -1.442695, %v1330_v0  ;;  %v3498_v45 = vmul.f32 -1.442695, %v5117_v17 }
 0xded   :  { %3722 = vpow2.f32 %v3497_v59 }
 0xdf1   :  { %v3721_v28 = vpop.eup %3720 }
 0xdf2   :  { %1393 = vrot.lane.b32.xlu2 %v3721_v28, %s3955_s8 }
 0xdf3   :  { %v3723_v40 = vpop.eup %3722 }
 0xdf4   :  { %v1358_v48 = vadd.f32 1.0, %v3723_v40  ;;  %v6085_v40 = vld [vmem:[#allocation9_spill] sm:$0xff] }
 0xdf6   :  { %3724 = vrcp.f32 %v1358_v48  ;;  %v1371_v14 = vand.u32 2147483648, %v1358_v48  ;;  %vm1365_vm11 = vweird.f32 %v1358_v48  ;;  %v1369_v52 = vand.u32 2147483647, %v1358_v48 }
 0xdf8   :  { %v1372_v56 = vor.u32 1.1754944e-38, %v1371_v14  ;;  %vm1370_vm13 = vcmp.eq.f32.partialorder %v1369_v52, 8.507059e+37 }
 0xdfa   :  { %1499 = vrot.lane.b32.xlu2 %v1497_v37, %s3955_s8 }
 0xdfc   :  { %v3725_v29 = vpop.eup %3724 }
 0xdfd   :  { %v1361_v60 = vmul.f32 %v3725_v29, %v1358_v48  ;;  %vm1366_vm10 = vweird.f32 %v3725_v29  ;;  %v101_v48 = vadd.f32 %v6085_v40, %v6079_v62 }
 0xdfe   :  { %vm1367_vm12 = vmor %vm1365_vm11, %vm1366_vm10 }
 0xdff   :  { %v1362_v1 = vsub.f32 1.0, %v1361_v60 }
 0xe01   :  { %v1363_v61 = vmul.f32 %v3725_v29, %v1362_v1 }
 0xe03   :  { %v1364_v6 = vadd.f32 %v3725_v29, %v1363_v61 }
 0xe05   :  { %v1368_v16 = vsel %vm1367_vm12, %v3725_v29, %v1364_v6 }
 0xe06   :  { %v1373_v15 = vsel %vm1370_vm13, %v1372_v56, %v1368_v16 }
 0xe07   :  { %v1391_v53 = vmul.f32 %v1373_v15, %v5067_v51 }
 0xe4c   :  { %v1394_v58 = vpop.permute.xlu2 %1393 }
 0xe4d   :  { %v1396_v49 = vmul.f32 %v1394_v58, %v1373_v15 }
 0xe4f   :  { %1398 = vrot.lane.b32.xlu1 %v1396_v49, %s3955_s8 }
 0xe54   :  { %v1500_v19 = vpop.permute.xlu2 %1499 }
 0xe55   :  { %v5125_v20 = vadd.f32 %v1500_v19, %v1492_v4 }
 0xe57   :  { %3726 = vtanh.f32 %v5125_v20 }
 0xe58   :  { %3728 = vpow2.f32 %v3502_v32 }
 0xe5d   :  { %v3727_v47 = vpop.eup %3726 }
 0xe5e   :  { %1505 = vrot.lane.b32.xlu1 %v3727_v47, %s3955_s8  ;;  %v3729_v63 = vpop.eup %3728 }
 0xe5f   :  { %v1460_v50 = vadd.f32 1.0, %v3729_v63 }
 0xe61   :  { %3730 = vrcp.f32 %v1460_v50  ;;  %v1487_v55 = vand.u32 2147483648, %v1460_v50  ;;  %vm1481_vm15 = vweird.f32 %v1460_v50  ;;  %v1485_v2 = vand.u32 2147483647, %v1460_v50 }
 0xe63   :  { %v1488_v12 = vor.u32 1.1754944e-38, %v1487_v55  ;;  %vm1486_vm2 = vcmp.eq.f32.partialorder %v1485_v2, 8.507059e+37 }
 0xe67   :  { %v3731_v7 = vpop.eup %3730 }
 0xe68   :  { %v1477_v23 = vmul.f32 %v3731_v7, %v1460_v50  ;;  %vm1482_vm14 = vweird.f32 %v3731_v7 }
 0xe69   :  { %vm1483_vm1 = vmor %vm1481_vm15, %vm1482_vm14 }
 0xe6a   :  { %v1478_v10 = vsub.f32 1.0, %v1477_v23 }
 0xe6c   :  { %v1479_v11 = vmul.f32 %v3731_v7, %v1478_v10 }
 0xe6e   :  { %v1480_v27 = vadd.f32 %v3731_v7, %v1479_v11 }
 0xe70   :  { %v1484_v18 = vsel %vm1483_vm1, %v3731_v7, %v1480_v27 }
 0xe71   :  { %v1489_v51 = vsel %vm1486_vm2, %v1488_v12, %v1484_v18 }
 0xec1   :  { %v1399_v34 = vpop.permute.xlu1 %1398 }
 0xec2   :  { %v5131_v3 = vadd.f32 %v1399_v34, %v1391_v53 }
 0xec4   :  { %3732 = vtanh.f32 %v5131_v3 }
 0xec5   :  { %3734 = vpow2.f32 %v3498_v45 }
 0xeca   :  { %v3733_v57 = vpop.eup %3732 }
 0xecb   :  { %1404 = vrot.lane.b32.xlu0 %v3733_v57, %s3955_s8  ;;  %v3735_v46 = vpop.eup %3734 }
 0xecc   :  { %v1359_v25 = vadd.f32 1.0, %v3735_v46 }
 0xece   :  { %3736 = vrcp.f32 %v1359_v25  ;;  %v1386_v31 = vand.u32 2147483648, %v1359_v25  ;;  %vm1380_vm4 = vweird.f32 %v1359_v25  ;;  %v1384_v8 = vand.u32 2147483647, %v1359_v25 }
 0xed0   :  { %v1506_v5 = vpop.permute.xlu1 %1505  ;;  %v1387_v28 = vor.u32 1.1754944e-38, %v1386_v31  ;;  %vm1385_vm6 = vcmp.eq.f32.partialorder %v1384_v8, 8.507059e+37 }
 0xed1   :  { %v1508_v44 = vmul.f32 %v1506_v5, %v1489_v51 }
 0xed3   :  { %3505 = vmatmul.msk.f32.vlgmr.msra.gmra.mxu2 %vm199_vm9, %v1508_v44  ;;  %3506 = vmatmul.msk.f32.vlgmr.msra.gmra.mxu3 %vm199_vm9, %v1508_v44 }
 0xed4   :  { %v3737_v41 = vpop.eup %3736 }
 0xed5   :  { %v1376_v26 = vmul.f32 %v3737_v41, %v1359_v25  ;;  %vm1381_vm3 = vweird.f32 %v3737_v41 }
 0xed6   :  { %vm1382_vm5 = vmor %vm1380_vm4, %vm1381_vm3 }
 0xed7   :  { %v1377_v42 = vsub.f32 1.0, %v1376_v26 }
 0xed9   :  { %v1378_v39 = vmul.f32 %v3737_v41, %v1377_v42 }
 0xedb   :  { %v1379_v13 = vadd.f32 %v3737_v41, %v1378_v39 }
 0xedd   :  { %v1383_v9 = vsel %vm1382_vm5, %v3737_v41, %v1379_v13 }
 0xede   :  { %v1388_v22 = vsel %vm1385_vm6, %v1387_v28, %v1383_v9 }
 0xf3d   :  { %v1405_v24 = vpop.permute.xlu0 %1404 }
 0xf3e   :  { %v1407_v17 = vmul.f32 %v1405_v24, %v1388_v22 }
 0xf40   :  { %1510 = vrot.lane.b32.xlu2 %v1407_v17, %s3955_s8 }
 0xf56   :  { %v1650_v35 = vpop.f32.mrf.mxu3  ;;  %v1630_v59 = vpop.f32.mrf.mxu2 }
 0xf57   :  { %v5141_v54 = vadd.f32 %v1650_v35, %v142_v33  ;;  %v1653_v29 = vadd.f32 %v1630_v59, %v101_v48 }
 0xf59   :  { %3738 = vtanh.f32 %v5141_v54  ;;  %v3507_v60 = vmul.f32 -1.442695, %v1653_v29  ;;  %v3508_v40 = vmul.f32 -1.442695, %v5141_v54 }
 0xf5b   :  { %3740 = vpow2.f32 %v3507_v60 }
 0xf5f   :  { %v3739_v37 = vpop.eup %3738 }
 0xf60   :  { %1696 = vrot.lane.b32.xlu1 %v3739_v37, %s3955_s8 }
 0xf61   :  { %v3741_v21 = vpop.eup %3740 }
 0xf62   :  { %v1661_v1 = vadd.f32 1.0, %v3741_v21 }
 0xf64   :  { %3742 = vrcp.f32 %v1661_v1  ;;  %v1674_v49 = vand.u32 2147483648, %v1661_v1  ;;  %vm1668_vm8 = vweird.f32 %v1661_v1  ;;  %v1672_v62 = vand.u32 2147483647, %v1661_v1 }
 0xf66   :  { %v1675_v47 = vor.u32 1.1754944e-38, %v1674_v49  ;;  %vm1673_vm11 = vcmp.eq.f32.partialorder %v1672_v62, 8.507059e+37 }
 0xf6a   :  { %v3743_v61 = vpop.eup %3742 }
 0xf6b   :  { %v1664_v6 = vmul.f32 %v3743_v61, %v1661_v1  ;;  %vm1669_vm7 = vweird.f32 %v3743_v61 }
 0xf6c   :  { %vm1670_vm10 = vmor %vm1668_vm8, %vm1669_vm7 }
 0xf6d   :  { %v1665_v14 = vsub.f32 1.0, %v1664_v6 }
 0xf6f   :  { %v1666_v56 = vmul.f32 %v3743_v61, %v1665_v14 }
 0xf71   :  { %v1667_v58 = vadd.f32 %v3743_v61, %v1666_v56 }
 0xf73   :  { %v1671_v4 = vsel %vm1670_vm10, %v3743_v61, %v1667_v58 }
 0xf74   :  { %v1676_v32 = vsel %vm1673_vm11, %v1675_v47, %v1671_v4 }
 0xf75   :  { %v1694_v46 = vmul.f32 %v1676_v32, %v5125_v20 }
 0xf9a   :  { %v1511_v38 = vpop.permute.xlu2 %1510 }
 0xf9b   :  { %v1513_v0 = vsel %vm199_vm9, %v1508_v44, %v1511_v38 }
 0xf9c   :  { %1530 = vmatmul.f32.vlgmr.msrb.gmra.mxu0 %v1513_v0  ;;  %1550 = vmatmul.f32.vlgmr.msrb.gmra.mxu1 %v1513_v0 }
 0xfd2   :  { %v1697_v19 = vpop.permute.xlu1 %1696 }
 0xfd3   :  { %v1699_v63 = vmul.f32 %v1697_v19, %v1676_v32 }
0x1019   :  { %v1551_v52 = vpop.f32.mrf.mxu1  ;;  %v1531_v50 = vpop.f32.mrf.mxu0 }
0x101a   :  { %v1552_v16 = vadd.f32 %v1551_v52, %v6081_v36  ;;  %v1532_v7 = vadd.f32 %v1531_v50, %v6060_v43 }
0x101c   :  { %3744 = vtanh.f32 %v1552_v16  ;;  %v3503_v23 = vmul.f32 -1.442695, %v1532_v7  ;;  %v3504_v8 = vmul.f32 -1.442695, %v1552_v16 }
0x101e   :  { %3746 = vpow2.f32 %v3503_v23 }
0x1022   :  { %v3745_v15 = vpop.eup %3744 }
0x1023   :  { %1595 = vrot.lane.b32.xlu0 %v3745_v15, %s3955_s8 }
0x1024   :  { %v3747_v53 = vpop.eup %3746 }
0x1025   :  { %v1560_v34 = vadd.f32 1.0, %v3747_v53 }
0x1027   :  { %3748 = vrcp.f32 %v1560_v34  ;;  %v1573_v2 = vand.u32 2147483648, %v1560_v34  ;;  %vm1567_vm13 = vweird.f32 %v1560_v34  ;;  %v1571_v18 = vand.u32 2147483647, %v1560_v34 }
0x1029   :  { %v1574_v51 = vor.u32 1.1754944e-38, %v1573_v2  ;;  %vm1572_vm15 = vcmp.eq.f32.partialorder %v1571_v18, 8.507059e+37 }
0x102b   :  { %1701 = vrot.lane.b32.xlu0 %v1699_v63, %s3955_s8 }
0x102d   :  { %v3749_v10 = vpop.eup %3748 }
0x102e   :  { %v1563_v11 = vmul.f32 %v3749_v10, %v1560_v34  ;;  %vm1568_vm12 = vweird.f32 %v3749_v10 }
0x102f   :  { %vm1569_vm14 = vmor %vm1567_vm13, %vm1568_vm12 }
0x1030   :  { %v1564_v27 = vsub.f32 1.0, %v1563_v11 }
0x1032   :  { %v1565_v57 = vmul.f32 %v3749_v10, %v1564_v27 }
0x1034   :  { %v1566_v55 = vadd.f32 %v3749_v10, %v1565_v57 }
0x1036   :  { %v1570_v12 = vsel %vm1569_vm14, %v3749_v10, %v1566_v55 }
0x1037   :  { %v1575_v44 = vsel %vm1572_vm15, %v1574_v51, %v1570_v12 }
0x1038   :  { %v1593_v42 = vmul.f32 %v1575_v44, %v5131_v3 }
0x1095   :  { %v1596_v5 = vpop.permute.xlu0 %1595 }
0x1096   :  { %v1598_v45 = vmul.f32 %v1596_v5, %v1575_v44 }
0x1098   :  { %1600 = vrot.lane.b32.xlu2 %v1598_v45, %s3955_s8 }
0x109d   :  { %v1702_v25 = vpop.permute.xlu0 %1701 }
0x109e   :  { %v1704_v41 = vadd.f32 %v1702_v25, %v1694_v46 }
0x10a0   :  { %3750 = vtanh.f32 %v1704_v41 }
0x10a6   :  { %v3751_v26 = vpop.eup %3750 }
0x10a7   :  { %1707 = vrot.lane.b32.xlu2 %v3751_v26, %s3955_s8  ;;  %v1843_v26 = vld [vmem:[%s6016_s4 + $0x220] sm:$0xff] }
0x10a8   :  { %1856 = vmatpush.msra.mxu1 %v1843_v26 }
0x10f2   :  { %v1601_v39 = vpop.permute.xlu2 %1600 }
0x10f3   :  { %v5156_v13 = vadd.f32 %v1601_v39, %v1593_v42  ;;  %v1842_v42 = vld [vmem:[%s6016_s4 + $0x210] sm:$0xff]  ;;  %v1841_v39 = vld [vmem:[%s6016_s4 + $0x200] sm:$0xff] }
0x10f4   :  { %1857 = vmatpush.msra.mxu1 %v1842_v42 }
0x10f5   :  { %3752 = vtanh.f32 %v5156_v13 }
0x10f6   :  { %3754 = vpow2.f32 %v3504_v8  ;;  %1858 = vmatpush.msra.mxu1 %v1841_v39  ;;  %v1839_v8 = vld [vmem:[%s6016_s4 + $0x1e0] sm:$0xff] }
0x10fb   :  { %v3753_v31 = vpop.eup %3752 }
0x10fc   :  { %1606 = vrot.lane.b32.xlu1 %v3753_v31, %s3955_s8  ;;  %v3755_v9 = vpop.eup %3754 }
0x10fd   :  { %v1561_v20 = vadd.f32 1.0, %v3755_v9  ;;  %v1838_v9 = vld [vmem:[%s6016_s4 + $0x1d0] sm:$0xff] }
0x10ff   :  { %3756 = vrcp.f32 %v1561_v20  ;;  %v1588_v3 = vand.u32 2147483648, %v1561_v20  ;;  %vm1582_vm2 = vweird.f32 %v1561_v20  ;;  %v1586_v33 = vand.u32 2147483647, %v1561_v20 }
0x1100   :  { %3758 = vpow2.f32 %v3508_v40  ;;  %v1836_v40 = vld [vmem:[%s6016_s4 + $0x1b0] sm:$0xff] }
0x1101   :  { %v1589_v37 = vor.u32 1.1754944e-38, %v1588_v3  ;;  %vm1587_vm4 = vcmp.eq.f32.partialorder %v1586_v33, 8.507059e+37  ;;  %v1708_v58 = vpop.permute.xlu2 %1707 }
0x1105   :  { %v3757_v28 = vpop.eup %3756 }
0x1106   :  { %v1578_v22 = vmul.f32 %v3757_v28, %v1561_v20  ;;  %vm1583_vm1 = vweird.f32 %v3757_v28  ;;  %v3759_v48 = vpop.eup %3758 }
0x1107   :  { %vm1584_vm3 = vmor %vm1582_vm2, %vm1583_vm1  ;;  %v1662_v29 = vadd.f32 1.0, %v3759_v48  ;;  %v1876_v48 = vld [vmem:[%s6016_s4 + $0x2b0] sm:$0xff] }
0x1108   :  { %v1579_v24 = vsub.f32 1.0, %v1578_v22 }
0x1109   :  { %3760 = vrcp.f32 %v1662_v29  ;;  %v1689_v14 = vand.u32 2147483648, %v1662_v29  ;;  %vm1683_vm6 = vweird.f32 %v1662_v29  ;;  %v1687_v52 = vand.u32 2147483647, %v1662_v29 }
0x110a   :  { %v1580_v17 = vmul.f32 %v3757_v28, %v1579_v24 }
0x110b   :  { %v1690_v56 = vor.u32 1.1754944e-38, %v1689_v14  ;;  %vm1688_vm8 = vcmp.eq.f32.partialorder %v1687_v52, 8.507059e+37  ;;  %v1872_v14 = vld [vmem:[%s6016_s4 + $0x270] sm:$0xff] }
0x110c   :  { %v1581_v30 = vadd.f32 %v3757_v28, %v1580_v17 }
0x110e   :  { %v1585_v35 = vsel %vm1584_vm3, %v3757_v28, %v1581_v30  ;;  %v1837_v28 = vld [vmem:[%s6016_s4 + $0x1c0] sm:$0xff] }
0x110f   :  { %v1590_v38 = vsel %vm1587_vm4, %v1589_v37, %v1585_v35  ;;  %v3761_v60 = vpop.eup %3760 }
0x1110   :  { %v1679_v21 = vmul.f32 %v3761_v60, %v1662_v29  ;;  %vm1684_vm5 = vweird.f32 %v3761_v60  ;;  %v1875_v29 = vld [vmem:[%s6016_s4 + $0x2a0] sm:$0xff] }
0x1111   :  { %vm1685_vm7 = vmor %vm1683_vm6, %vm1684_vm5 }
0x1112   :  { %v1680_v1 = vsub.f32 1.0, %v1679_v21  ;;  %v5211_v21 = vld [vmem:[%s6016_s4 + $0x348] sm:$0xff] }
0x1114   :  { %v1681_v61 = vmul.f32 %v3761_v60, %v1680_v1  ;;  %v1874_v1 = vld [vmem:[%s6016_s4 + $0x290] sm:$0xff] }
0x1116   :  { %v1682_v6 = vadd.f32 %v3761_v60, %v1681_v61  ;;  %v5220_v61 = vld [vmem:[%s6016_s4 + $0x338] sm:$0xff] }
0x1118   :  { %v1686_v16 = vsel %vm1685_vm7, %v3761_v60, %v1682_v6  ;;  %v5206_v60 = vld [vmem:[%s6016_s4 + $0x358] sm:$0xff]  ;;  %v1873_v6 = vld [vmem:[%s6016_s4 + $0x280] sm:$0xff] }
0x1119   :  { %v1691_v15 = vsel %vm1688_vm8, %v1690_v56, %v1686_v16  ;;  %2048 = vmatpush.msra.mxu3 %v5206_v60  ;;  %v1871_v16 = vld [vmem:[%s6016_s4 + $0x260] sm:$0xff]  ;;  %v5237_v56 = vld [vmem:[%s6016_s4 + $0x328] sm:$0xff] }
0x111a   :  { %v1710_v54 = vmul.f32 %v1708_v58, %v1691_v15  ;;  %v1870_v58 = vld [vmem:[%s6016_s4 + $0x250] sm:$0xff]  ;;  %v5246_v15 = vld [vmem:[%s6016_s4 + $0x318] sm:$0xff] }
0x111b   :  { %2049 = vmatpush.msra.mxu3 %v5211_v21 }
0x111d   :  { %2050 = vmatpush.msra.mxu3 %v5220_v61 }
0x111f   :  { %2051 = vmatpush.msra.mxu3 %v5237_v56 }
0x1121   :  { %2052 = vmatpush.msra.mxu3 %v5246_v15 }
0x116e   :  { %v1607_v0 = vpop.permute.xlu1 %1606 }
0x116f   :  { %v1609_v59 = vmul.f32 %v1607_v0, %v1590_v38 }
0x1171   :  { %1712 = vrot.lane.b32.xlu0 %v1609_v59, %s3955_s8  ;;  %v1812_v59 = vld [vmem:[%s6018_s0] sm:$0xff] }
0x11e3   :  { %v1713_v49 = vpop.permute.xlu0 %1712 }
0x11e4   :  { %v1715_v62 = vsel %vm199_vm9, %v1710_v54, %v1713_v49  ;;  %v1869_v54 = vld [vmem:[%s6016_s4 + $0x240] sm:$0xff]  ;;  %v5254_v49 = vld [vmem:[%s6016_s4 + $0x308] sm:$0xff] }
0x11e5   :  { %1732 = vmatmul.f32.vlgmr.msrb.gmra.mxu2 %v1715_v62  ;;  %1752 = vmatmul.f32.vlgmr.msrb.gmra.mxu3 %v1715_v62  ;;  %v1908_v62 = vld [vmem:[%s6016_s4 + $0x2d8] sm:$0xff] }
0x11e6   :  { %2053 = vmatpush.msra.mxu3 %v5254_v49 }
0x1268   :  { %v1753_v4 = vpop.f32.mrf.mxu3  ;;  %v1733_v32 = vpop.f32.mrf.mxu2 }
0x1269   :  { %v1754_v19 = vadd.f32 %v1753_v4, %v6081_v36  ;;  %v1734_v63 = vadd.f32 %v1733_v32, %v6060_v43  ;;  %v5263_v4 = vld [vmem:[%s6016_s4 + $0x2f8] sm:$0xff]  ;;  %v5277_v32 = vld [vmem:[%s6016_s4 + $0x350] sm:$0xff] }
0x126a   :  { %2054 = vmatpush.msra.mxu3 %v5263_v4  ;;  %2028 = vmatpush.msra.mxu2 %v5277_v32 }
0x126b   :  { %3762 = vtanh.f32 %v1754_v19  ;;  %v3509_v50 = vmul.f32 -1.442695, %v1734_v63  ;;  %v3510_v46 = vmul.f32 -1.442695, %v1754_v19  ;;  %v5269_v19 = vld [vmem:[%s6016_s4 + $0x2e8] sm:$0xff]  ;;  %v5282_v63 = vld [vmem:[%s6016_s4 + $0x340] sm:$0xff] }
0x126c   :  { %2055 = vmatpush.msra.mxu3 %v5269_v19  ;;  %2029 = vmatpush.msra.mxu2 %v5282_v63 }
0x126d   :  { %3764 = vpow2.f32 %v3509_v50  ;;  %v5289_v50 = vld [vmem:[%s6016_s4 + $0x330] sm:$0xff] }
0x126e   :  { %2149 = vmatpush.msrb.mxu3 %v5206_v60  ;;  %2030 = vmatpush.msra.mxu2 %v5289_v50 }
0x1270   :  { %2150 = vmatpush.msrb.mxu3 %v5211_v21 }
0x1271   :  { %v3763_v47 = vpop.eup %3762 }
0x1272   :  { %1797 = vrot.lane.b32.xlu1 %v3763_v47, %s3955_s8  ;;  %v6086_v47 = vmov 0.0   ;;  %2151 = vmatpush.msrb.mxu3 %v5220_v61 }
0x1273   :  { %v3765_v7 = vpop.eup %3764  ;;  %2056 = vmatmul.f32.vlgmr.msra.gmra.mxu3 %v6086_v47 }
0x1274   :  { %v1762_v23 = vadd.f32 1.0, %v3765_v7  ;;  %v1907_v7 = vld [vmem:[%s6016_s4 + $0x2d0] sm:$0xff]  ;;  %2152 = vmatpush.msrb.mxu3 %v5237_v56 }
0x1276   :  { %3766 = vrcp.f32 %v1762_v23  ;;  %v1775_v57 = vand.u32 2147483648, %v1762_v23  ;;  %vm1769_vm11 = vweird.f32 %v1762_v23  ;;  %v1773_v36 = vand.u32 2147483647, %v1762_v23  ;;  %2153 = vmatpush.msrb.mxu3 %v5246_v15 }
0x1278   :  { %v1776_v2 = vor.u32 1.1754944e-38, %v1775_v57  ;;  %vm1774_vm13 = vcmp.eq.f32.partialorder %v1773_v36, 8.507059e+37  ;;  %2154 = vmatpush.msrb.mxu3 %v5254_v49  ;;  %v1844_v57 = vld [vmem:[%s6016_s4 + $0x230] ss:$0 sm:$0xff] }
0x127a   :  { %2155 = vmatpush.msrb.mxu3 %v5263_v4 }
0x127c   :  { %v3767_v53 = vpop.eup %3766  ;;  %2156 = vmatpush.msrb.mxu3 %v5269_v19 }
0x127d   :  { %v1765_v34 = vmul.f32 %v3767_v53, %v1762_v23  ;;  %vm1770_vm10 = vweird.f32 %v3767_v53  ;;  %v1901_v23 = vld [vmem:[%s6019_s2] sm:$0xff] }
0x127e   :  { %vm1771_vm12 = vmor %vm1769_vm11, %vm1770_vm10  ;;  %2331 = vmatpush.msra.mxu3 %v5277_v32 }
0x127f   :  { %v1766_v10 = vsub.f32 1.0, %v1765_v34  ;;  %v5310_v34 = vld [vmem:[%s6016_s4 + $0x310] sm:$0xff] }
0x1280   :  { %2332 = vmatpush.msra.mxu3 %v5282_v63 }
0x1281   :  { %v1767_v11 = vmul.f32 %v3767_v53, %v1766_v10  ;;  %v5318_v10 = vld [vmem:[%s6016_s4 + $0x300] sm:$0xff] }
0x1282   :  { %2333 = vmatpush.msra.mxu3 %v5289_v50 }
0x1283   :  { %v1768_v27 = vadd.f32 %v3767_v53, %v1767_v11  ;;  %v5326_v11 = vld [vmem:[%s6016_s4 + $0x2f0] sm:$0xff] }
0x1285   :  { %v1772_v55 = vsel %vm1771_vm12, %v3767_v53, %v1768_v27  ;;  %v5301_v53 = vld [vmem:[%s6016_s4 + $0x320] sm:$0xff] }
0x1286   :  { %v1777_v43 = vsel %vm1774_vm13, %v1776_v2, %v1772_v55  ;;  %2031 = vmatpush.msra.mxu2 %v5301_v53  ;;  %v5334_v27 = vld [vmem:[%s6016_s4 + $0x2e0] sm:$0xff]  ;;  %2334 = vmatpush.msra.mxu3 %v5301_v53 }
0x1287   :  { %v1795_v51 = vmul.f32 %v1777_v43, %v5156_v13  ;;  %v1840_v13 = vld [vmem:[%s6016_s4 + $0x1f0] sm:$0xff] }
0x1288   :  { %1859 = vmatpush.msra.mxu1 %v1840_v13  ;;  %2032 = vmatpush.msra.mxu2 %v5310_v34 }
0x1289   :  { %2335 = vmatpush.msra.mxu3 %v5310_v34 }
0x128a   :  { %1860 = vmatpush.msra.mxu1 %v1839_v8  ;;  %2033 = vmatpush.msra.mxu2 %v5318_v10 }
0x128b   :  { %2336 = vmatpush.msra.mxu3 %v5318_v10 }
0x128c   :  { %1861 = vmatpush.msra.mxu1 %v1838_v9  ;;  %2034 = vmatpush.msra.mxu2 %v5326_v11 }
0x128d   :  { %2337 = vmatpush.msra.mxu3 %v5326_v11 }
0x128e   :  { %1862 = vmatpush.msra.mxu1 %v1837_v28  ;;  %2035 = vmatpush.msra.mxu2 %v5334_v27 }
0x128f   :  { %2036 = vmatmul.f32.vlgmr.msra.gmra.mxu2 %v6086_v47  ;;  %2338 = vmatpush.msra.mxu3 %v5334_v27 }
0x1290   :  { %1863 = vmatpush.msra.mxu1 %v1836_v40  ;;  %2129 = vmatpush.msrb.mxu2 %v5277_v32 }
0x1292   :  { %1949 = vmatpush.msrb.mxu1 %v1907_v7  ;;  %2130 = vmatpush.msrb.mxu2 %v5282_v63 }
0x1294   :  { %2131 = vmatpush.msrb.mxu2 %v5289_v50 }
0x1296   :  { %2132 = vmatpush.msrb.mxu2 %v5301_v53 }
0x1298   :  { %2133 = vmatpush.msrb.mxu2 %v5310_v34 }
0x129a   :  { %2134 = vmatpush.msrb.mxu2 %v5318_v10 }
0x129c   :  { %2135 = vmatpush.msrb.mxu2 %v5326_v11 }
0x129e   :  { %2136 = vmatpush.msrb.mxu2 %v5334_v27 }
0x12a0   :  { %2250 = vmatpush.msra.mxu2 %v5206_v60 }
0x12a2   :  { %2251 = vmatpush.msra.mxu2 %v5211_v21 }
0x12a4   :  { %2252 = vmatpush.msra.mxu2 %v5220_v61 }
0x12a6   :  { %2253 = vmatpush.msra.mxu2 %v5237_v56 }
0x12a8   :  { %2254 = vmatpush.msra.mxu2 %v5246_v15 }
0x12aa   :  { %2255 = vmatpush.msra.mxu2 %v5254_v49 }
0x12ac   :  { %2256 = vmatpush.msra.mxu2 %v5263_v4 }
0x12ae   :  { %2257 = vmatpush.msra.mxu2 %v5269_v19 }
0x12e4   :  { %v1798_v18 = vpop.permute.xlu1 %1797 }
0x12e5   :  { %v1800_v12 = vmul.f32 %v1798_v18, %v1777_v43  ;;  %v3514_v43 = vld [vmem:[%s6016_s4 + $0x360] ss:$8 sm:$0x3] }
0x12e7   :  { %1802 = vrot.lane.b32.xlu2 %v1800_v12, %s3955_s8  ;;  %v5404_v12 = vperm.slane %v3514_v43, 1 }
0x1312   :  { %v2037_v42 = vpop.f32.mrf.mxu2 }
0x1341   :  { %v1803_v5 = vpop.permute.xlu2 %1802 }
0x1342   :  { %v1805_v44 = vadd.f32 %v1803_v5, %v1795_v51  ;;  %v2057_v5 = vpop.f32.mrf.mxu3 }
0x1344   :  { %3768 = vtanh.f32 %v1805_v44 }
0x1345   :  { %3770 = vpow2.f32 %v3510_v46 }
0x134a   :  { %v3769_v45 = vpop.eup %3768 }
0x134b   :  { %1808 = vrot.lane.b32.xlu0 %v3769_v45, %s3955_s8  ;;  %v3771_v25 = vpop.eup %3770 }
0x134c   :  { %v1763_v41 = vadd.f32 1.0, %v3771_v25  ;;  %v5408_v25 = vperm.slane %v3514_v43, 0 }
0x134e   :  { %3772 = vrcp.f32 %v1763_v41  ;;  %v1790_v30 = vand.u32 2147483648, %v1763_v41  ;;  %vm1784_vm15 = vweird.f32 %v1763_v41  ;;  %v1788_v3 = vand.u32 2147483647, %v1763_v41 }
0x1350   :  { %v1791_v35 = vor.u32 1.1754944e-38, %v1790_v30  ;;  %vm1789_vm2 = vcmp.eq.f32.partialorder %v1788_v3, 8.507059e+37 }
0x1354   :  { %v3773_v31 = vpop.eup %3772 }
0x1355   :  { %v1780_v20 = vmul.f32 %v3773_v31, %v1763_v41  ;;  %vm1785_vm14 = vweird.f32 %v3773_v31 }
0x1356   :  { %vm1786_vm1 = vmor %vm1784_vm15, %vm1785_vm14 }
0x1357   :  { %v1781_v22 = vsub.f32 1.0, %v1780_v20 }
0x1359   :  { %v1782_v24 = vmul.f32 %v3773_v31, %v1781_v22 }
0x135b   :  { %v1783_v17 = vadd.f32 %v3773_v31, %v1782_v24 }
0x135d   :  { %v1787_v33 = vsel %vm1786_vm1, %v3773_v31, %v1783_v17 }
0x135e   :  { %v1792_v37 = vsel %vm1789_vm2, %v1791_v35, %v1787_v33 }
0x13bd   :  { %v1809_v38 = vpop.permute.xlu0 %1808 }
0x13be   :  { %v1811_v0 = vmul.f32 %v1809_v38, %v1792_v37 }
0x13c0   :  { %1831 = vmatpush.msra.mxu0 %v1811_v0 }
0x13c1   :  { %3511 = vmatmul.msk.f32.vlgmr.msra.gmra.mxu0 %vm37_vm0, %v1812_v59 }
0x13c2   :  { %1889 = vmatpush.msrb.mxu0 %v1876_v48 }
0x13c4   :  { %1890 = vmatpush.msrb.mxu0 %v1875_v29 }
0x13c6   :  { %1891 = vmatpush.msrb.mxu0 %v1874_v1 }
0x13c8   :  { %1892 = vmatpush.msrb.mxu0 %v1873_v6 }
0x13ca   :  { %1893 = vmatpush.msrb.mxu0 %v1872_v14  ;;  %v1902_v14 = vld [vmem:[%s6019_s2 + $0x8] sm:$0xff] }
0x13cc   :  { %1894 = vmatpush.msrb.mxu0 %v1871_v16 }
0x13ce   :  { %1895 = vmatpush.msrb.mxu0 %v1870_v58 }
0x13d0   :  { %1896 = vmatpush.msrb.mxu0 %v1869_v54 }
0x13d2   :  { %1984 = vmatpush.msra.mxu0 %v1908_v62 }
0x143e   :  { %v1833_v52 = vpop.f32.mrf.mxu0 }
0x143f   :  { %3512 = vmatmul.msk.f32.vlgmr.msra.gmra.mxu1 %vm199_vm9, %v1833_v52 }
0x1440   :  { %2230 = vmatpush.msra.mxu1 %v5277_v32 }
0x1442   :  { %2231 = vmatpush.msra.mxu1 %v5282_v63 }
0x1444   :  { %2232 = vmatpush.msra.mxu1 %v5289_v50 }
0x1446   :  { %2233 = vmatpush.msra.mxu1 %v5301_v53 }
0x1447   :  { %3515 = vmatmul.msk.f32.vlgmr.msrb.gmra.mxu1 %vm37_vm0, %v1901_v23 }
0x1448   :  { %2234 = vmatpush.msra.mxu1 %v5310_v34 }
0x144a   :  { %2235 = vmatpush.msra.mxu1 %v5318_v10 }
0x144c   :  { %2236 = vmatpush.msra.mxu1 %v5326_v11 }
0x144e   :  { %2237 = vmatpush.msra.mxu1 %v5334_v27 }
0x144f   :  { %3516 = vmatmul.msk.f32.gmra.mxu1 %vm37_vm0, %v1902_v14 }
0x1450   :  { %2432 = vmatpush.msrb.mxu1 %v5277_v32 }
0x1452   :  { %2433 = vmatpush.msrb.mxu1 %v5282_v63 }
0x1454   :  { %2434 = vmatpush.msrb.mxu1 %v5289_v50 }
0x1456   :  { %2435 = vmatpush.msrb.mxu1 %v5301_v53 }
0x1458   :  { %2436 = vmatpush.msrb.mxu1 %v5310_v34 }
0x145a   :  { %2437 = vmatpush.msrb.mxu1 %v5318_v10 }
0x145c   :  { %2438 = vmatpush.msrb.mxu1 %v5326_v11 }
0x145e   :  { %2439 = vmatpush.msrb.mxu1 %v5334_v27 }
0x14bc   :  { %v1865_v36 = vpop.f32.mrf.mxu1 }
0x14bd   :  { %v1866_v55 = vadd.f32 %v1865_v36, %v1844_v57 }
0x14bf   :  { %v1868_v2 = vmax.f32 %v1866_v55, 0.0 }
0x14c1   :  { %3513 = vmatmul.msk.f32.vlgmr.msrb.gmra.mxu0 %vm199_vm9, %v1868_v2 }
0x14c2   :  { %2351 = vmatpush.msrb.mxu0 %v5206_v60 }
0x14c4   :  { %2352 = vmatpush.msrb.mxu0 %v5211_v21  ;;  %v1951_v41 = vpop.f32.mrf.mxu1 }
0x14c5   :  { %v1952_v26 = vadd.f32 %v1951_v41, %v5408_v25 }
0x14c6   :  { %2353 = vmatpush.msrb.mxu0 %v5220_v61 }
0x14c7   :  { %v2060_v39 = vadd.f32 %v2037_v42, %v1952_v26 }
0x14c8   :  { %2354 = vmatpush.msrb.mxu0 %v5237_v56 }
0x14c9   :  { %3521 = vmatmul.msk.f32.vlgmr.msra.gmra.mxu0 %vm37_vm0, %v1901_v23  ;;  %v3527_v13 = vmul.f32 -1.442695, %v2060_v39  ;;  %v1903_v39 = vld [vmem:[%s6019_s2 + $0x10] sm:$0xff] }
0x14ca   :  { %2355 = vmatpush.msrb.mxu0 %v5246_v15  ;;  %3517 = vmatmul.msk.f32.gmra.mxu1 %vm37_vm0, %v1903_v39 }
0x14cc   :  { %2356 = vmatpush.msrb.mxu0 %v5254_v49 }
0x14ce   :  { %2357 = vmatpush.msrb.mxu0 %v5263_v4 }
0x14d0   :  { %2358 = vmatpush.msrb.mxu0 %v5269_v19 }
0x14d1   :  { %3522 = vmatmul.msk.f32.gmra.mxu0 %vm37_vm0, %v1902_v14 }
0x14d2   :  { %2553 = vmatpush.msra.mxu0 %v5206_v60 }
0x14d4   :  { %2554 = vmatpush.msra.mxu0 %v5211_v21 }
0x14d6   :  { %2555 = vmatpush.msra.mxu0 %v5220_v61 }
0x14d8   :  { %2556 = vmatpush.msra.mxu0 %v5237_v56 }
0x14d9   :  { %3523 = vmatmul.msk.f32.gmra.mxu0 %vm37_vm0, %v1903_v39 }
0x14da   :  { %2557 = vmatpush.msra.mxu0 %v5246_v15 }
0x14dc   :  { %2558 = vmatpush.msra.mxu0 %v5254_v49 }
0x14de   :  { %2559 = vmatpush.msra.mxu0 %v5263_v4 }
0x14e0   :  { %2560 = vmatpush.msra.mxu0 %v5269_v19 }
0x153e   :  { %v5399_v18 = vpop.f32.mrf.mxu0 }
0x1546   :  { %v1986_v51 = vpop.f32.mrf.mxu0 }
0x1547   :  { %v1987_v44 = vadd.f32 %v1986_v51, %v5404_v12 }
0x1549   :  { %v2061_v45 = vadd.f32 %v2057_v5, %v1987_v44 }
0x154b   :  { %3774 = vtanh.f32 %v2061_v45  ;;  %v3528_v29 = vmul.f32 -1.442695, %v2061_v45 }
0x154c   :  { %3776 = vpow2.f32 %v3527_v13  ;;  %v1904_v13 = vld [vmem:[%s6019_s2 + $0x18] sm:$0xff] }
0x154d   :  { %3518 = vmatmul.msk.f32.gmra.mxu1 %vm37_vm0, %v1904_v13  ;;  %3524 = vmatmul.msk.f32.gmra.mxu0 %vm37_vm0, %v1904_v13 }
0x1551   :  { %v3775_v46 = vpop.eup %3774 }
0x1552   :  { %2103 = vrot.lane.b32.xlu1 %v3775_v46, %s3955_s8  ;;  %v3777_v31 = vpop.eup %3776 }
0x1553   :  { %v2068_v8 = vadd.f32 1.0, %v3777_v31  ;;  %v1905_v31 = vld [vmem:[%s6019_s2 + $0x20] sm:$0xff] }
0x1555   :  { %3778 = vrcp.f32 %v2068_v8  ;;  %vm2075_vm3 = vweird.f32 %v2068_v8  ;;  %v2081_v24 = vand.u32 2147483648, %v2068_v8  ;;  %v2079_v30 = vand.u32 2147483647, %v2068_v8  ;;  %3519 = vmatmul.msk.f32.gmra.mxu1 %vm37_vm0, %v1905_v31  ;;  %3525 = vmatmul.msk.f32.gmra.mxu0 %vm37_vm0, %v1905_v31 }
0x1557   :  { %v2082_v3 = vor.u32 1.1754944e-38, %v2081_v24  ;;  %vm2080_vm6 = vcmp.eq.f32.partialorder %v2079_v30, 8.507059e+37 }
0x155b   :  { %v3779_v9 = vpop.eup %3778 }
0x155c   :  { %v2071_v20 = vmul.f32 %v3779_v9, %v2068_v8  ;;  %vm2076_vm4 = vweird.f32 %v3779_v9 }
0x155d   :  { %vm2077_vm5 = vmor %vm2075_vm3, %vm2076_vm4 }
0x155e   :  { %v2072_v28 = vsub.f32 1.0, %v2071_v20  ;;  %v1906_v20 = vld [vmem:[%s6019_s2 + $0x28] sm:$0xff] }
0x155f   :  { %3520 = vmatmul.msk.f32.gmra.mxu1 %vm37_vm0, %v1906_v20  ;;  %3526 = vmatmul.msk.f32.gmra.mxu0 %vm37_vm0, %v1906_v20 }
0x1560   :  { %v2073_v22 = vmul.f32 %v3779_v9, %v2072_v28 }
0x1562   :  { %v2074_v17 = vadd.f32 %v3779_v9, %v2073_v22 }
0x1564   :  { %v2078_v33 = vsel %vm2077_vm5, %v3779_v9, %v2074_v17 }
0x1565   :  { %v2083_v35 = vsel %vm2080_vm6, %v2082_v3, %v2078_v33 }
0x1566   :  { %v2101_v0 = vmul.f32 0.0, %v2083_v35 }
0x15c4   :  { %v2104_v37 = vpop.permute.xlu1 %2103 }
0x15c5   :  { %v2106_v38 = vmul.f32 %v2104_v37, %v2083_v35 }
0x15c7   :  { %2108 = vrot.lane.b32.xlu2 %v2106_v38, %s3955_s8 }
0x1621   :  { %v2109_v59 = vpop.permute.xlu2 %2108 }
0x1622   :  { %v5412_v40 = vadd.f32 %v2109_v59, %v2101_v0 }
0x1624   :  { %3780 = vtanh.f32 %v5412_v40 }
0x1625   :  { %3782 = vpow2.f32 %v3528_v29 }
0x162a   :  { %v3781_v48 = vpop.eup %3780 }
0x162b   :  { %2114 = vrot.lane.b32.xlu0 %v3781_v48, %s3955_s8  ;;  %v3783_v1 = vpop.eup %3782 }
0x162c   :  { %v2069_v6 = vadd.f32 1.0, %v3783_v1 }
0x162e   :  { %3784 = vrcp.f32 %v2069_v6  ;;  %v2096_v7 = vand.u32 2147483648, %v2069_v6  ;;  %vm2090_vm8 = vweird.f32 %v2069_v6  ;;  %v2094_v23 = vand.u32 2147483647, %v2069_v6 }
0x1630   :  { %v2097_v36 = vor.u32 1.1754944e-38, %v2096_v7  ;;  %vm2095_vm11 = vcmp.eq.f32.partialorder %v2094_v23, 8.507059e+37 }
0x1634   :  { %v3785_v52 = vpop.eup %3784 }
0x1635   :  { %v2086_v16 = vmul.f32 %v3785_v52, %v2069_v6  ;;  %vm2091_vm7 = vweird.f32 %v3785_v52 }
0x1636   :  { %vm2092_vm10 = vmor %vm2090_vm8, %vm2091_vm7 }
0x1637   :  { %v2087_v58 = vsub.f32 1.0, %v2086_v16 }
0x1639   :  { %v2088_v54 = vmul.f32 %v3785_v52, %v2087_v58 }
0x163b   :  { %v2089_v62 = vadd.f32 %v3785_v52, %v2088_v54 }
0x163d   :  { %v2093_v57 = vsel %vm2092_vm10, %v3785_v52, %v2089_v62 }
0x163e   :  { %v2098_v2 = vsel %vm2095_vm11, %v2097_v36, %v2093_v57 }
0x169d   :  { %v2115_v55 = vpop.permute.xlu0 %2114 }
0x169e   :  { %v2117_v43 = vmul.f32 %v2115_v55, %v2098_v2 }
0x16a0   :  { %3529 = vmatmul.msk.f32.vlgmr.msrb.gmra.mxu2 %vm199_vm9, %v2117_v43  ;;  %3530 = vmatmul.msk.f32.vlgmr.msrb.gmra.mxu3 %vm199_vm9, %v2117_v43 }
0x16a1   :  { %2452 = vmatpush.msrb.mxu2 %v5206_v60  ;;  %2533 = vmatpush.msrb.mxu3 %v5277_v32  ;;  %v1989_v60 = vpop.f32.mrf.mxu0 }
0x16a3   :  { %2453 = vmatpush.msrb.mxu2 %v5211_v21  ;;  %2534 = vmatpush.msrb.mxu3 %v5282_v63  ;;  %v1990_v21 = vadd.f32 %v1989_v60, %v5404_v12 }
0x16a5   :  { %2454 = vmatpush.msrb.mxu2 %v5220_v61  ;;  %2535 = vmatpush.msrb.mxu3 %v5289_v50 }
0x16a7   :  { %2455 = vmatpush.msrb.mxu2 %v5237_v56  ;;  %2536 = vmatpush.msrb.mxu3 %v5301_v53 }
0x16a9   :  { %2456 = vmatpush.msrb.mxu2 %v5246_v15  ;;  %2537 = vmatpush.msrb.mxu3 %v5310_v34  ;;  %v1992_v14 = vpop.f32.mrf.mxu0 }
0x16aa   :  { %v1993_v52 = vadd.f32 %v1992_v14, %v5404_v12 }
0x16ab   :  { %2457 = vmatpush.msrb.mxu2 %v5254_v49  ;;  %2538 = vmatpush.msrb.mxu3 %v5318_v10  ;;  %v1954_v49 = vpop.f32.mrf.mxu1 }
0x16ac   :  { %v1955_v32 = vadd.f32 %v1954_v49, %v5408_v25 }
0x16ad   :  { %2458 = vmatpush.msrb.mxu2 %v5263_v4  ;;  %2539 = vmatpush.msrb.mxu3 %v5326_v11 }
0x16af   :  { %2459 = vmatpush.msrb.mxu2 %v5269_v19  ;;  %2540 = vmatpush.msrb.mxu3 %v5334_v27 }
0x16b3   :  { %v1957_v62 = vpop.f32.mrf.mxu1 }
0x16b4   :  { %v1958_v36 = vadd.f32 %v1957_v62, %v5408_v25 }
0x16bb   :  { %v5472_v7 = vpop.f32.mrf.mxu1 }
0x16c3   :  { %v5474_v23 = vpop.f32.mrf.mxu1 }
0x16cb   :  { %v5476_v57 = vpop.f32.mrf.mxu1 }
0x1723   :  { %v2158_v61 = vpop.f32.mrf.mxu3  ;;  %v2138_v63 = vpop.f32.mrf.mxu2 }
0x1724   :  { %v2162_v56 = vadd.f32 %v2158_v61, %v1990_v21  ;;  %v2161_v4 = vadd.f32 %v2138_v63, %v1955_v32 }
0x1726   :  { %3786 = vtanh.f32 %v2162_v56  ;;  %v3531_v50 = vmul.f32 -1.442695, %v2161_v4  ;;  %v3532_v24 = vmul.f32 -1.442695, %v2162_v56 }
0x1728   :  { %3788 = vpow2.f32 %v3531_v50 }
0x172c   :  { %v3787_v15 = vpop.eup %3786 }
0x172d   :  { %2204 = vrot.lane.b32.xlu1 %v3787_v15, %s3955_s8 }
0x172e   :  { %v3789_v53 = vpop.eup %3788 }
0x172f   :  { %v2169_v19 = vadd.f32 1.0, %v3789_v53 }
0x1731   :  { %3790 = vrcp.f32 %v2169_v19  ;;  %v2182_v5 = vand.u32 2147483648, %v2169_v19  ;;  %vm2176_vm13 = vweird.f32 %v2169_v19  ;;  %v2180_v44 = vand.u32 2147483647, %v2169_v19 }
0x1733   :  { %v2183_v46 = vor.u32 1.1754944e-38, %v2182_v5  ;;  %vm2181_vm15 = vcmp.eq.f32.partialorder %v2180_v44, 8.507059e+37 }
0x1737   :  { %v3791_v34 = vpop.eup %3790 }
0x1738   :  { %v2172_v10 = vmul.f32 %v3791_v34, %v2169_v19  ;;  %vm2177_vm12 = vweird.f32 %v3791_v34 }
0x1739   :  { %vm2178_vm14 = vmor %vm2176_vm13, %vm2177_vm12 }
0x173a   :  { %v2173_v11 = vsub.f32 1.0, %v2172_v10 }
0x173c   :  { %v2174_v27 = vmul.f32 %v3791_v34, %v2173_v11 }
0x173e   :  { %v2175_v51 = vadd.f32 %v3791_v34, %v2174_v27 }
0x1740   :  { %v2179_v45 = vsel %vm2178_vm14, %v3791_v34, %v2175_v51 }
0x1741   :  { %v2184_v26 = vsel %vm2181_vm15, %v2183_v46, %v2179_v45 }
0x1742   :  { %v2202_v8 = vmul.f32 %v2184_v26, %v5412_v40 }
0x179f   :  { %v2205_v41 = vpop.permute.xlu1 %2204 }
0x17a0   :  { %v2207_v42 = vmul.f32 %v2205_v41, %v2184_v26 }
0x17a2   :  { %2209 = vrot.lane.b32.xlu2 %v2207_v42, %s3955_s8 }
0x17fc   :  { %v2210_v9 = vpop.permute.xlu2 %2209 }
0x17fd   :  { %v5462_v28 = vadd.f32 %v2210_v9, %v2202_v8 }
0x17ff   :  { %3792 = vtanh.f32 %v5462_v28 }
0x1800   :  { %3794 = vpow2.f32 %v3532_v24 }
0x1805   :  { %v3793_v22 = vpop.eup %3792 }
0x1806   :  { %2215 = vrot.lane.b32.xlu0 %v3793_v22, %s3955_s8  ;;  %v3795_v17 = vpop.eup %3794 }
0x1807   :  { %v2170_v30 = vadd.f32 1.0, %v3795_v17  ;;  %v1995_v17 = vpop.f32.mrf.mxu0 }
0x1809   :  { %3796 = vrcp.f32 %v2170_v30  ;;  %v2197_v0 = vand.u32 2147483648, %v2170_v30  ;;  %vm2191_vm2 = vweird.f32 %v2170_v30  ;;  %v2195_v59 = vand.u32 2147483647, %v2170_v30 }
0x180b   :  { %v2198_v48 = vor.u32 1.1754944e-38, %v2197_v0  ;;  %vm2196_vm0 = vcmp.eq.f32.partialorder %v2195_v59, 8.507059e+37  ;;  %v1961_v59 = vadd.f32 %v5472_v7, %v5408_v25 }
0x180f   :  { %v3797_v3 = vpop.eup %3796 }
0x1810   :  { %v2187_v33 = vmul.f32 %v3797_v3, %v2170_v30  ;;  %vm2192_vm1 = vweird.f32 %v3797_v3  ;;  %v5484_v30 = vpop.f32.mrf.mxu0 }
0x1811   :  { %vm2193_vm3 = vmor %vm2191_vm2, %vm2192_vm1 }
0x1812   :  { %v2188_v35 = vsub.f32 1.0, %v2187_v33  ;;  %v1996_v33 = vadd.f32 %v1995_v17, %v5404_v12 }
0x1814   :  { %v2189_v37 = vmul.f32 %v3797_v3, %v2188_v35 }
0x1816   :  { %v2190_v38 = vadd.f32 %v3797_v3, %v2189_v37 }
0x1818   :  { %v2194_v40 = vsel %vm2193_vm3, %v3797_v3, %v2190_v38  ;;  %v5486_v3 = vpop.f32.mrf.mxu0 }
0x1819   :  { %v2199_v29 = vsel %vm2196_vm0, %v2198_v48, %v2194_v40 }
0x1878   :  { %v2216_v1 = vpop.permute.xlu0 %2215 }
0x1879   :  { %v2218_v6 = vmul.f32 %v2216_v1, %v2199_v29 }
0x187b   :  { %3533 = vmatmul.msk.f32.vlgmr.msra.gmra.mxu1 %vm199_vm9, %v2218_v6  ;;  %3534 = vmatmul.msk.f32.vlgmr.msra.gmra.mxu2 %vm199_vm9, %v2218_v6 }
0x18f8   :  { %v2239_v55 = vpop.f32.mrf.mxu1 }
0x18f9   :  { %v2262_v2 = vadd.f32 %v2239_v55, %v1958_v36 }
0x18fb   :  { %v3535_v43 = vmul.f32 -1.442695, %v2262_v2 }
0x18fe   :  { %v2259_v16 = vpop.f32.mrf.mxu2 }
0x18ff   :  { %v2263_v58 = vadd.f32 %v2259_v16, %v1993_v52 }
0x1901   :  { %3798 = vtanh.f32 %v2263_v58  ;;  %v3536_v44 = vmul.f32 -1.442695, %v2263_v58 }
0x1902   :  { %3800 = vpow2.f32 %v3535_v43 }
0x1907   :  { %v3799_v54 = vpop.eup %3798 }
0x1908   :  { %2305 = vrot.lane.b32.xlu1 %v3799_v54, %s3955_s8  ;;  %v3801_v60 = vpop.eup %3800 }
0x1909   :  { %v2270_v21 = vadd.f32 1.0, %v3801_v60 }
0x190b   :  { %3802 = vrcp.f32 %v2270_v21  ;;  %v2283_v63 = vand.u32 2147483648, %v2270_v21  ;;  %vm2277_vm5 = vweird.f32 %v2270_v21  ;;  %v2281_v4 = vand.u32 2147483647, %v2270_v21 }
0x190d   :  { %v2284_v53 = vor.u32 1.1754944e-38, %v2283_v63  ;;  %vm2282_vm7 = vcmp.eq.f32.partialorder %v2281_v4, 8.507059e+37  ;;  %v2626_v63 = vld [vmem:[%s6016_s4 + $0x3a0] sm:$0xff]  ;;  %v2625_v4 = vld [vmem:[%s6016_s4 + $0x390] sm:$0xff] }
0x190e   :  { %2644 = vmatpush.msra.mxu1 %v2626_v63  ;;  %v2002_v63 = vadd.f32 %v5486_v3, %v5404_v12 }
0x1910   :  { %2645 = vmatpush.msra.mxu1 %v2625_v4 }
0x1911   :  { %v3803_v61 = vpop.eup %3802 }
0x1912   :  { %v2273_v56 = vmul.f32 %v3803_v61, %v2270_v21  ;;  %vm2278_vm4 = vweird.f32 %v3803_v61 }
0x1913   :  { %vm2279_vm6 = vmor %vm2277_vm5, %vm2278_vm4  ;;  %vm2628_vm5 = vcmask 261120  }
0x1914   :  { %v2274_v15 = vsub.f32 1.0, %v2273_v56 }
0x1916   :  { %v2275_v49 = vmul.f32 %v3803_v61, %v2274_v15 }
0x1918   :  { %v2276_v32 = vadd.f32 %v3803_v61, %v2275_v49 }
0x191a   :  { %v2280_v50 = vsel %vm2279_vm6, %v3803_v61, %v2276_v32 }
0x191b   :  { %v2285_v34 = vsel %vm2282_vm7, %v2284_v53, %v2280_v50  ;;  %v2624_v50 = vld [vmem:[%s6016_s4 + $0x380] sm:$0xff]  ;;  %v2623_v53 = vld [vmem:[%s6016_s4 + $0x370] sm:$0xff] }
0x191c   :  { %v2303_v11 = vmul.f32 %v2285_v34, %v5462_v28  ;;  %2646 = vmatpush.msra.mxu1 %v2624_v50 }
0x191e   :  { %2647 = vmatpush.msra.mxu1 %v2623_v53 }
0x197a   :  { %v2306_v19 = vpop.permute.xlu1 %2305 }
0x197b   :  { %v2308_v10 = vmul.f32 %v2306_v19, %v2285_v34 }
0x197d   :  { %2310 = vrot.lane.b32.xlu2 %v2308_v10, %s3955_s8 }
0x19d7   :  { %v2311_v27 = vpop.permute.xlu2 %2310 }
0x19d8   :  { %v2313_v51 = vadd.f32 %v2311_v27, %v2303_v11 }
0x19da   :  { %3804 = vtanh.f32 %v2313_v51 }
0x19db   :  { %3806 = vpow2.f32 %v3536_v44 }
0x19e0   :  { %v3805_v5 = vpop.eup %3804 }
0x19e1   :  { %2316 = vrot.lane.b32.xlu0 %v3805_v5, %s3955_s8  ;;  %v3807_v45 = vpop.eup %3806 }
0x19e2   :  { %v2271_v46 = vadd.f32 1.0, %v3807_v45 }
0x19e4   :  { %3808 = vrcp.f32 %v2271_v46  ;;  %v2298_v31 = vand.u32 2147483648, %v2271_v46  ;;  %vm2292_vm10 = vweird.f32 %v2271_v46  ;;  %v2296_v8 = vand.u32 2147483647, %v2271_v46 }
0x19e6   :  { %v2299_v20 = vor.u32 1.1754944e-38, %v2298_v31  ;;  %vm2297_vm12 = vcmp.eq.f32.partialorder %v2296_v8, 8.507059e+37 }
0x19ea   :  { %v3809_v41 = vpop.eup %3808 }
0x19eb   :  { %v2288_v26 = vmul.f32 %v3809_v41, %v2271_v46  ;;  %vm2293_vm8 = vweird.f32 %v3809_v41 }
0x19ec   :  { %vm2294_vm11 = vmor %vm2292_vm10, %vm2293_vm8 }
0x19ed   :  { %v2289_v42 = vsub.f32 1.0, %v2288_v26 }
0x19ef   :  { %v2290_v39 = vmul.f32 %v3809_v41, %v2289_v42  ;;  %v1877_v42 = vld [vmem:[%s6016_s4 + $0x2c0] ss:$0 sm:$0xff] }
0x19f1   :  { %v2291_v13 = vadd.f32 %v3809_v41, %v2290_v39  ;;  %v5515_v39 = vadd.f32 %v5399_v18, %v1877_v42 }
0x19f3   :  { %v2295_v9 = vsel %vm2294_vm11, %v3809_v41, %v2291_v13  ;;  %v1999_v13 = vadd.f32 %v5484_v30, %v5404_v12  ;;  %v1967_v12 = vadd.f32 %v5476_v57, %v5408_v25 }
0x19f4   :  { %v2300_v28 = vsel %vm2297_vm12, %v2299_v20, %v2295_v9 }
0x1a53   :  { %v2317_v22 = vpop.permute.xlu0 %2316 }
0x1a54   :  { %v2319_v24 = vmul.f32 %v2317_v22, %v2300_v28  ;;  %v1964_v28 = vadd.f32 %v5474_v23, %v5408_v25 }
0x1a56   :  { %3537 = vmatmul.msk.f32.vlgmr.msra.gmra.mxu3 %vm199_vm9, %v2319_v24  ;;  %3538 = vmatmul.msk.f32.vlgmr.msrb.gmra.mxu0 %vm199_vm9, %v2319_v24 }
0x1ad3   :  { %v2360_v35 = vpop.f32.mrf.mxu0 }
0x1ad4   :  { %v2364_v37 = vadd.f32 %v2360_v35, %v1996_v33 }
0x1ad6   :  { %3810 = vtanh.f32 %v2364_v37  ;;  %v3540_v15 = vmul.f32 -1.442695, %v2364_v37 }
0x1ad9   :  { %v2340_v0 = vpop.f32.mrf.mxu3 }
0x1ada   :  { %v2363_v40 = vadd.f32 %v2340_v0, %v1961_v59 }
0x1adc   :  { %v3811_v38 = vpop.eup %3810  ;;  %v3539_v48 = vmul.f32 -1.442695, %v2363_v40 }
0x1add   :  { %2406 = vrot.lane.b32.xlu1 %v3811_v38, %s3955_s8 }
0x1ade   :  { %3812 = vpow2.f32 %v3539_v48 }
0x1ae4   :  { %v3813_v29 = vpop.eup %3812 }
0x1ae5   :  { %v2371_v1 = vadd.f32 1.0, %v3813_v29 }
0x1ae7   :  { %3814 = vrcp.f32 %v2371_v1  ;;  %v2384_v54 = vand.u32 2147483648, %v2371_v1  ;;  %vm2378_vm14 = vweird.f32 %v2371_v1  ;;  %v2382_v62 = vand.u32 2147483647, %v2371_v1 }
0x1ae9   :  { %v2385_v55 = vor.u32 1.1754944e-38, %v2384_v54  ;;  %vm2383_vm1 = vcmp.eq.f32.partialorder %v2382_v62, 8.507059e+37 }
0x1aed   :  { %v3815_v6 = vpop.eup %3814 }
0x1aee   :  { %v2374_v14 = vmul.f32 %v3815_v6, %v2371_v1  ;;  %vm2379_vm13 = vweird.f32 %v3815_v6 }
0x1aef   :  { %vm2380_vm15 = vmor %vm2378_vm14, %vm2379_vm13 }
0x1af0   :  { %v2375_v52 = vsub.f32 1.0, %v2374_v14 }
0x1af2   :  { %v2376_v16 = vmul.f32 %v3815_v6, %v2375_v52 }
0x1af4   :  { %v2377_v58 = vadd.f32 %v3815_v6, %v2376_v16 }
0x1af6   :  { %v2381_v36 = vsel %vm2380_vm15, %v3815_v6, %v2377_v58 }
0x1af7   :  { %v2386_v2 = vsel %vm2383_vm1, %v2385_v55, %v2381_v36 }
0x1af8   :  { %v2404_v60 = vmul.f32 %v2386_v2, %v2313_v51 }
0x1b4f   :  { %v2407_v7 = vpop.permute.xlu1 %2406 }
0x1b50   :  { %v2409_v43 = vmul.f32 %v2407_v7, %v2386_v2 }
0x1b52   :  { %2411 = vrot.lane.b32.xlu2 %v2409_v43, %s3955_s8 }
0x1bac   :  { %v2412_v21 = vpop.permute.xlu2 %2411 }
0x1bad   :  { %v5493_v61 = vadd.f32 %v2412_v21, %v2404_v60 }
0x1baf   :  { %3816 = vtanh.f32 %v5493_v61 }
0x1bb0   :  { %3818 = vpow2.f32 %v3540_v15 }
0x1bb5   :  { %v3817_v56 = vpop.eup %3816 }
0x1bb6   :  { %2417 = vrot.lane.b32.xlu0 %v3817_v56, %s3955_s8  ;;  %v3819_v49 = vpop.eup %3818 }
0x1bb7   :  { %v2372_v32 = vadd.f32 1.0, %v3819_v49 }
0x1bb9   :  { %3820 = vrcp.f32 %v2372_v32  ;;  %v2399_v51 = vand.u32 2147483648, %v2372_v32  ;;  %vm2393_vm3 = vweird.f32 %v2372_v32  ;;  %v2397_v5 = vand.u32 2147483647, %v2372_v32 }
0x1bbb   :  { %v2400_v45 = vor.u32 1.1754944e-38, %v2399_v51  ;;  %vm2398_vm4 = vcmp.eq.f32.partialorder %v2397_v5, 8.507059e+37 }
0x1bbf   :  { %v3821_v19 = vpop.eup %3820 }
0x1bc0   :  { %v2389_v34 = vmul.f32 %v3821_v19, %v2372_v32  ;;  %vm2394_vm2 = vweird.f32 %v3821_v19 }
0x1bc1   :  { %vm2395_vm0 = vmor %vm2393_vm3, %vm2394_vm2 }
0x1bc2   :  { %v2390_v10 = vsub.f32 1.0, %v2389_v34 }
0x1bc4   :  { %v2391_v11 = vmul.f32 %v3821_v19, %v2390_v10 }
0x1bc6   :  { %v2392_v27 = vadd.f32 %v3821_v19, %v2391_v11 }
0x1bc8   :  { %v2396_v44 = vsel %vm2395_vm0, %v3821_v19, %v2392_v27  ;;  %v2627_v19 = vld [vmem:[%s6016_s4 + $0x3b0] ss:$0 sm:$0xff] }
0x1bc9   :  { %v2401_v46 = vsel %vm2398_vm4, %v2400_v45, %v2396_v44 }
0x1c28   :  { %v2418_v41 = vpop.permute.xlu0 %2417 }
0x1c29   :  { %v2420_v26 = vmul.f32 %v2418_v41, %v2401_v46 }
0x1c2b   :  { %3541 = vmatmul.msk.f32.vlgmr.msrb.gmra.mxu1 %vm199_vm9, %v2420_v26  ;;  %3542 = vmatmul.msk.f32.vlgmr.msrb.gmra.mxu2 %vm199_vm9, %v2420_v26 }
0x1c33   :  { %3549 = vmatmul.msk.f32.vlgmr.msra.gmra.mxu1 %vm2628_vm5, %v5515_v39 }
0x1ca8   :  { %v2441_v20 = vpop.f32.mrf.mxu1 }
0x1ca9   :  { %v2464_v22 = vadd.f32 %v2441_v20, %v1964_v28  ;;  %v2673_v28 = vld [vmem:[%s6016_s4 + $0x4b0] sm:$0xff] }
0x1caa   :  { %2675 = vmatpush.msra.mxu2 %v2673_v28  ;;  %v2739_v28 = vld [vmem:[%s6016_s4 + $0x560] sm:$0xff] }
0x1cab   :  { %v3543_v24 = vmul.f32 -1.442695, %v2464_v22  ;;  %v2672_v22 = vld [vmem:[%s6016_s4 + $0x4a0] sm:$0xff] }
0x1cac   :  { %2676 = vmatpush.msra.mxu2 %v2672_v22  ;;  %v2782_v22 = vld [vmem:[%s6016_s4 + $0x680] sm:$0xff] }
0x1cad   :  { %2795 = vmatpush.msrb.mxu1 %v2782_v22 }
0x1cae   :  { %v2461_v31 = vpop.f32.mrf.mxu2 }
0x1caf   :  { %v2465_v8 = vadd.f32 %v2461_v31, %v1999_v13 }
0x1cb0   :  { %v2649_v34 = vpop.f32.mrf.mxu1 }
0x1cb1   :  { %3822 = vtanh.f32 %v2465_v8  ;;  %v3544_v58 = vmul.f32 -1.442695, %v2465_v8  ;;  %v2650_v10 = vadd.f32 %v2649_v34, %v2627_v19 }
0x1cb2   :  { %3824 = vpow2.f32 %v3543_v24  ;;  %v2671_v24 = vld [vmem:[%s6016_s4 + $0x490] sm:$0xff] }
0x1cb3   :  { %v2652_v11 = vmax.f32 %v2650_v10, 0.0  ;;  %2677 = vmatpush.msra.mxu2 %v2671_v24  ;;  %v2698_v10 = vld [vmem:[%s6016_s4 + $0x4f0] sm:$0xff] }
0x1cb4   :  { %v2781_v24 = vld [vmem:[%s6016_s4 + $0x670] sm:$0xff] }
0x1cb5   :  { %2796 = vmatpush.msrb.mxu1 %v2781_v24 }
0x1cb7   :  { %v3823_v9 = vpop.eup %3822 }
0x1cb8   :  { %2507 = vrot.lane.b32.xlu1 %v3823_v9, %s3955_s8  ;;  %v3825_v18 = vpop.eup %3824 }
0x1cb9   :  { %v2472_v17 = vadd.f32 1.0, %v3825_v18  ;;  %v2670_v18 = vld [vmem:[%s6016_s4 + $0x480] sm:$0xff] }
0x1cba   :  { %2678 = vmatpush.msra.mxu2 %v2670_v18  ;;  %v2780_v18 = vld [vmem:[%s6016_s4 + $0x660] sm:$0xff] }
0x1cbb   :  { %3826 = vrcp.f32 %v2472_v17  ;;  %v2485_v0 = vand.u32 2147483648, %v2472_v17  ;;  %vm2479_vm7 = vweird.f32 %v2472_v17  ;;  %v2483_v59 = vand.u32 2147483647, %v2472_v17  ;;  %2797 = vmatpush.msrb.mxu1 %v2780_v18 }
0x1cbd   :  { %v2486_v48 = vor.u32 1.1754944e-38, %v2485_v0  ;;  %vm2484_vm10 = vcmp.eq.f32.partialorder %v2483_v59, 8.507059e+37  ;;  %v2663_v0 = vld [vmem:[%s6016_s4 + $0x410] sm:$0xff]  ;;  %v2662_v59 = vld [vmem:[%s6016_s4 + $0x400] sm:$0xff] }
0x1cc1   :  { %v3827_v33 = vpop.eup %3826 }
0x1cc2   :  { %v2475_v35 = vmul.f32 %v3827_v33, %v2472_v17  ;;  %vm2480_vm6 = vweird.f32 %v3827_v33  ;;  %v2669_v17 = vld [vmem:[%s6016_s4 + $0x470] sm:$0xff] }
0x1cc3   :  { %vm2481_vm8 = vmor %vm2479_vm7, %vm2480_vm6  ;;  %2679 = vmatpush.msra.mxu2 %v2669_v17  ;;  %v2779_v17 = vld [vmem:[%s6016_s4 + $0x650] sm:$0xff] }
0x1cc4   :  { %v2476_v37 = vsub.f32 1.0, %v2475_v35  ;;  %v2667_v35 = vld [vmem:[%s6016_s4 + $0x450] sm:$0xff]  ;;  %2798 = vmatpush.msrb.mxu1 %v2779_v17 }
0x1cc6   :  { %v2477_v30 = vmul.f32 %v3827_v33, %v2476_v37  ;;  %v2666_v37 = vld [vmem:[%s6016_s4 + $0x440] sm:$0xff] }
0x1cc8   :  { %v2478_v38 = vadd.f32 %v3827_v33, %v2477_v30  ;;  %v2665_v30 = vld [vmem:[%s6016_s4 + $0x430] sm:$0xff] }
0x1cca   :  { %v2482_v40 = vsel %vm2481_vm8, %v3827_v33, %v2478_v38  ;;  %v2668_v33 = vld [vmem:[%s6016_s4 + $0x460] sm:$0xff]  ;;  %vm2750_vm8 = vcmask 654336  }
0x1ccb   :  { %v2487_v29 = vsel %vm2484_vm10, %v2486_v48, %v2482_v40  ;;  %2680 = vmatpush.msra.mxu2 %v2668_v33  ;;  %v2664_v38 = vld [vmem:[%s6016_s4 + $0x420] sm:$0xff] }
0x1ccc   :  { %v2505_v6 = vmul.f32 %v2487_v29, %v5493_v61  ;;  %v2778_v33 = vld [vmem:[%s6016_s4 + $0x640] sm:$0xff] }
0x1ccd   :  { %2681 = vmatpush.msra.mxu2 %v2667_v35  ;;  %2799 = vmatpush.msrb.mxu1 %v2778_v33 }
0x1ccf   :  { %2682 = vmatpush.msra.mxu2 %v2666_v37 }
0x1cd1   :  { %2683 = vmatpush.msra.mxu2 %v2665_v30 }
0x1cd3   :  { %2684 = vmatpush.msra.mxu2 %v2664_v38 }
0x1cd5   :  { %2685 = vmatpush.msra.mxu2 %v2663_v0  ;;  %v2777_v0 = vld [vmem:[%s6016_s4 + $0x630] sm:$0xff] }
0x1cd6   :  { %2800 = vmatpush.msrb.mxu1 %v2777_v0 }
0x1cd7   :  { %2686 = vmatpush.msra.mxu2 %v2662_v59  ;;  %v2776_v59 = vld [vmem:[%s6016_s4 + $0x620] sm:$0xff] }
0x1cd8   :  { %2801 = vmatpush.msrb.mxu1 %v2776_v59 }
0x1d2a   :  { %v2508_v23 = vpop.permute.xlu1 %2507 }
0x1d2b   :  { %v2510_v1 = vmul.f32 %v2508_v23, %v2487_v29  ;;  %v2661_v23 = vld [vmem:[%s6016_s4 + $0x3f0] sm:$0xff] }
0x1d2c   :  { %2687 = vmatpush.msra.mxu2 %v2661_v23  ;;  %v2822_v23 = vld [vmem:[%s6016_s4 + $0x710] sm:$0xff] }
0x1d2d   :  { %2512 = vrot.lane.b32.xlu2 %v2510_v1, %s3955_s8  ;;  %v2660_v1 = vld [vmem:[%s6016_s4 + $0x3e0] sm:$0xff] }
0x1d2e   :  { %2688 = vmatpush.msra.mxu2 %v2660_v1  ;;  %v2820_v1 = vld [vmem:[%s6016_s4 + $0x700] sm:$0xff] }
0x1d87   :  { %v2513_v14 = vpop.permute.xlu2 %2512 }
0x1d88   :  { %v5526_v52 = vadd.f32 %v2513_v14, %v2505_v6 }
0x1d8a   :  { %3828 = vtanh.f32 %v5526_v52 }
0x1d8b   :  { %3830 = vpow2.f32 %v3544_v58  ;;  %v2659_v58 = vld [vmem:[%s6016_s4 + $0x3d0] sm:$0xff] }
0x1d8c   :  { %2689 = vmatpush.msra.mxu2 %v2659_v58  ;;  %v2819_v58 = vld [vmem:[%s6016_s4 + $0x6f8] sm:$0xff] }
0x1d90   :  { %v3829_v16 = vpop.eup %3828 }
0x1d91   :  { %2518 = vrot.lane.b32.xlu0 %v3829_v16, %s3955_s8  ;;  %v3831_v54 = vpop.eup %3830 }
0x1d92   :  { %v2473_v62 = vadd.f32 1.0, %v3831_v54  ;;  %v2658_v54 = vld [vmem:[%s6016_s4 + $0x3c0] sm:$0xff] }
0x1d93   :  { %2690 = vmatpush.msra.mxu2 %v2658_v54  ;;  %v2816_v54 = vld [vmem:[%s6016_s4 + $0x6e0] sm:$0xff] }
0x1d94   :  { %3832 = vrcp.f32 %v2473_v62  ;;  %v2500_v60 = vand.u32 2147483648, %v2473_v62  ;;  %vm2494_vm12 = vweird.f32 %v2473_v62  ;;  %v2498_v21 = vand.u32 2147483647, %v2473_v62 }
0x1d96   :  { %v2501_v56 = vor.u32 1.1754944e-38, %v2500_v60  ;;  %vm2499_vm14 = vcmp.eq.f32.partialorder %v2498_v21, 8.507059e+37 }
0x1d9a   :  { %v3833_v36 = vpop.eup %3832 }
0x1d9b   :  { %v2490_v55 = vmul.f32 %v3833_v36, %v2473_v62  ;;  %vm2495_vm11 = vweird.f32 %v3833_v36  ;;  %v2703_v62 = vld [vmem:[%s6016_s4 + $0x540] sm:$0xff] }
0x1d9c   :  { %vm2496_vm13 = vmor %vm2494_vm12, %vm2495_vm11  ;;  %2716 = vmatpush.msra.mxu3 %v2703_v62  ;;  %v5736_v62 = vld [vmem:[%s6016_s4 + $0x790] sm:$0xff] }
0x1d9d   :  { %v2491_v7 = vsub.f32 1.0, %v2490_v55  ;;  %v2701_v55 = vld [vmem:[%s6016_s4 + $0x520] sm:$0xff] }
0x1d9f   :  { %v2492_v2 = vmul.f32 %v3833_v36, %v2491_v7  ;;  %v2700_v7 = vld [vmem:[%s6016_s4 + $0x510] sm:$0xff] }
0x1da1   :  { %v2493_v43 = vadd.f32 %v3833_v36, %v2492_v2 }
0x1da3   :  { %v2497_v61 = vsel %vm2496_vm13, %v3833_v36, %v2493_v43  ;;  %v2702_v36 = vld [vmem:[%s6016_s4 + $0x530] sm:$0xff]  ;;  %v2699_v43 = vld [vmem:[%s6016_s4 + $0x500] sm:$0xff] }
0x1da4   :  { %v2502_v15 = vsel %vm2499_vm14, %v2501_v56, %v2497_v61  ;;  %2717 = vmatpush.msra.mxu3 %v2702_v36  ;;  %v5741_v36 = vld [vmem:[%s6016_s4 + $0x758] sm:$0xff] }
0x1da6   :  { %2718 = vmatpush.msra.mxu3 %v2701_v55  ;;  %v2817_v55 = vld [vmem:[%s6016_s4 + $0x6e8] sm:$0xff] }
0x1da8   :  { %2719 = vmatpush.msra.mxu3 %v2700_v7  ;;  %v2814_v7 = vld [vmem:[%s6016_s4 + $0x6d0] sm:$0xff] }
0x1daa   :  { %2720 = vmatpush.msra.mxu3 %v2699_v43  ;;  %v2815_v43 = vld [vmem:[%s6016_s4 + $0x6d8] sm:$0xff] }
0x1dac   :  { %2721 = vmatpush.msra.mxu3 %v2698_v10  ;;  %v2809_v10 = vld [vmem:[%s6016_s4 + $0x6a8] sm:$0xff] }
0x1e03   :  { %v2519_v49 = vpop.permute.xlu0 %2518 }
0x1e04   :  { %v2521_v32 = vmul.f32 %v2519_v49, %v2502_v15 }
0x1e06   :  { %3545 = vmatmul.msk.f32.vlgmr.msrb.gmra.mxu3 %vm199_vm9, %v2521_v32  ;;  %3546 = vmatmul.msk.f32.vlgmr.msra.gmra.mxu0 %vm199_vm9, %v2521_v32 }
0x1e83   :  { %v2562_v4 = vpop.f32.mrf.mxu0 }
0x1e84   :  { %v5534_v50 = vadd.f32 %v2562_v4, %v2002_v63 }
0x1e86   :  { %3834 = vtanh.f32 %v5534_v50  ;;  %v3548_v14 = vmul.f32 -1.442695, %v5534_v50 }
0x1e89   :  { %v2542_v27 = vpop.f32.mrf.mxu3 }
0x1e8a   :  { %v2565_v3 = vadd.f32 %v2542_v27, %v1967_v12  ;;  %v2696_v27 = vld [vmem:[%s6016_s4 + $0x4d0] sm:$0xff]  ;;  %v2728_v12 = vld [vmem:[%s6020_s3] sm:$0xff] }
0x1e8c   :  { %v3835_v53 = vpop.eup %3834  ;;  %v3547_v51 = vmul.f32 -1.442695, %v2565_v3  ;;  %v2674_v3 = vld [vmem:[%s6016_s4 + $0x4c0] ss:$0 sm:$0xff] }
0x1e8d   :  { %2608 = vrot.lane.b32.xlu1 %v3835_v53, %s3955_s8 }
0x1e8e   :  { %3836 = vpow2.f32 %v3547_v51 }
0x1e94   :  { %v3837_v5 = vpop.eup %3836 }
0x1e95   :  { %2654 = vrot.lane.b32.xlu1 %v2652_v11, %s3955_s8  ;;  %v2573_v44 = vadd.f32 1.0, %v3837_v5  ;;  %v2697_v11 = vld [vmem:[%s6016_s4 + $0x4e0] sm:$0xff] }
0x1e96   :  { %2722 = vmatpush.msra.mxu3 %v2697_v11  ;;  %v5810_v11 = vld [vmem:[%s6016_s4 + $0x760] sm:$0xff] }
0x1e97   :  { %3838 = vrcp.f32 %v2573_v44  ;;  %v2586_v13 = vand.u32 2147483648, %v2573_v44  ;;  %vm2580_vm1 = vweird.f32 %v2573_v44  ;;  %v2584_v31 = vand.u32 2147483647, %v2573_v44 }
0x1e98   :  { %2723 = vmatpush.msra.mxu3 %v2696_v27  ;;  %v5816_v27 = vld [vmem:[%s6016_s4 + $0x750] sm:$0xff] }
0x1e99   :  { %v2587_v9 = vor.u32 1.1754944e-38, %v2586_v13  ;;  %vm2585_vm3 = vcmp.eq.f32.partialorder %v2584_v31, 8.507059e+37  ;;  %v2743_v13 = vld [vmem:[%s6016_s4 + $0x5a0] sm:$0xff]  ;;  %v2742_v31 = vld [vmem:[%s6016_s4 + $0x590] sm:$0xff] }
0x1e9a   :  { %2842 = vmatpush.msrb.mxu3 %v2822_v23 }
0x1e9c   :  { %2843 = vmatpush.msrb.mxu3 %v2820_v1 }
0x1e9d   :  { %v3839_v45 = vpop.eup %3838 }
0x1e9e   :  { %v2576_v46 = vmul.f32 %v3839_v45, %v2573_v44  ;;  %vm2581_vm15 = vweird.f32 %v3839_v45 }
0x1e9f   :  { %vm2582_vm2 = vmor %vm2580_vm1, %vm2581_vm15 }
0x1ea0   :  { %v2577_v41 = vsub.f32 1.0, %v2576_v46  ;;  %v2747_v46 = vld [vmem:[%s6016_s4 + $0x5e0] sm:$0xff] }
0x1ea2   :  { %v2578_v26 = vmul.f32 %v3839_v45, %v2577_v41  ;;  %v2746_v41 = vld [vmem:[%s6016_s4 + $0x5d0] sm:$0xff] }
0x1ea4   :  { %v2579_v42 = vadd.f32 %v3839_v45, %v2578_v26  ;;  %v2745_v26 = vld [vmem:[%s6016_s4 + $0x5c0] sm:$0xff] }
0x1ea6   :  { %v2583_v8 = vsel %vm2582_vm2, %v3839_v45, %v2579_v42  ;;  %v2748_v45 = vld [vmem:[%s6016_s4 + $0x5f0] sm:$0xff] }
0x1ea7   :  { %v2588_v57 = vsel %vm2585_vm3, %v2587_v9, %v2583_v8  ;;  %2760 = vmatpush.msrb.mxu0 %v2748_v45  ;;  %v2744_v42 = vld [vmem:[%s6016_s4 + $0x5b0] sm:$0xff]  ;;  %v2741_v8 = vld [vmem:[%s6016_s4 + $0x580] sm:$0xff] }
0x1ea8   :  { %v2606_v40 = vmul.f32 %v2588_v57, %v5526_v52  ;;  %v2740_v9 = vld [vmem:[%s6016_s4 + $0x570] sm:$0xff] }
0x1ea9   :  { %2761 = vmatpush.msrb.mxu0 %v2747_v46  ;;  %v3553_v46 = vld [vmem:[%s6016_s4 + $0x7a0] ss:$8 sm:$0x3] }
0x1eab   :  { %2762 = vmatpush.msrb.mxu0 %v2746_v41  ;;  %v2828_v41 = vperm.slane %v3553_v46, 1 }
0x1ead   :  { %2763 = vmatpush.msrb.mxu0 %v2745_v26 }
0x1eaf   :  { %2764 = vmatpush.msrb.mxu0 %v2744_v42 }
0x1eb1   :  { %2765 = vmatpush.msrb.mxu0 %v2743_v13 }
0x1eb3   :  { %2766 = vmatpush.msrb.mxu0 %v2742_v31 }
0x1eb5   :  { %2767 = vmatpush.msrb.mxu0 %v2741_v8 }
0x1eb7   :  { %2768 = vmatpush.msrb.mxu0 %v2740_v9  ;;  %v2827_v9 = vperm.slane %v3553_v46, 0 }
0x1eb9   :  { %2769 = vmatpush.msrb.mxu0 %v2739_v28 }
0x1ebb   :  { %2898 = vmatpush.msra.mxu0 %v5736_v62 }
0x1eff   :  { %v2609_v25 = vpop.permute.xlu1 %2608 }
0x1f00   :  { %v2611_v20 = vmul.f32 %v2609_v25, %v2588_v57  ;;  %v2704_v25 = vld [vmem:[%s6016_s4 + $0x550] ss:$0 sm:$0xff] }
0x1f02   :  { %2613 = vrot.lane.b32.xlu2 %v2611_v20, %s3955_s8 }
0x1f07   :  { %v2655_v19 = vpop.permute.xlu1 %2654 }
0x1f5c   :  { %v2614_v48 = vpop.permute.xlu2 %2613 }
0x1f5d   :  { %v2616_v29 = vadd.f32 %v2614_v48, %v2606_v40  ;;  %v2775_v40 = vld [vmem:[%s6016_s4 + $0x610] sm:$0xff]  ;;  %v5697_v48 = vld [vmem:[%s6016_s4 + $0x788] sm:$0xff] }
0x1f5e   :  { %2802 = vmatpush.msrb.mxu1 %v2775_v40 }
0x1f5f   :  { %3840 = vtanh.f32 %v2616_v29  ;;  %v2823_v29 = vld [vmem:[%s6016_s4 + $0x718] sm:$0xff] }
0x1f60   :  { %3842 = vpow2.f32 %v3548_v14  ;;  %v2821_v14 = vld [vmem:[%s6016_s4 + $0x708] sm:$0xff]  ;;  %2862 = vmatpush.msra.mxu1 %v2823_v29 }
0x1f62   :  { %2863 = vmatpush.msra.mxu1 %v2821_v14 }
0x1f64   :  { %2864 = vmatpush.msra.mxu1 %v2819_v58 }
0x1f65   :  { %v3841_v6 = vpop.eup %3840 }
0x1f66   :  { %2619 = vrot.lane.b32.xlu0 %v3841_v6, %s3955_s8  ;;  %v3843_v52 = vpop.eup %3842  ;;  %v5712_v6 = vld [vmem:[%s6016_s4 + $0x778] sm:$0xff]  ;;  %2865 = vmatpush.msra.mxu1 %v2817_v55 }
0x1f67   :  { %v2574_v16 = vadd.f32 1.0, %v3843_v52  ;;  %v2818_v52 = vld [vmem:[%s6016_s4 + $0x6f0] sm:$0xff] }
0x1f68   :  { %2844 = vmatpush.msrb.mxu3 %v2818_v52  ;;  %2866 = vmatpush.msra.mxu1 %v2815_v43 }
0x1f69   :  { %3844 = vrcp.f32 %v2574_v16  ;;  %v2601_v15 = vand.u32 2147483648, %v2574_v16  ;;  %vm2595_vm4 = vweird.f32 %v2574_v16  ;;  %v2599_v49 = vand.u32 2147483647, %v2574_v16 }
0x1f6a   :  { %2845 = vmatpush.msrb.mxu3 %v2816_v54 }
0x1f6b   :  { %v2602_v63 = vor.u32 1.1754944e-38, %v2601_v15  ;;  %vm2600_vm7 = vcmp.eq.f32.partialorder %v2599_v49, 8.507059e+37  ;;  %v2812_v49 = vld [vmem:[%s6016_s4 + $0x6c0] sm:$0xff] }
0x1f6c   :  { %2846 = vmatpush.msrb.mxu3 %v2814_v7 }
0x1f6e   :  { %2734 = vrot.lane.b32.xlu0 %v2728_v12, %s3955_s8  ;;  %2847 = vmatpush.msrb.mxu3 %v2812_v49  ;;  %v5823_v12 = vld [vmem:[%s6016_s4 + $0x740] sm:$0xff] }
0x1f6f   :  { %v3845_v2 = vpop.eup %3844 }
0x1f70   :  { %v2591_v60 = vmul.f32 %v3845_v2, %v2574_v16  ;;  %vm2596_vm0 = vweird.f32 %v3845_v2  ;;  %v5724_v16 = vld [vmem:[%s6016_s4 + $0x768] sm:$0xff] }
0x1f71   :  { %vm2597_vm6 = vmor %vm2595_vm4, %vm2596_vm0 }
0x1f72   :  { %v2592_v21 = vsub.f32 1.0, %v2591_v60  ;;  %v5763_v60 = vld [vmem:[%s6016_s4 + $0x738] sm:$0xff] }
0x1f74   :  { %v2593_v61 = vmul.f32 %v3845_v2, %v2592_v21  ;;  %v2749_v21 = vld [vmem:[%s6016_s4 + $0x600] ss:$0 sm:$0xff] }
0x1f76   :  { %v2594_v56 = vadd.f32 %v3845_v2, %v2593_v61 }
0x1f78   :  { %v2598_v32 = vsel %vm2597_vm6, %v3845_v2, %v2594_v56  ;;  %v5754_v2 = vld [vmem:[%s6016_s4 + $0x748] sm:$0xff] }
0x1f79   :  { %v2603_v4 = vsel %vm2600_vm7, %v2602_v63, %v2598_v32  ;;  %v2813_v32 = vld [vmem:[%s6016_s4 + $0x6c8] sm:$0xff]  ;;  %v5780_v63 = vld [vmem:[%s6016_s4 + $0x780] sm:$0xff] }
0x1f7a   :  { %2867 = vmatpush.msra.mxu1 %v2813_v32  ;;  %2899 = vmatpush.msra.mxu0 %v5780_v63 }
0x1fd8   :  { %v2620_v50 = vpop.permute.xlu0 %2619 }
0x1fd9   :  { %v2622_v53 = vmul.f32 %v2620_v50, %v2603_v4  ;;  %v5785_v4 = vld [vmem:[%s6016_s4 + $0x728] sm:$0xff]  ;;  %v2810_v50 = vld [vmem:[%s6016_s4 + $0x6b0] sm:$0xff] }
0x1fda   :  { %2848 = vmatpush.msrb.mxu3 %v2810_v50 }
0x1fdb   :  { %v2657_v34 = vsel %vm199_vm9, %v2622_v53, %v2655_v19  ;;  %v2811_v53 = vld [vmem:[%s6016_s4 + $0x6b8] sm:$0xff]  ;;  %v5798_v19 = vld [vmem:[%s6016_s4 + $0x770] sm:$0xff] }
0x1fdc   :  { %2691 = vmatmul.f32.vlgmr.msra.gmra.mxu2 %v2657_v34  ;;  %v2808_v34 = vld [vmem:[%s6016_s4 + $0x6a0] sm:$0xff]  ;;  %2868 = vmatpush.msra.mxu1 %v2811_v53 }
0x1fdd   :  { %2900 = vmatpush.msra.mxu0 %v5798_v19  ;;  %2849 = vmatpush.msrb.mxu3 %v2808_v34 }
0x1fde   :  { %2869 = vmatpush.msra.mxu1 %v2809_v10 }
0x1fdf   :  { %2901 = vmatpush.msra.mxu0 %v5810_v11 }
0x1fe0   :  { %v2735_v35 = vpop.permute.xlu0 %2734 }
0x1fe1   :  { %2902 = vmatpush.msra.mxu0 %v5816_v27 }
0x1fe3   :  { %2903 = vmatpush.msra.mxu0 %v5823_v12 }
0x205f   :  { %v2692_v51 = vpop.f32.mrf.mxu2 }
0x2060   :  { %v2693_v5 = vadd.f32 %v2692_v51, %v2674_v3  ;;  %v5832_v3 = vld [vmem:[%s6016_s4 + $0x730] sm:$0xff]  ;;  %v5841_v51 = vld [vmem:[%s6016_s4 + $0x720] sm:$0xff] }
0x2061   :  { %2904 = vmatpush.msra.mxu0 %v5832_v3 }
0x2062   :  { %v2695_v44 = vmax.f32 %v2693_v5, 0.0 }
0x2063   :  { %2905 = vmatpush.msra.mxu0 %v5841_v51 }
0x2064   :  { %3550 = vmatmul.msk.f32.vlgmr.msra.gmra.mxu3 %vm199_vm9, %v2695_v44 }
0x2065   :  { %2999 = vmatpush.msra.mxu3 %v5736_v62 }
0x2067   :  { %3000 = vmatpush.msra.mxu3 %v5780_v63 }
0x2069   :  { %3001 = vmatpush.msra.mxu3 %v5798_v19 }
0x206b   :  { %3002 = vmatpush.msra.mxu3 %v5810_v11 }
0x206d   :  { %3003 = vmatpush.msra.mxu3 %v5816_v27 }
0x206f   :  { %3004 = vmatpush.msra.mxu3 %v5823_v12 }
0x2071   :  { %3005 = vmatpush.msra.mxu3 %v5832_v3 }
0x2073   :  { %3006 = vmatpush.msra.mxu3 %v5841_v51 }
0x20e7   :  { %v2725_v57 = vpop.f32.mrf.mxu3 }
0x20e8   :  { %v2726_v20 = vadd.f32 %v2725_v57, %v2704_v25 }
0x20ea   :  { %2730 = vrot.lane.b32.xlu2 %v2726_v20, %s3956_s21 }
0x2144   :  { %v2731_v37 = vpop.permute.xlu2 %2730 }
0x2145   :  { %v2737_v30 = vsel %vm2628_vm5, %v5515_v39, %v2731_v37  ;;  %v5692_v39 = vld [vmem:[%s6016_s4 + $0x798] sm:$0xff] }
0x2146   :  { %v2738_v38 = vsel %vm199_vm9, %v2737_v30, %v2735_v35  ;;  %2918 = vmatpush.msrb.mxu2 %v5692_v39 }
0x2147   :  { %3551 = vmatmul.msk.f32.vlgmr.msrb.gmra.mxu0 %vm2750_vm8, %v2738_v38 }
0x2148   :  { %2919 = vmatpush.msrb.mxu2 %v5697_v48  ;;  %3100 = vmatpush.msrb.mxu0 %v5736_v62 }
0x214a   :  { %2920 = vmatpush.msrb.mxu2 %v5712_v6  ;;  %3101 = vmatpush.msrb.mxu0 %v5780_v63 }
0x214c   :  { %2921 = vmatpush.msrb.mxu2 %v5724_v16  ;;  %3102 = vmatpush.msrb.mxu0 %v5798_v19 }
0x214e   :  { %2922 = vmatpush.msrb.mxu2 %v5741_v36  ;;  %3103 = vmatpush.msrb.mxu0 %v5810_v11 }
0x214f   :  { %2906 = vmatmul.f32.vlgmr.msra.gmra.mxu0 %v6086_v47 }
0x2150   :  { %2923 = vmatpush.msrb.mxu2 %v5754_v2  ;;  %3104 = vmatpush.msrb.mxu0 %v5816_v27 }
0x2152   :  { %2924 = vmatpush.msrb.mxu2 %v5763_v60  ;;  %3105 = vmatpush.msrb.mxu0 %v5823_v12 }
0x2154   :  { %2925 = vmatpush.msrb.mxu2 %v5785_v4  ;;  %3106 = vmatpush.msrb.mxu0 %v5832_v3 }
0x2155   :  { %2926 = vmatmul.f32.vlgmr.msrb.gmra.mxu2 %v6086_v47  ;;  %v2783_v47 = vld [vmem:[%s6016_s4 + $0x690] ss:$0 sm:$0xff] }
0x2156   :  { %3120 = vmatpush.msra.mxu2 %v5692_v39  ;;  %3107 = vmatpush.msrb.mxu0 %v5841_v51 }
0x2158   :  { %3121 = vmatpush.msra.mxu2 %v5697_v48  ;;  %3302 = vmatpush.msra.mxu0 %v5736_v62 }
0x215a   :  { %3122 = vmatpush.msra.mxu2 %v5712_v6  ;;  %3303 = vmatpush.msra.mxu0 %v5780_v63 }
0x215c   :  { %3123 = vmatpush.msra.mxu2 %v5724_v16  ;;  %3304 = vmatpush.msra.mxu0 %v5798_v19 }
0x215e   :  { %3124 = vmatpush.msra.mxu2 %v5741_v36  ;;  %3305 = vmatpush.msra.mxu0 %v5810_v11 }
0x2160   :  { %3125 = vmatpush.msra.mxu2 %v5754_v2  ;;  %3306 = vmatpush.msra.mxu0 %v5816_v27 }
0x2162   :  { %3126 = vmatpush.msra.mxu2 %v5763_v60  ;;  %3307 = vmatpush.msra.mxu0 %v5823_v12 }
0x2164   :  { %3127 = vmatpush.msra.mxu2 %v5785_v4  ;;  %3308 = vmatpush.msra.mxu0 %v5832_v3 }
0x2166   :  { %3322 = vmatpush.msrb.mxu2 %v5692_v39  ;;  %3309 = vmatpush.msra.mxu0 %v5841_v51 }
0x2168   :  { %3323 = vmatpush.msrb.mxu2 %v5697_v48 }
0x216a   :  { %3324 = vmatpush.msrb.mxu2 %v5712_v6 }
0x216c   :  { %3325 = vmatpush.msrb.mxu2 %v5724_v16 }
0x216e   :  { %3326 = vmatpush.msrb.mxu2 %v5741_v36 }
0x2170   :  { %3327 = vmatpush.msrb.mxu2 %v5754_v2 }
0x2172   :  { %3328 = vmatpush.msrb.mxu2 %v5763_v60 }
0x2174   :  { %3329 = vmatpush.msrb.mxu2 %v5785_v4 }
0x21c4   :  { %v2771_v61 = vpop.f32.mrf.mxu0 }
0x21c5   :  { %v2772_v56 = vadd.f32 %v2771_v61, %v2749_v21 }
0x21c7   :  { %v2774_v15 = vmax.f32 %v2772_v56, 0.0 }
0x21c9   :  { %3552 = vmatmul.msk.f32.vlgmr.msrb.gmra.mxu1 %vm199_vm9, %v2774_v15 }
0x21ca   :  { %3019 = vmatpush.msrb.mxu1 %v5692_v39 }
0x21cc   :  { %3020 = vmatpush.msrb.mxu1 %v5697_v48  ;;  %v2907_v20 = vpop.f32.mrf.mxu0 }
0x21ce   :  { %3021 = vmatpush.msrb.mxu1 %v5712_v6 }
0x21d0   :  { %3022 = vmatpush.msrb.mxu1 %v5724_v16 }
0x21d2   :  { %3023 = vmatpush.msrb.mxu1 %v5741_v36 }
0x21d4   :  { %3024 = vmatpush.msrb.mxu1 %v5754_v2 }
0x21d6   :  { %3025 = vmatpush.msrb.mxu1 %v5763_v60 }
0x21d8   :  { %3026 = vmatpush.msrb.mxu1 %v5785_v4  ;;  %v2927_v42 = vpop.f32.mrf.mxu2 }
0x2246   :  { %v2804_v5 = vpop.f32.mrf.mxu1 }
0x2247   :  { %v2805_v44 = vadd.f32 %v2804_v5, %v2783_v47 }
0x2249   :  { %v2807_v45 = vmax.f32 %v2805_v44, 0.0 }
0x224b   :  { %3554 = vmatmul.msk.f32.vlgmr.msrb.gmra.mxu3 %vm199_vm9, %v2807_v45  ;;  %3555 = vmatmul.msk.f32.vlgmr.msra.gmra.mxu1 %vm199_vm9, %v2807_v45 }
0x224c   :  { %3201 = vmatpush.msrb.mxu3 %v5736_v62  ;;  %3221 = vmatpush.msra.mxu1 %v5692_v39 }
0x224e   :  { %3202 = vmatpush.msrb.mxu3 %v5780_v63  ;;  %3222 = vmatpush.msra.mxu1 %v5697_v48 }
0x2250   :  { %3203 = vmatpush.msrb.mxu3 %v5798_v19  ;;  %3223 = vmatpush.msra.mxu1 %v5712_v6 }
0x2252   :  { %3204 = vmatpush.msrb.mxu3 %v5810_v11  ;;  %3224 = vmatpush.msra.mxu1 %v5724_v16 }
0x2254   :  { %3205 = vmatpush.msrb.mxu3 %v5816_v27  ;;  %3225 = vmatpush.msra.mxu1 %v5741_v36 }
0x2256   :  { %3206 = vmatpush.msrb.mxu3 %v5823_v12  ;;  %3226 = vmatpush.msra.mxu1 %v5754_v2 }
0x2258   :  { %3207 = vmatpush.msrb.mxu3 %v5832_v3  ;;  %3227 = vmatpush.msra.mxu1 %v5763_v60 }
0x225a   :  { %3208 = vmatpush.msrb.mxu3 %v5841_v51  ;;  %3228 = vmatpush.msra.mxu1 %v5785_v4 }
0x22c8   :  { %v2871_v26 = vpop.f32.mrf.mxu1 }
0x22c9   :  { %v5911_v13 = vadd.f32 %v2871_v26, %v2828_v41 }
0x22cb   :  { %v2931_v31 = vadd.f32 %v2927_v42, %v5911_v13 }
0x22cd   :  { %3846 = vtanh.f32 %v2931_v31  ;;  %v3557_v52 = vmul.f32 -1.442695, %v2931_v31 }
0x22ce   :  { %v2851_v25 = vpop.f32.mrf.mxu3 }
0x22cf   :  { %v5915_v57 = vadd.f32 %v2851_v25, %v2827_v9 }
0x22d1   :  { %v2930_v28 = vadd.f32 %v2907_v20, %v5915_v57 }
0x22d3   :  { %v3847_v8 = vpop.eup %3846  ;;  %v3556_v22 = vmul.f32 -1.442695, %v2930_v28 }
0x22d4   :  { %2973 = vrot.lane.b32.xlu1 %v3847_v8, %s3955_s8 }
0x22d5   :  { %3848 = vpow2.f32 %v3556_v22 }
0x22db   :  { %v3849_v24 = vpop.eup %3848 }
0x22dc   :  { %v2938_v18 = vadd.f32 1.0, %v3849_v24 }
0x22de   :  { %3850 = vrcp.f32 %v2938_v18  ;;  %v2951_v38 = vand.u32 2147483648, %v2938_v18  ;;  %vm2945_vm10 = vweird.f32 %v2938_v18  ;;  %v2949_v0 = vand.u32 2147483647, %v2938_v18 }
0x22e0   :  { %v2952_v40 = vor.u32 1.1754944e-38, %v2951_v38  ;;  %vm2950_vm12 = vcmp.eq.f32.partialorder %v2949_v0, 8.507059e+37 }
0x22e4   :  { %v3851_v17 = vpop.eup %3850 }
0x22e5   :  { %v2941_v33 = vmul.f32 %v3851_v17, %v2938_v18  ;;  %vm2946_vm5 = vweird.f32 %v3851_v17 }
0x22e6   :  { %vm2947_vm11 = vmor %vm2945_vm10, %vm2946_vm5 }
0x22e7   :  { %v2942_v35 = vsub.f32 1.0, %v2941_v33 }
0x22e9   :  { %v2943_v37 = vmul.f32 %v3851_v17, %v2942_v35 }
0x22eb   :  { %v2944_v30 = vadd.f32 %v3851_v17, %v2943_v37 }
0x22ed   :  { %v2948_v59 = vsel %vm2947_vm11, %v3851_v17, %v2944_v30 }
0x22ee   :  { %v2953_v48 = vsel %vm2950_vm12, %v2952_v40, %v2948_v59 }
0x22ef   :  { %v2971_v29 = vmul.f32 0.0, %v2953_v48 }
0x2346   :  { %v2974_v39 = vpop.permute.xlu1 %2973 }
0x2347   :  { %v2976_v23 = vmul.f32 %v2974_v39, %v2953_v48 }
0x2349   :  { %2978 = vrot.lane.b32.xlu2 %v2976_v23, %s3955_s8 }
0x23a3   :  { %v2979_v1 = vpop.permute.xlu2 %2978 }
0x23a4   :  { %v2981_v6 = vadd.f32 %v2979_v1, %v2971_v29 }
0x23a6   :  { %3852 = vtanh.f32 %v2981_v6 }
0x23a7   :  { %3854 = vpow2.f32 %v3557_v52 }
0x23ac   :  { %v3853_v14 = vpop.eup %3852 }
0x23ad   :  { %2984 = vrot.lane.b32.xlu0 %v3853_v14, %s3955_s8  ;;  %v3855_v16 = vpop.eup %3854 }
0x23ae   :  { %v2939_v58 = vadd.f32 1.0, %v3855_v16 }
0x23b0   :  { %3856 = vrcp.f32 %v2939_v58  ;;  %v2966_v2 = vand.u32 2147483648, %v2939_v58  ;;  %vm2960_vm14 = vweird.f32 %v2939_v58  ;;  %v2964_v43 = vand.u32 2147483647, %v2939_v58 }
0x23b2   :  { %v2967_v21 = vor.u32 1.1754944e-38, %v2966_v2  ;;  %vm2965_vm1 = vcmp.eq.f32.partialorder %v2964_v43, 8.507059e+37 }
0x23b6   :  { %v3857_v54 = vpop.eup %3856 }
0x23b7   :  { %v2956_v62 = vmul.f32 %v3857_v54, %v2939_v58  ;;  %vm2961_vm13 = vweird.f32 %v3857_v54 }
0x23b8   :  { %vm2962_vm15 = vmor %vm2960_vm14, %vm2961_vm13 }
0x23b9   :  { %v2957_v36 = vsub.f32 1.0, %v2956_v62 }
0x23bb   :  { %v2958_v55 = vmul.f32 %v3857_v54, %v2957_v36 }
0x23bd   :  { %v2959_v7 = vadd.f32 %v3857_v54, %v2958_v55 }
0x23bf   :  { %v2963_v60 = vsel %vm2962_vm15, %v3857_v54, %v2959_v7 }
0x23c0   :  { %v2968_v61 = vsel %vm2965_vm1, %v2967_v21, %v2963_v60 }
0x241f   :  { %v2985_v56 = vpop.permute.xlu0 %2984 }
0x2420   :  { %v5920_v15 = vmul.f32 %v2985_v56, %v2968_v61  ;;  %v3399_v61 = vld [vmem:[%s6016_s4 + $0x820] sm:$0xff]  ;;  %v3398_v56 = vld [vmem:[%s6016_s4 + $0x810] sm:$0xff] }
0x2422   :  { %3558 = vmatmul.msk.f32.vlgmr.msra.gmra.mxu3 %vm199_vm9, %v5920_v15  ;;  %3559 = vmatmul.msk.f32.vlgmr.msrb.gmra.mxu1 %vm199_vm9, %v5920_v15 }
0x2423   :  { %3412 = vmatpush.msra.mxu3 %v3399_v61 }
0x2425   :  { %3413 = vmatpush.msra.mxu3 %v3398_v56 }
0x249f   :  { %v3028_v49 = vpop.f32.mrf.mxu1 }
0x24a0   :  { %v3032_v32 = vadd.f32 %v3028_v49, %v5911_v13  ;;  %v3397_v49 = vld [vmem:[%s6016_s4 + $0x800] sm:$0xff] }
0x24a1   :  { %3414 = vmatpush.msra.mxu3 %v3397_v49 }
0x24a2   :  { %3858 = vtanh.f32 %v3032_v32  ;;  %v3561_v9 = vmul.f32 -1.442695, %v3032_v32 }
0x24a5   :  { %v3008_v4 = vpop.f32.mrf.mxu3 }
0x24a6   :  { %v3031_v50 = vadd.f32 %v3008_v4, %v5915_v57 }
0x24a8   :  { %v3859_v63 = vpop.eup %3858  ;;  %v3560_v53 = vmul.f32 -1.442695, %v3031_v50 }
0x24a9   :  { %3074 = vrot.lane.b32.xlu1 %v3859_v63, %s3955_s8 }
0x24aa   :  { %3860 = vpow2.f32 %v3560_v53 }
0x24b0   :  { %v3861_v19 = vpop.eup %3860 }
0x24b1   :  { %v3039_v34 = vadd.f32 1.0, %v3861_v19 }
0x24b3   :  { %3862 = vrcp.f32 %v3039_v34  ;;  %v3052_v51 = vand.u32 2147483648, %v3039_v34  ;;  %vm3046_vm3 = vweird.f32 %v3039_v34  ;;  %v3050_v47 = vand.u32 2147483647, %v3039_v34 }
0x24b5   :  { %v3053_v44 = vor.u32 1.1754944e-38, %v3052_v51  ;;  %vm3051_vm4 = vcmp.eq.f32.partialorder %v3050_v47, 8.507059e+37 }
0x24b9   :  { %v3863_v10 = vpop.eup %3862 }
0x24ba   :  { %v3042_v11 = vmul.f32 %v3863_v10, %v3039_v34  ;;  %vm3047_vm2 = vweird.f32 %v3863_v10 }
0x24bb   :  { %vm3048_vm0 = vmor %vm3046_vm3, %vm3047_vm2 }
0x24bc   :  { %v3043_v27 = vsub.f32 1.0, %v3042_v11  ;;  %v3395_v11 = vld [vmem:[%s6016_s4 + $0x7e0] sm:$0xff] }
0x24be   :  { %v3044_v12 = vmul.f32 %v3863_v10, %v3043_v27  ;;  %v3394_v27 = vld [vmem:[%s6016_s4 + $0x7d0] sm:$0xff] }
0x24c0   :  { %v3045_v3 = vadd.f32 %v3863_v10, %v3044_v12  ;;  %v3393_v12 = vld [vmem:[%s6016_s4 + $0x7c0] sm:$0xff] }
0x24c2   :  { %v3049_v5 = vsel %vm3048_vm0, %v3863_v10, %v3045_v3  ;;  %v3396_v10 = vld [vmem:[%s6016_s4 + $0x7f0] sm:$0xff] }
0x24c3   :  { %v3054_v46 = vsel %vm3051_vm4, %v3053_v44, %v3049_v5  ;;  %3415 = vmatpush.msra.mxu3 %v3396_v10  ;;  %v3392_v3 = vld [vmem:[%s6016_s4 + $0x7b0] sm:$0xff] }
0x24c4   :  { %v3072_v26 = vmul.f32 %v3054_v46, %v2981_v6 }
0x24c5   :  { %3416 = vmatpush.msra.mxu3 %v3395_v11 }
0x24c7   :  { %3417 = vmatpush.msra.mxu3 %v3394_v27 }
0x24c9   :  { %3418 = vmatpush.msra.mxu3 %v3393_v12 }
0x24cb   :  { %3419 = vmatpush.msra.mxu3 %v3392_v3 }
0x251b   :  { %v3075_v45 = vpop.permute.xlu1 %3074 }
0x251c   :  { %v3077_v41 = vmul.f32 %v3075_v45, %v3054_v46 }
0x251e   :  { %3079 = vrot.lane.b32.xlu2 %v3077_v41, %s3955_s8 }
0x2578   :  { %v3080_v42 = vpop.permute.xlu2 %3079 }
0x2579   :  { %v3082_v31 = vadd.f32 %v3080_v42, %v3072_v26 }
0x257b   :  { %3864 = vtanh.f32 %v3082_v31 }
0x257c   :  { %3866 = vpow2.f32 %v3561_v9 }
0x2581   :  { %v3865_v8 = vpop.eup %3864 }
0x2582   :  { %3085 = vrot.lane.b32.xlu0 %v3865_v8, %s3955_s8  ;;  %v3867_v25 = vpop.eup %3866 }
0x2583   :  { %v3040_v20 = vadd.f32 1.0, %v3867_v25 }
0x2585   :  { %3868 = vrcp.f32 %v3040_v20  ;;  %v3067_v33 = vand.u32 2147483648, %v3040_v20  ;;  %vm3061_vm7 = vweird.f32 %v3040_v20  ;;  %v3065_v35 = vand.u32 2147483647, %v3040_v20 }
0x2587   :  { %v3068_v30 = vor.u32 1.1754944e-38, %v3067_v33  ;;  %vm3066_vm5 = vcmp.eq.f32.partialorder %v3065_v35, 8.507059e+37 }
0x258b   :  { %v3869_v28 = vpop.eup %3868 }
0x258c   :  { %v3057_v22 = vmul.f32 %v3869_v28, %v3040_v20  ;;  %vm3062_vm6 = vweird.f32 %v3869_v28 }
0x258d   :  { %vm3063_vm8 = vmor %vm3061_vm7, %vm3062_vm6 }
0x258e   :  { %v3058_v24 = vsub.f32 1.0, %v3057_v22 }
0x2590   :  { %v3059_v18 = vmul.f32 %v3869_v28, %v3058_v24  ;;  %v5981_v24 = vld [vmem:[%s6016_s4 + $0x830] ss:$0 sm:$0xff] }
0x2592   :  { %v3060_v17 = vadd.f32 %v3869_v28, %v3059_v18 }
0x2594   :  { %v3064_v37 = vsel %vm3063_vm8, %v3869_v28, %v3060_v17 }
0x2595   :  { %v3069_v38 = vsel %vm3066_vm5, %v3068_v30, %v3064_v37 }
0x25f4   :  { %v3086_v0 = vpop.permute.xlu0 %3085 }
0x25f5   :  { %v5931_v59 = vmul.f32 %v3086_v0, %v3069_v38 }
0x25f7   :  { %3562 = vmatmul.msk.f32.vlgmr.msrb.gmra.mxu0 %vm199_vm9, %v5931_v59  ;;  %3563 = vmatmul.msk.f32.vlgmr.msra.gmra.mxu2 %vm199_vm9, %v5931_v59 }
0x2674   :  { %v3109_v23 = vpop.f32.mrf.mxu0 }
0x2675   :  { %v3132_v29 = vadd.f32 %v3109_v23, %v5915_v57 }
0x2677   :  { %v3564_v1 = vmul.f32 -1.442695, %v3132_v29 }
0x267a   :  { %v3129_v40 = vpop.f32.mrf.mxu2 }
0x267b   :  { %v3133_v39 = vadd.f32 %v3129_v40, %v5911_v13 }
0x267d   :  { %3870 = vtanh.f32 %v3133_v39  ;;  %v3565_v53 = vmul.f32 -1.442695, %v3133_v39 }
0x267e   :  { %3872 = vpow2.f32 %v3564_v1 }
0x2683   :  { %v3871_v48 = vpop.eup %3870 }
0x2684   :  { %3175 = vrot.lane.b32.xlu1 %v3871_v48, %s3955_s8  ;;  %v3873_v6 = vpop.eup %3872 }
0x2685   :  { %v3140_v14 = vadd.f32 1.0, %v3873_v6 }
0x2687   :  { %3874 = vrcp.f32 %v3140_v14  ;;  %v3153_v36 = vand.u32 2147483648, %v3140_v14  ;;  %vm3147_vm11 = vweird.f32 %v3140_v14  ;;  %v3151_v55 = vand.u32 2147483647, %v3140_v14 }
0x2689   :  { %v3154_v2 = vor.u32 1.1754944e-38, %v3153_v36  ;;  %vm3152_vm13 = vcmp.eq.f32.partialorder %v3151_v55, 8.507059e+37 }
0x268d   :  { %v3875_v52 = vpop.eup %3874 }
0x268e   :  { %v3143_v16 = vmul.f32 %v3875_v52, %v3140_v14  ;;  %vm3148_vm10 = vweird.f32 %v3875_v52 }
0x268f   :  { %vm3149_vm12 = vmor %vm3147_vm11, %vm3148_vm10 }
0x2690   :  { %v3144_v58 = vsub.f32 1.0, %v3143_v16 }
0x2692   :  { %v3145_v54 = vmul.f32 %v3875_v52, %v3144_v58 }
0x2694   :  { %v3146_v62 = vadd.f32 %v3875_v52, %v3145_v54 }
0x2696   :  { %v3150_v7 = vsel %vm3149_vm12, %v3875_v52, %v3146_v62 }
0x2697   :  { %v3155_v60 = vsel %vm3152_vm13, %v3154_v2, %v3150_v7 }
0x2698   :  { %v3173_v32 = vmul.f32 %v3155_v60, %v3082_v31 }
0x26f6   :  { %v3176_v43 = vpop.permute.xlu1 %3175 }
0x26f7   :  { %v3178_v21 = vmul.f32 %v3176_v43, %v3155_v60 }
0x26f9   :  { %3180 = vrot.lane.b32.xlu2 %v3178_v21, %s3955_s8 }
0x2753   :  { %v3181_v63 = vpop.permute.xlu2 %3180 }
0x2754   :  { %v5950_v4 = vadd.f32 %v3181_v63, %v3173_v32 }
0x2756   :  { %3876 = vtanh.f32 %v5950_v4 }
0x2757   :  { %3878 = vpow2.f32 %v3565_v53 }
0x275c   :  { %v3877_v50 = vpop.eup %3876 }
0x275d   :  { %3186 = vrot.lane.b32.xlu0 %v3877_v50, %s3955_s8  ;;  %v3879_v19 = vpop.eup %3878 }
0x275e   :  { %v3141_v34 = vadd.f32 1.0, %v3879_v19 }
0x2760   :  { %3880 = vrcp.f32 %v3141_v34  ;;  %v3168_v46 = vand.u32 2147483648, %v3141_v34  ;;  %vm3162_vm15 = vweird.f32 %v3141_v34  ;;  %v3166_v41 = vand.u32 2147483647, %v3141_v34 }
0x2762   :  { %v3169_v42 = vor.u32 1.1754944e-38, %v3168_v46  ;;  %vm3167_vm2 = vcmp.eq.f32.partialorder %v3166_v41, 8.507059e+37 }
0x2766   :  { %v3881_v51 = vpop.eup %3880 }
0x2767   :  { %v3158_v47 = vmul.f32 %v3881_v51, %v3141_v34  ;;  %vm3163_vm14 = vweird.f32 %v3881_v51 }
0x2768   :  { %vm3164_vm1 = vmor %vm3162_vm15, %vm3163_vm14 }
0x2769   :  { %v3159_v5 = vsub.f32 1.0, %v3158_v47 }
0x276b   :  { %v3160_v44 = vmul.f32 %v3881_v51, %v3159_v5 }
0x276d   :  { %v3161_v45 = vadd.f32 %v3881_v51, %v3160_v44 }
0x276f   :  { %v3165_v26 = vsel %vm3164_vm1, %v3881_v51, %v3161_v45 }
0x2770   :  { %v3170_v31 = vsel %vm3167_vm2, %v3169_v42, %v3165_v26 }
0x27cf   :  { %v3187_v8 = vpop.permute.xlu0 %3186 }
0x27d0   :  { %v3189_v9 = vmul.f32 %v3187_v8, %v3170_v31 }
0x27d2   :  { %3566 = vmatmul.msk.f32.vlgmr.msrb.gmra.mxu3 %vm199_vm9, %v3189_v9  ;;  %3567 = vmatmul.msk.f32.vlgmr.msra.gmra.mxu1 %vm199_vm9, %v3189_v9 }
0x27da   :  { %3574 = vmatmul.msk.f32.vlgmr.msra.gmra.mxu3 %vm199_vm9, %v5920_v15 }
0x27e2   :  { %3575 = vmatmul.msk.f32.gmra.mxu3 %vm199_vm9, %v5931_v59 }
0x27ea   :  { %3576 = vmatmul.msk.f32.gmra.mxu3 %vm199_vm9, %v3189_v9 }
0x284f   :  { %v3230_v25 = vpop.f32.mrf.mxu1 }
0x2850   :  { %v3234_v20 = vadd.f32 %v3230_v25, %v5911_v13 }
0x2852   :  { %3882 = vtanh.f32 %v3234_v20  ;;  %v3569_v2 = vmul.f32 -1.442695, %v3234_v20 }
0x2855   :  { %v3210_v28 = vpop.f32.mrf.mxu3 }
0x2856   :  { %v3233_v30 = vadd.f32 %v3210_v28, %v5915_v57 }
0x2858   :  { %v3883_v22 = vpop.eup %3882  ;;  %v3568_v38 = vmul.f32 -1.442695, %v3233_v30 }
0x2859   :  { %3276 = vrot.lane.b32.xlu1 %v3883_v22, %s3955_s8 }
0x285a   :  { %3884 = vpow2.f32 %v3568_v38 }
0x285d   :  { %v3421_v18 = vpop.f32.mrf.mxu3 }
0x285e   :  { %v3422_v15 = vadd.f32 %v3421_v18, %v5981_v24 }
0x2860   :  { %3436 = vst [vmem:[%s6021_s5] sm:$0xff] %v3422_v15  ;;  %v3885_v0 = vpop.eup %3884 }
0x2861   :  { %v3241_v59 = vadd.f32 1.0, %v3885_v0 }
0x2863   :  { %3886 = vrcp.f32 %v3241_v59  ;;  %v3254_v1 = vand.u32 2147483648, %v3241_v59  ;;  %vm3248_vm0 = vweird.f32 %v3241_v59  ;;  %v3252_v6 = vand.u32 2147483647, %v3241_v59 }
0x2865   :  { %v3424_v17 = vpop.f32.mrf.mxu3  ;;  %v3255_v52 = vor.u32 1.1754944e-38, %v3254_v1  ;;  %vm3253_vm6 = vcmp.eq.f32.partialorder %v3252_v6, 8.507059e+37 }
0x2866   :  { %v3425_v33 = vadd.f32 %v3424_v17, %v5981_v24 }
0x2868   :  { %3437 = vst [vmem:[%s6021_s5 + $0x8] sm:$0xff] %v3425_v33 }
0x2869   :  { %v3887_v40 = vpop.eup %3886 }
0x286a   :  { %v3244_v39 = vmul.f32 %v3887_v40, %v3241_v59  ;;  %vm3249_vm3 = vweird.f32 %v3887_v40 }
0x286b   :  { %vm3250_vm4 = vmor %vm3248_vm0, %vm3249_vm3 }
0x286c   :  { %v3245_v48 = vsub.f32 1.0, %v3244_v39 }
0x286d   :  { %v3427_v35 = vpop.f32.mrf.mxu3 }
0x286e   :  { %v3428_v37 = vadd.f32 %v3427_v35, %v5981_v24  ;;  %v3246_v23 = vmul.f32 %v3887_v40, %v3245_v48 }
0x2870   :  { %3438 = vst [vmem:[%s6021_s5 + $0x10] sm:$0xff] %v3428_v37  ;;  %v3247_v29 = vadd.f32 %v3887_v40, %v3246_v23 }
0x2872   :  { %v3251_v14 = vsel %vm3250_vm4, %v3887_v40, %v3247_v29 }
0x2873   :  { %v3256_v58 = vsel %vm3253_vm6, %v3255_v52, %v3251_v14 }
0x2874   :  { %v3274_v62 = vmul.f32 %v3256_v58, %v5950_v4 }
0x28cb   :  { %v3277_v16 = vpop.permute.xlu1 %3276 }
0x28cc   :  { %v3279_v54 = vmul.f32 %v3277_v16, %v3256_v58 }
0x28ce   :  { %3281 = vrot.lane.b32.xlu2 %v3279_v54, %s3955_s8 }
0x2928   :  { %v3282_v36 = vpop.permute.xlu2 %3281 }
0x2929   :  { %v3284_v55 = vadd.f32 %v3282_v36, %v3274_v62 }
0x292b   :  { %3888 = vtanh.f32 %v3284_v55 }
0x292c   :  { %3890 = vpow2.f32 %v3569_v2 }
0x2931   :  { %v3889_v7 = vpop.eup %3888 }
0x2932   :  { %3287 = vrot.lane.b32.xlu0 %v3889_v7, %s3955_s8  ;;  %v3891_v43 = vpop.eup %3890 }
0x2933   :  { %v3242_v60 = vadd.f32 1.0, %v3891_v43 }
0x2935   :  { %3892 = vrcp.f32 %v3242_v60  ;;  %v3269_v63 = vand.u32 2147483648, %v3242_v60  ;;  %vm3263_vm8 = vweird.f32 %v3242_v60  ;;  %v3267_v4 = vand.u32 2147483647, %v3242_v60 }
0x2937   :  { %v3270_v53 = vor.u32 1.1754944e-38, %v3269_v63  ;;  %vm3268_vm10 = vcmp.eq.f32.partialorder %v3267_v4, 8.507059e+37 }
0x293b   :  { %v3893_v21 = vpop.eup %3892 }
0x293c   :  { %v3259_v61 = vmul.f32 %v3893_v21, %v3242_v60  ;;  %vm3264_vm7 = vweird.f32 %v3893_v21 }
0x293d   :  { %vm3265_vm5 = vmor %vm3263_vm8, %vm3264_vm7 }
0x293e   :  { %v3260_v56 = vsub.f32 1.0, %v3259_v61 }
0x2940   :  { %v3261_v49 = vmul.f32 %v3893_v21, %v3260_v56 }
0x2942   :  { %v3262_v32 = vadd.f32 %v3893_v21, %v3261_v49 }
0x2944   :  { %v3266_v50 = vsel %vm3265_vm5, %v3893_v21, %v3262_v32 }
0x2945   :  { %v3271_v19 = vsel %vm3268_vm10, %v3270_v53, %v3266_v50 }
0x29a4   :  { %v3288_v34 = vpop.permute.xlu0 %3287 }
0x29a5   :  { %v3290_v10 = vmul.f32 %v3288_v34, %v3271_v19 }
0x29a7   :  { %3570 = vmatmul.msk.f32.vlgmr.msra.gmra.mxu0 %vm199_vm9, %v3290_v10  ;;  %3571 = vmatmul.msk.f32.vlgmr.msrb.gmra.mxu2 %vm199_vm9, %v3290_v10 }
0x29a8   :  { %3577 = vmatmul.msk.f32.gmra.mxu3 %vm199_vm9, %v3290_v10 }
0x2a24   :  { %v3311_v47 = vpop.f32.mrf.mxu0 }
0x2a25   :  { %v3334_v5 = vadd.f32 %v3311_v47, %v5915_v57 }
0x2a27   :  { %v3572_v44 = vmul.f32 -1.442695, %v3334_v5 }
0x2a2a   :  { %v3331_v11 = vpop.f32.mrf.mxu2 }
0x2a2b   :  { %v3335_v27 = vadd.f32 %v3331_v11, %v5911_v13  ;;  %v3430_v12 = vpop.f32.mrf.mxu3 }
0x2a2c   :  { %v3431_v3 = vadd.f32 %v3430_v12, %v5981_v24 }
0x2a2d   :  { %3894 = vtanh.f32 %v3335_v27  ;;  %v3573_v35 = vmul.f32 -1.442695, %v3335_v27 }
0x2a2e   :  { %3439 = vst [vmem:[%s6021_s5 + $0x18] sm:$0xff] %v3431_v3  ;;  %3896 = vpow2.f32 %v3572_v44 }
0x2a33   :  { %v3895_v51 = vpop.eup %3894 }
0x2a34   :  { %3377 = vrot.lane.b32.xlu1 %v3895_v51, %s3955_s8  ;;  %v3897_v45 = vpop.eup %3896 }
0x2a35   :  { %v3342_v46 = vadd.f32 1.0, %v3897_v45 }
0x2a37   :  { %3898 = vrcp.f32 %v3342_v46  ;;  %v3355_v8 = vand.u32 2147483648, %v3342_v46  ;;  %vm3349_vm12 = vweird.f32 %v3342_v46  ;;  %v3353_v9 = vand.u32 2147483647, %v3342_v46 }
0x2a39   :  { %v3356_v20 = vor.u32 1.1754944e-38, %v3355_v8  ;;  %vm3354_vm14 = vcmp.eq.f32.partialorder %v3353_v9, 8.507059e+37 }
0x2a3d   :  { %v3899_v13 = vpop.eup %3898 }
0x2a3e   :  { %v3345_v41 = vmul.f32 %v3899_v13, %v3342_v46  ;;  %vm3350_vm11 = vweird.f32 %v3899_v13 }
0x2a3f   :  { %vm3351_vm13 = vmor %vm3349_vm12, %vm3350_vm11 }
0x2a40   :  { %v3346_v26 = vsub.f32 1.0, %v3345_v41 }
0x2a42   :  { %v3347_v42 = vmul.f32 %v3899_v13, %v3346_v26 }
0x2a44   :  { %v3348_v31 = vadd.f32 %v3899_v13, %v3347_v42 }
0x2a46   :  { %v3352_v25 = vsel %vm3351_vm13, %v3899_v13, %v3348_v31 }
0x2a47   :  { %v3357_v57 = vsel %vm3354_vm14, %v3356_v20, %v3352_v25 }
0x2a48   :  { %v3375_v18 = vmul.f32 %v3357_v57, %v3284_v55 }
0x2aa6   :  { %v3378_v28 = vpop.permute.xlu1 %3377 }
0x2aa7   :  { %v3380_v22 = vmul.f32 %v3378_v28, %v3357_v57 }
0x2aa9   :  { %3382 = vrot.lane.b32.xlu2 %v3380_v22, %s3955_s8 }
0x2b03   :  { %v3383_v15 = vpop.permute.xlu2 %3382 }
0x2b04   :  { %v3385_v17 = vadd.f32 %v3383_v15, %v3375_v18 }
0x2b06   :  { %3900 = vtanh.f32 %v3385_v17 }
0x2b07   :  { %3902 = vpow2.f32 %v3573_v35 }
0x2b0c   :  { %v3901_v33 = vpop.eup %3900 }
0x2b0d   :  { %3388 = vrot.lane.b32.xlu0 %v3901_v33, %s3955_s8  ;;  %v3903_v37 = vpop.eup %3902 }
0x2b0e   :  { %v3343_v30 = vadd.f32 1.0, %v3903_v37 }
0x2b10   :  { %3904 = vrcp.f32 %v3343_v30  ;;  %v3370_v48 = vand.u32 2147483648, %v3343_v30  ;;  %vm3364_vm1 = vweird.f32 %v3343_v30  ;;  %v3368_v23 = vand.u32 2147483647, %v3343_v30 }
0x2b12   :  { %v3371_v1 = vor.u32 1.1754944e-38, %v3370_v48  ;;  %vm3369_vm3 = vcmp.eq.f32.partialorder %v3368_v23, 8.507059e+37 }
0x2b16   :  { %v3905_v38 = vpop.eup %3904 }
0x2b17   :  { %v3360_v0 = vmul.f32 %v3905_v38, %v3343_v30  ;;  %vm3365_vm15 = vweird.f32 %v3905_v38 }
0x2b18   :  { %vm3366_vm2 = vmor %vm3364_vm1, %vm3365_vm15 }
0x2b19   :  { %v3361_v59 = vsub.f32 1.0, %v3360_v0 }
0x2b1b   :  { %v3362_v40 = vmul.f32 %v3905_v38, %v3361_v59 }
0x2b1d   :  { %v3363_v39 = vadd.f32 %v3905_v38, %v3362_v40 }
0x2b1f   :  { %v3367_v29 = vsel %vm3366_vm2, %v3905_v38, %v3363_v39 }
0x2b20   :  { %v3372_v6 = vsel %vm3369_vm3, %v3371_v1, %v3367_v29 }
0x2b7f   :  { %v3389_v14 = vpop.permute.xlu0 %3388 }
0x2b80   :  { %v3391_v52 = vmul.f32 %v3389_v14, %v3372_v6 }
0x2b82   :  { %3578 = vmatmul.msk.f32.gmra.mxu3 %vm199_vm9, %v3391_v52 }
0x2c05   :  { %v3433_v16 = vpop.f32.mrf.mxu3 }
0x2c06   :  { %v3434_v58 = vadd.f32 %v3433_v16, %v5981_v24 }
0x2c08   :  { %3440 = vst [vmem:[%s6021_s5 + $0x20] sm:$0xff] %v3434_v58 }

</bundles_post_ra>
